<compile_context>
chip_gen: v6e
topology: v6e:2x2x1
jax: 0.10.0
libtpu: 0.0.40
codegen_flags: <defaults>
</compile_context>

<pallas_src>
import functools

import jax
import jax.numpy as jnp
from jax.experimental import pallas as pl
from jax.experimental.pallas import tpu as pltpu

BN_EPS = 1e-5
MAX_TILE_ROWS = 1024  # spatial rows per grid step (bounds VMEM at any volume)


def _round_up(a, b):
    return -(-a // b) * b


@functools.lru_cache(maxsize=1)
def _vmem_limit_bytes():
    """Generation-aware VMEM limit: ~3/4 of physical, capped at 100 MiB."""
    try:
        info = pltpu.get_tpu_info()
        cap = getattr(info, "vmem_capacity_bytes", None)
        if cap:
            return int(min(cap * 3 // 4, 100 * 1024 * 1024))
    except Exception:
        pass
    return 48 * 1024 * 1024  # safe on every generation (v7x has 64 MiB/TC)


# --------------------------------------------------------------------------
# Pallas kernels: k dz-tap matmuls (dy/dx folded into lanes) + BN epilogue
# --------------------------------------------------------------------------
def _make_conv_kernel(k, mode, relu=True):
    """mode in {"plain", "residual", "downsample"}."""

    def kernel(*refs):
        x_refs = refs[:k]
        w_ref = refs[k]        # (k, k*k*Cin, Cout), BN scale folded, bf16
        shift_ref = refs[k + 1]  # (1, Cout) f32 BN shift

        acc = jnp.dot(x_refs[0][...], w_ref[0],
                      preferred_element_type=jnp.float32)
        for dz in range(1, k):
            acc += jnp.dot(x_refs[dz][...], w_ref[dz],
                           preferred_element_type=jnp.float32)
        y = acc + shift_ref[...]

        if mode == "plain":
            o_ref = refs[k + 2]
            if relu:
                y = jnp.maximum(y, 0.0)
        elif mode == "residual":
            res_ref, o_ref = refs[k + 2], refs[k + 3]
            y = jnp.maximum(y + res_ref[...].astype(jnp.float32), 0.0)
        else:  # "downsample": fused 1x1 stride-s conv + BN residual
            xd_ref, wd_ref, shiftd_ref, o_ref = refs[k + 2:k + 6]
            r = jnp.dot(xd_ref[...], wd_ref[0],
                        preferred_element_type=jnp.float32) + shiftd_ref[...]
            y = jnp.maximum(y + r, 0.0)

        o_ref[...] = y.astype(o_ref.dtype)

    return kernel


# --------------------------------------------------------------------------
# One-pass plain-JAX prep: pad + fold (dy, dx) taps into lanes + row-flatten
# --------------------------------------------------------------------------
def _build_conv_source(x, k, pad, stride):
    """x: (N, D, H, W, C) bf16 -> src (N, Dp, rows_total, k*k*C).

    The H/W stride is applied here; the depth (dz) taps and the depth stride
    are handled by the Pallas BlockSpec index maps.
    """
    n, d, h, w, c = x.shape
    if pad:
        x = jnp.pad(x, ((0, 0), (pad, pad), (pad, pad), (pad, pad), (0, 0)))
    dp, hp, wp = d + 2 * pad, h + 2 * pad, w + 2 * pad
    do = (dp - k) // stride + 1
    ho = (hp - k) // stride + 1
    wo = (wp - k) // stride + 1

    if k > 1:
        taps = [x[:, :, dy:dy + stride * (ho - 1) + 1:stride,
                      dx:dx + stride * (wo - 1) + 1:stride, :]
                for dy in range(k) for dx in range(k)]
        src = jnp.concatenate(taps, axis=-1)          # (N, Dp, ho, wo, k*k*C)
    else:
        src = x[:, :, ::stride, ::stride, :][:, :, :ho, :wo, :]

    rows = ho * wo
    tile_r = _round_up(rows, 8) if rows <= MAX_TILE_ROWS else MAX_TILE_ROWS
    rows_total = _round_up(rows, tile_r)
    src = src.reshape(n, dp, rows, k * k * c)
    if rows_total > rows:
        src = jnp.pad(src, ((0, 0), (0, 0), (0, rows_total - rows), (0, 0)))
    return src, (do, ho, wo), tile_r, rows_total // tile_r


def _rows_embed(t, rows_total):
    """(N, Do, Ho, Wo, C) -> (N, Do, rows_total, C) with zero row padding."""
    n, do, ho, wo, c = t.shape
    t = t.reshape(n, do, ho * wo, c)
    if rows_total > ho * wo:
        t = jnp.pad(t, ((0, 0), (0, 0), (0, rows_total - ho * wo), (0, 0)))
    return t


# --------------------------------------------------------------------------
# Conv wrapper: Conv3d(bias=False) + folded BN (+ residual / downsample) + ReLU
# --------------------------------------------------------------------------
def conv3d_bn(x, p, *, stride, relu=True, residual=None,
              ds=None, ds_x=None, ds_stride=1):
    """x: (N, D, H, W, Cin) bf16 -> (N, Do, Ho, Wo, Cout) bf16.

    residual : identity tensor added before the final ReLU.
    ds/ds_x  : fused 1x1 stride-`ds_stride` downsample conv + BN on ds_x whose
               output is the residual.
    """
    n = x.shape[0]
    k = p["k"]
    cout = p["w"].shape[-1]
    src, (do, ho, wo), tile_r, n_rt = _build_conv_source(x, k, p["pad"], stride)
    kc = src.shape[-1]
    rows_total = src.shape[2]

    def xspec(dz):
        # depth block size 1 -> block index == element index, so the dz tap
        # and the depth stride live entirely in the index map (no in-kernel
        # row offsets -> every slice is sublane aligned by construction).
        return pl.BlockSpec((None, None, tile_r, kc),
                            lambda b, z, r, dz=dz: (b, stride * z + dz, r, 0))

    in_specs = [xspec(dz) for dz in range(k)]
    in_specs += [pl.BlockSpec(p["w"].shape, lambda b, z, r: (0, 0, 0)),
                 pl.BlockSpec((1, cout), lambda b, z, r: (0, 0))]
    args = [src] * k + [p["w"], p["shift"]]

    if residual is not None:
        res = _rows_embed(residual, rows_total)
        in_specs.append(pl.BlockSpec((None, None, tile_r, cout),
                                     lambda b, z, r: (b, z, r, 0)))
        args.append(res)
        kernel = _make_conv_kernel(k, "residual")
    elif ds is not None:
        xd = ds_x[:, ::ds_stride, ::ds_stride, ::ds_stride, :]
        xd = xd[:, :do, :ho, :wo, :]
        cin_ds = xd.shape[-1]
        xd = _rows_embed(xd, rows_total)
        in_specs += [pl.BlockSpec((None, None, tile_r, cin_ds),
                                  lambda b, z, r: (b, z, r, 0)),
                     pl.BlockSpec(ds["w"].shape, lambda b, z, r: (0, 0, 0)),
                     pl.BlockSpec((1, cout), lambda b, z, r: (0, 0))]
        args += [xd, ds["w"], ds["shift"]]
        kernel = _make_conv_kernel(k, "downsample")
    else:
        kernel = _make_conv_kernel(k, "plain", relu=relu)

    out = pl.pallas_call(
        kernel,
        out_shape=jax.ShapeDtypeStruct((n, do, rows_total, cout), x.dtype),
        grid=(n, do, n_rt),
        in_specs=in_specs,
        out_specs=pl.BlockSpec((None, None, tile_r, cout),
                               lambda b, z, r: (b, z, r, 0)),
        compiler_params=pltpu.CompilerParams(
            dimension_semantics=("parallel", "parallel", "parallel"),
            vmem_limit_bytes=_vmem_limit_bytes()),
    )(*args)

    rows = ho * wo
    return out[:, :, :rows, :].reshape(n, do, ho, wo, cout)


# --------------------------------------------------------------------------
# Pooling (plain JAX: pure reshape + reduce, tiny tensors)
# --------------------------------------------------------------------------
def maxpool3d_2x2(x):
    n, d, h, w, c = x.shape
    x = x[:, :d // 2 * 2, :h // 2 * 2, :w // 2 * 2, :]   # PyTorch floor mode
    xr = x.reshape(n, d // 2, 2, h // 2, 2, w // 2, 2, c)
    return xr.max(axis=(2, 4, 6))


def global_avg_pool(x):
    n, c = x.shape[0], x.shape[-1]
    return jnp.mean(x.astype(jnp.float32).reshape(n, -1, c), axis=1)


# --------------------------------------------------------------------------
# Deterministic parameter initialization (BN folded, bf16 weights)
# --------------------------------------------------------------------------
def init_conv_bn(key, cin, cout, k):
    k1, k2, k3, k4, k5 = jax.random.split(key, 5)
    fan_in = cin * k ** 3
    # weight in im2col layout (k^3*Cin, Cout), tap order (dz, dy, dx, c)
    w = jax.random.normal(k1, (k ** 3 * cin, cout), jnp.float32) / jnp.sqrt(fan_in)
    gamma = 1.0 + 0.1 * jax.random.normal(k2, (cout,), jnp.float32)
    beta = 0.1 * jax.random.normal(k3, (cout,), jnp.float32)
    rmean = 0.1 * jax.random.normal(k4, (cout,), jnp.float32)
    rvar = 1.0 + 0.1 * jax.random.uniform(k5, (cout,), jnp.float32)
    scale = gamma / jnp.sqrt(rvar + BN_EPS)
    shift = (beta - rmean * scale).reshape(1, cout)
    # fold BN scale into the weight columns; (k, k*k*Cin, Cout) so the kernel
    # indexes one dz tap (with dy, dx folded into the contraction) at a time.
    w = (w * scale[None, :]).astype(jnp.bfloat16).reshape(k, k * k * cin, cout)
    return {"w": w, "shift": shift, "k": k, "pad": k // 2}


def init_resblock(key, cin, cout, stride, no_downsample=False):
    if no_downsample:
        stride = 1
    k1, k2, k3 = jax.random.split(key, 3)
    p = {
        "stride": stride,
        "conv1": init_conv_bn(k1, cin, cout, 3),
        "conv2": init_conv_bn(k2, cout, cout, 3),
    }
    if stride != 1 or cin != cout:
        p["downsample"] = init_conv_bn(k3, cin, cout, 1)  # 1x1x1 conv + BN
    else:
        p["downsample"] = None
    return p


def init_base_resnet(key, in_channels, n_outputs=3, n_blocks=4, n_basefilters=8,
                     remain_downsample_steps=None, no_downsample=False):
    if n_blocks < 2:
        raise ValueError(f"n_blocks must be at least 2, but got {n_blocks}")
    keys = jax.random.split(key, n_blocks + 1)
    params = {"conv1": init_conv_bn(keys[0], in_channels, n_basefilters, 5)}
    blocks = [init_resblock(keys[1], n_basefilters, n_basefilters, 1, no_downsample)]
    nf = n_basefilters
    for i in range(n_blocks - 1):
        if remain_downsample_steps and i > remain_downsample_steps:
            stride = 1
        else:
            stride = 2
        blocks.append(init_resblock(keys[2 + i], nf, 2 * nf, stride, no_downsample))
        nf *= 2
    params["blocks"] = blocks
    return params


# --------------------------------------------------------------------------
# Forward pass
# --------------------------------------------------------------------------
def resblock_forward(x, p):
    s = p["stride"]
    out = conv3d_bn(x, p["conv1"], stride=s, relu=True)          # ConvBnReLU
    if p["downsample"] is not None:
        # conv2 + BN + (1x1 downsample conv + BN residual) + ReLU in one kernel
        out = conv3d_bn(out, p["conv2"], stride=1,
                        ds=p["downsample"], ds_x=x, ds_stride=s)
    else:
        # conv2 + BN + identity residual + ReLU in one kernel
        out = conv3d_bn(out, p["conv2"], stride=1, residual=x)
    return out


def base_resnet_forward(x_ncdhw, params):
    # PyTorch NCDHW -> channels-last NDHWC, bf16 activations
    x = jnp.transpose(x_ncdhw, (0, 2, 3, 4, 1)).astype(jnp.bfloat16)
    out = conv3d_bn(x, params["conv1"], stride=1, relu=True)     # conv1 (k=5)
    out = maxpool3d_2x2(out)                                     # pool1
    for bp in params["blocks"]:
        out = resblock_forward(out, bp)
    return global_avg_pool(out)                                  # (N, C) f32


# --------------------------------------------------------------------------
if __name__ == "__main__":
    key = jax.random.PRNGKey(0)
    kx, kp = jax.random.split(key)

    N, C, D, H, W = 2, 4, 16, 16, 16
    x = jax.random.normal(kx, (N, C, D, H, W), jnp.float32)

    params = init_base_resnet(kp, in_channels=C, n_blocks=4, n_basefilters=8)

    fwd = jax.jit(lambda v: base_resnet_forward(v, params))
    out = jax.block_until_ready(fwd(x))

    assert out.shape == (N, 64), out.shape   # 8 * 2**(n_blocks-1) = 64 features
    assert out.dtype == jnp.float32
    assert bool(jnp.all(jnp.isfinite(out)))
    print("KERNEL_OK")
</pallas_src>

<mosaic_0001>
module attributes {stable_mosaic.version = 11 : i64} {
  func.func @kernel(%arg0: i32, %arg1: i32, %arg2: i32, %arg3: memref<1x1x256x100xbf16, #tpu.memory_space<vmem>>, %arg4: memref<1x1x256x100xbf16, #tpu.memory_space<vmem>>, %arg5: memref<1x1x256x100xbf16, #tpu.memory_space<vmem>>, %arg6: memref<1x1x256x100xbf16, #tpu.memory_space<vmem>>, %arg7: memref<1x1x256x100xbf16, #tpu.memory_space<vmem>>, %arg8: memref<5x100x8xbf16, #tpu.memory_space<vmem>>, %arg9: memref<1x8xf32, #tpu.memory_space<vmem>>, %arg10: memref<1x1x256x8xbf16, #tpu.memory_space<vmem>>) attributes {dimension_semantics = [#tpu.dimension_semantics<parallel>, #tpu.dimension_semantics<parallel>, #tpu.dimension_semantics<parallel>], iteration_bounds = array<i64: 2, 16, 1>, scalar_prefetch = 0 : i64, scratch_operands = 0 : i64, tpu.core_type = #tpu.core_type<tc>, window_params = [{transform_indices = @transform_0, window_bounds = array<i64: 1, 1, 256, 100>}, {transform_indices = @transform_1, window_bounds = array<i64: 1, 1, 256, 100>}, {transform_indices = @transform_2, window_bounds = array<i64: 1, 1, 256, 100>}, {transform_indices = @transform_3, window_bounds = array<i64: 1, 1, 256, 100>}, {transform_indices = @transform_4, window_bounds = array<i64: 1, 1, 256, 100>}, {pipeline_mode = #tpu.pipeline_mode<synchronous>, transform_indices = @transform_5, window_bounds = array<i64: 5, 100, 8>}, {pipeline_mode = #tpu.pipeline_mode<synchronous>, transform_indices = @transform_6, window_bounds = array<i64: 1, 8>}, {transform_indices = @transform_7, window_bounds = array<i64: 1, 1, 256, 8>}]} {
    %c0 = arith.constant 0 : index
    %c0_0 = arith.constant 0 : index
    %c0_1 = arith.constant 0 : index
    %c0_2 = arith.constant 0 : index
    %0 = vector.load %arg3[%c0, %c0_0, %c0_1, %c0_2] : memref<1x1x256x100xbf16, #tpu.memory_space<vmem>>, vector<1x1x256x100xbf16>
    %1 = vector.shape_cast %0 : vector<1x1x256x100xbf16> to vector<256x100xbf16>
    %c0_3 = arith.constant 0 : index
    %c0_4 = arith.constant 0 : index
    %c0_5 = arith.constant 0 : index
    %2 = vector.load %arg8[%c0_3, %c0_4, %c0_5] : memref<5x100x8xbf16, #tpu.memory_space<vmem>>, vector<1x100x8xbf16>
    %3 = vector.shape_cast %2 : vector<1x100x8xbf16> to vector<100x8xbf16>
    %cst = arith.constant dense<0.000000e+00> : vector<256x8xf32>
    %4 = tpu.matmul %1, %3, %cst {dimension_numbers = #tpu.dot_dimension_numbers<[1], [0], [0], [1], [0, 0, 1, 1], [], []>} : vector<256x100xbf16>, vector<100x8xbf16>, vector<256x8xf32> -> vector<256x8xf32>
    %c0_6 = arith.constant 0 : index
    %c0_7 = arith.constant 0 : index
    %c0_8 = arith.constant 0 : index
    %c0_9 = arith.constant 0 : index
    %5 = vector.load %arg4[%c0_6, %c0_7, %c0_8, %c0_9] : memref<1x1x256x100xbf16, #tpu.memory_space<vmem>>, vector<1x1x256x100xbf16>
    %6 = vector.shape_cast %5 : vector<1x1x256x100xbf16> to vector<256x100xbf16>
    %c1 = arith.constant 1 : index
    %c0_10 = arith.constant 0 : index
    %c0_11 = arith.constant 0 : index
    %7 = vector.load %arg8[%c1, %c0_10, %c0_11] : memref<5x100x8xbf16, #tpu.memory_space<vmem>>, vector<1x100x8xbf16>
    %8 = vector.shape_cast %7 : vector<1x100x8xbf16> to vector<100x8xbf16>
    %cst_12 = arith.constant dense<0.000000e+00> : vector<256x8xf32>
    %9 = tpu.matmul %6, %8, %cst_12 {dimension_numbers = #tpu.dot_dimension_numbers<[1], [0], [0], [1], [0, 0, 1, 1], [], []>} : vector<256x100xbf16>, vector<100x8xbf16>, vector<256x8xf32> -> vector<256x8xf32>
    %10 = arith.addf %4, %9 : vector<256x8xf32>
    %c0_13 = arith.constant 0 : index
    %c0_14 = arith.constant 0 : index
    %c0_15 = arith.constant 0 : index
    %c0_16 = arith.constant 0 : index
    %11 = vector.load %arg5[%c0_13, %c0_14, %c0_15, %c0_16] : memref<1x1x256x100xbf16, #tpu.memory_space<vmem>>, vector<1x1x256x100xbf16>
    %12 = vector.shape_cast %11 : vector<1x1x256x100xbf16> to vector<256x100xbf16>
    %c2 = arith.constant 2 : index
    %c0_17 = arith.constant 0 : index
    %c0_18 = arith.constant 0 : index
    %13 = vector.load %arg8[%c2, %c0_17, %c0_18] : memref<5x100x8xbf16, #tpu.memory_space<vmem>>, vector<1x100x8xbf16>
    %14 = vector.shape_cast %13 : vector<1x100x8xbf16> to vector<100x8xbf16>
    %cst_19 = arith.constant dense<0.000000e+00> : vector<256x8xf32>
    %15 = tpu.matmul %12, %14, %cst_19 {dimension_numbers = #tpu.dot_dimension_numbers<[1], [0], [0], [1], [0, 0, 1, 1], [], []>} : vector<256x100xbf16>, vector<100x8xbf16>, vector<256x8xf32> -> vector<256x8xf32>
    %16 = arith.addf %10, %15 : vector<256x8xf32>
    %c0_20 = arith.constant 0 : index
    %c0_21 = arith.constant 0 : index
    %c0_22 = arith.constant 0 : index
    %c0_23 = arith.constant 0 : index
    %17 = vector.load %arg6[%c0_20, %c0_21, %c0_22, %c0_23] : memref<1x1x256x100xbf16, #tpu.memory_space<vmem>>, vector<1x1x256x100xbf16>
    %18 = vector.shape_cast %17 : vector<1x1x256x100xbf16> to vector<256x100xbf16>
    %c3 = arith.constant 3 : index
    %c0_24 = arith.constant 0 : index
    %c0_25 = arith.constant 0 : index
    %19 = vector.load %arg8[%c3, %c0_24, %c0_25] : memref<5x100x8xbf16, #tpu.memory_space<vmem>>, vector<1x100x8xbf16>
    %20 = vector.shape_cast %19 : vector<1x100x8xbf16> to vector<100x8xbf16>
    %cst_26 = arith.constant dense<0.000000e+00> : vector<256x8xf32>
    %21 = tpu.matmul %18, %20, %cst_26 {dimension_numbers = #tpu.dot_dimension_numbers<[1], [0], [0], [1], [0, 0, 1, 1], [], []>} : vector<256x100xbf16>, vector<100x8xbf16>, vector<256x8xf32> -> vector<256x8xf32>
    %22 = arith.addf %16, %21 : vector<256x8xf32>
    %c0_27 = arith.constant 0 : index
    %c0_28 = arith.constant 0 : index
    %c0_29 = arith.constant 0 : index
    %c0_30 = arith.constant 0 : index
    %23 = vector.load %arg7[%c0_27, %c0_28, %c0_29, %c0_30] : memref<1x1x256x100xbf16, #tpu.memory_space<vmem>>, vector<1x1x256x100xbf16>
    %24 = vector.shape_cast %23 : vector<1x1x256x100xbf16> to vector<256x100xbf16>
    %c4 = arith.constant 4 : index
    %c0_31 = arith.constant 0 : index
    %c0_32 = arith.constant 0 : index
    %25 = vector.load %arg8[%c4, %c0_31, %c0_32] : memref<5x100x8xbf16, #tpu.memory_space<vmem>>, vector<1x100x8xbf16>
    %26 = vector.shape_cast %25 : vector<1x100x8xbf16> to vector<100x8xbf16>
    %cst_33 = arith.constant dense<0.000000e+00> : vector<256x8xf32>
    %27 = tpu.matmul %24, %26, %cst_33 {dimension_numbers = #tpu.dot_dimension_numbers<[1], [0], [0], [1], [0, 0, 1, 1], [], []>} : vector<256x100xbf16>, vector<100x8xbf16>, vector<256x8xf32> -> vector<256x8xf32>
    %28 = arith.addf %22, %27 : vector<256x8xf32>
    %c0_34 = arith.constant 0 : index
    %c0_35 = arith.constant 0 : index
    %29 = vector.load %arg9[%c0_34, %c0_35] : memref<1x8xf32, #tpu.memory_space<vmem>>, vector<1x8xf32>
    %30 = vector.broadcast %29 : vector<1x8xf32> to vector<256x8xf32>
    %31 = arith.addf %28, %30 : vector<256x8xf32>
    %cst_36 = arith.constant 0.000000e+00 : f32
    %32 = vector.broadcast %cst_36 : f32 to vector<256x8xf32>
    %33 = arith.maximumf %31, %32 : vector<256x8xf32>
    %34 = arith.truncf %33 : vector<256x8xf32> to vector<256x8xbf16>
    %c0_37 = arith.constant 0 : index
    %c0_38 = arith.constant 0 : index
    %c0_39 = arith.constant 0 : index
    %c0_40 = arith.constant 0 : index
    %35 = vector.load %arg10[%c0_37, %c0_38, %c0_39, %c0_40] : memref<1x1x256x8xbf16, #tpu.memory_space<vmem>>, vector<1x1x256x8xbf16>
    %36 = vector.shape_cast %35 : vector<1x1x256x8xbf16> to vector<256x8xbf16>
    %37 = vector.shape_cast %34 : vector<256x8xbf16> to vector<1x1x256x8xbf16>
    tpu.vector_store %arg10[%c0_37, %c0_38, %c0_39, %c0_40], %37 {strides = array<i32>} : memref<1x1x256x8xbf16, #tpu.memory_space<vmem>>, vector<1x1x256x8xbf16>,
    return
  }
  func.func @transform_0(%arg0: i32, %arg1: i32, %arg2: i32) -> (i32, i32, i32, i32) {
    %c1_i32 = arith.constant 1 : i32
    %0 = arith.muli %c1_i32, %arg1 : i32
    %c0_i32 = arith.constant 0 : i32
    %1 = arith.addi %0, %c0_i32 : i32
    %c0_i32_0 = arith.constant 0 : i32
    %c0_i32_1 = arith.constant 0 : i32
    return %arg0, %1, %arg2, %c0_i32_0 : i32, i32, i32, i32
  }
  func.func @transform_1(%arg0: i32, %arg1: i32, %arg2: i32) -> (i32, i32, i32, i32) {
    %c1_i32 = arith.constant 1 : i32
    %0 = arith.muli %c1_i32, %arg1 : i32
    %c1_i32_0 = arith.constant 1 : i32
    %1 = arith.addi %0, %c1_i32_0 : i32
    %c0_i32 = arith.constant 0 : i32
    %c0_i32_1 = arith.constant 0 : i32
    return %arg0, %1, %arg2, %c0_i32 : i32, i32, i32, i32
  }
  func.func @transform_2(%arg0: i32, %arg1: i32, %arg2: i32) -> (i32, i32, i32, i32) {
    %c1_i32 = arith.constant 1 : i32
    %0 = arith.muli %c1_i32, %arg1 : i32
    %c2_i32 = arith.constant 2 : i32
    %1 = arith.addi %0, %c2_i32 : i32
    %c0_i32 = arith.constant 0 : i32
    %c0_i32_0 = arith.constant 0 : i32
    return %arg0, %1, %arg2, %c0_i32 : i32, i32, i32, i32
  }
  func.func @transform_3(%arg0: i32, %arg1: i32, %arg2: i32) -> (i32, i32, i32, i32) {
    %c1_i32 = arith.constant 1 : i32
    %0 = arith.muli %c1_i32, %arg1 : i32
    %c3_i32 = arith.constant 3 : i32
    %1 = arith.addi %0, %c3_i32 : i32
    %c0_i32 = arith.constant 0 : i32
    %c0_i32_0 = arith.constant 0 : i32
    return %arg0, %1, %arg2, %c0_i32 : i32, i32, i32, i32
  }
  func.func @transform_4(%arg0: i32, %arg1: i32, %arg2: i32) -> (i32, i32, i32, i32) {
    %c1_i32 = arith.constant 1 : i32
    %0 = arith.muli %c1_i32, %arg1 : i32
    %c4_i32 = arith.constant 4 : i32
    %1 = arith.addi %0, %c4_i32 : i32
    %c0_i32 = arith.constant 0 : i32
    %c0_i32_0 = arith.constant 0 : i32
    return %arg0, %1, %arg2, %c0_i32 : i32, i32, i32, i32
  }
  func.func @transform_5(%arg0: i32, %arg1: i32, %arg2: i32) -> (i32, i32, i32) {
    %c0_i32 = arith.constant 0 : i32
    %c0_i32_0 = arith.constant 0 : i32
    %c0_i32_1 = arith.constant 0 : i32
    %c0_i32_2 = arith.constant 0 : i32
    return %c0_i32, %c0_i32_0, %c0_i32_1 : i32, i32, i32
  }
  func.func @transform_6(%arg0: i32, %arg1: i32, %arg2: i32) -> (i32, i32) {
    %c0_i32 = arith.constant 0 : i32
    %c0_i32_0 = arith.constant 0 : i32
    %c0_i32_1 = arith.constant 0 : i32
    return %c0_i32, %c0_i32_0 : i32, i32
  }
  func.func @transform_7(%arg0: i32, %arg1: i32, %arg2: i32) -> (i32, i32, i32, i32) {
    %c0_i32 = arith.constant 0 : i32
    %c0_i32_0 = arith.constant 0 : i32
    return %arg0, %arg1, %arg2, %c0_i32 : i32, i32, i32, i32
  }
}

module attributes {stable_mosaic.version = 11 : i64} {
  func.func @kernel(%arg0: i32, %arg1: i32, %arg2: i32, %arg3: memref<1x1x64x72xbf16, #tpu.memory_space<vmem>>, %arg4: memref<1x1x64x72xbf16, #tpu.memory_space<vmem>>, %arg5: memref<1x1x64x72xbf16, #tpu.memory_space<vmem>>, %arg6: memref<3x72x8xbf16, #tpu.memory_space<vmem>>, %arg7: memref<1x8xf32, #tpu.memory_space<vmem>>, %arg8: memref<1x1x64x8xbf16, #tpu.memory_space<vmem>>) attributes {dimension_semantics = [#tpu.dimension_semantics<parallel>, #tpu.dimension_semantics<parallel>, #tpu.dimension_semantics<parallel>], iteration_bounds = array<i64: 2, 8, 1>, scalar_prefetch = 0 : i64, scratch_operands = 0 : i64, tpu.core_type = #tpu.core_type<tc>, window_params = [{transform_indices = @transform_0, window_bounds = array<i64: 1, 1, 64, 72>}, {transform_indices = @transform_1, window_bounds = array<i64: 1, 1, 64, 72>}, {transform_indices = @transform_2, window_bounds = array<i64: 1, 1, 64, 72>}, {pipeline_mode = #tpu.pipeline_mode<synchronous>, transform_indices = @transform_3, window_bounds = array<i64: 3, 72, 8>}, {pipeline_mode = #tpu.pipeline_mode<synchronous>, transform_indices = @transform_4, window_bounds = array<i64: 1, 8>}, {transform_indices = @transform_5, window_bounds = array<i64: 1, 1, 64, 8>}]} {
    %c0 = arith.constant 0 : index
    %c0_0 = arith.constant 0 : index
    %c0_1 = arith.constant 0 : index
    %c0_2 = arith.constant 0 : index
    %0 = vector.load %arg3[%c0, %c0_0, %c0_1, %c0_2] : memref<1x1x64x72xbf16, #tpu.memory_space<vmem>>, vector<1x1x64x72xbf16>
    %1 = vector.shape_cast %0 : vector<1x1x64x72xbf16> to vector<64x72xbf16>
    %c0_3 = arith.constant 0 : index
    %c0_4 = arith.constant 0 : index
    %c0_5 = arith.constant 0 : index
    %2 = vector.load %arg6[%c0_3, %c0_4, %c0_5] : memref<3x72x8xbf16, #tpu.memory_space<vmem>>, vector<1x72x8xbf16>
    %3 = vector.shape_cast %2 : vector<1x72x8xbf16> to vector<72x8xbf16>
    %cst = arith.constant dense<0.000000e+00> : vector<64x8xf32>
    %4 = tpu.matmul %1, %3, %cst {dimension_numbers = #tpu.dot_dimension_numbers<[1], [0], [0], [1], [0, 0, 1, 1], [], []>} : vector<64x72xbf16>, vector<72x8xbf16>, vector<64x8xf32> -> vector<64x8xf32>
    %c0_6 = arith.constant 0 : index
    %c0_7 = arith.constant 0 : index
    %c0_8 = arith.constant 0 : index
    %c0_9 = arith.constant 0 : index
    %5 = vector.load %arg4[%c0_6, %c0_7, %c0_8, %c0_9] : memref<1x1x64x72xbf16, #tpu.memory_space<vmem>>, vector<1x1x64x72xbf16>
    %6 = vector.shape_cast %5 : vector<1x1x64x72xbf16> to vector<64x72xbf16>
    %c1 = arith.constant 1 : index
    %c0_10 = arith.constant 0 : index
    %c0_11 = arith.constant 0 : index
    %7 = vector.load %arg6[%c1, %c0_10, %c0_11] : memref<3x72x8xbf16, #tpu.memory_space<vmem>>, vector<1x72x8xbf16>
    %8 = vector.shape_cast %7 : vector<1x72x8xbf16> to vector<72x8xbf16>
    %cst_12 = arith.constant dense<0.000000e+00> : vector<64x8xf32>
    %9 = tpu.matmul %6, %8, %cst_12 {dimension_numbers = #tpu.dot_dimension_numbers<[1], [0], [0], [1], [0, 0, 1, 1], [], []>} : vector<64x72xbf16>, vector<72x8xbf16>, vector<64x8xf32> -> vector<64x8xf32>
    %10 = arith.addf %4, %9 : vector<64x8xf32>
    %c0_13 = arith.constant 0 : index
    %c0_14 = arith.constant 0 : index
    %c0_15 = arith.constant 0 : index
    %c0_16 = arith.constant 0 : index
    %11 = vector.load %arg5[%c0_13, %c0_14, %c0_15, %c0_16] : memref<1x1x64x72xbf16, #tpu.memory_space<vmem>>, vector<1x1x64x72xbf16>
    %12 = vector.shape_cast %11 : vector<1x1x64x72xbf16> to vector<64x72xbf16>
    %c2 = arith.constant 2 : index
    %c0_17 = arith.constant 0 : index
    %c0_18 = arith.constant 0 : index
    %13 = vector.load %arg6[%c2, %c0_17, %c0_18] : memref<3x72x8xbf16, #tpu.memory_space<vmem>>, vector<1x72x8xbf16>
    %14 = vector.shape_cast %13 : vector<1x72x8xbf16> to vector<72x8xbf16>
    %cst_19 = arith.constant dense<0.000000e+00> : vector<64x8xf32>
    %15 = tpu.matmul %12, %14, %cst_19 {dimension_numbers = #tpu.dot_dimension_numbers<[1], [0], [0], [1], [0, 0, 1, 1], [], []>} : vector<64x72xbf16>, vector<72x8xbf16>, vector<64x8xf32> -> vector<64x8xf32>
    %16 = arith.addf %10, %15 : vector<64x8xf32>
    %c0_20 = arith.constant 0 : index
    %c0_21 = arith.constant 0 : index
    %17 = vector.load %arg7[%c0_20, %c0_21] : memref<1x8xf32, #tpu.memory_space<vmem>>, vector<1x8xf32>
    %18 = vector.broadcast %17 : vector<1x8xf32> to vector<64x8xf32>
    %19 = arith.addf %16, %18 : vector<64x8xf32>
    %cst_22 = arith.constant 0.000000e+00 : f32
    %20 = vector.broadcast %cst_22 : f32 to vector<64x8xf32>
    %21 = arith.maximumf %19, %20 : vector<64x8xf32>
    %22 = arith.truncf %21 : vector<64x8xf32> to vector<64x8xbf16>
    %c0_23 = arith.constant 0 : index
    %c0_24 = arith.constant 0 : index
    %c0_25 = arith.constant 0 : index
    %c0_26 = arith.constant 0 : index
    %23 = vector.load %arg8[%c0_23, %c0_24, %c0_25, %c0_26] : memref<1x1x64x8xbf16, #tpu.memory_space<vmem>>, vector<1x1x64x8xbf16>
    %24 = vector.shape_cast %23 : vector<1x1x64x8xbf16> to vector<64x8xbf16>
    %25 = vector.shape_cast %22 : vector<64x8xbf16> to vector<1x1x64x8xbf16>
    tpu.vector_store %arg8[%c0_23, %c0_24, %c0_25, %c0_26], %25 {strides = array<i32>} : memref<1x1x64x8xbf16, #tpu.memory_space<vmem>>, vector<1x1x64x8xbf16>,
    return
  }
  func.func @transform_0(%arg0: i32, %arg1: i32, %arg2: i32) -> (i32, i32, i32, i32) {
    %c1_i32 = arith.constant 1 : i32
    %0 = arith.muli %c1_i32, %arg1 : i32
    %c0_i32 = arith.constant 0 : i32
    %1 = arith.addi %0, %c0_i32 : i32
    %c0_i32_0 = arith.constant 0 : i32
    %c0_i32_1 = arith.constant 0 : i32
    return %arg0, %1, %arg2, %c0_i32_0 : i32, i32, i32, i32
  }
  func.func @transform_1(%arg0: i32, %arg1: i32, %arg2: i32) -> (i32, i32, i32, i32) {
    %c1_i32 = arith.constant 1 : i32
    %0 = arith.muli %c1_i32, %arg1 : i32
    %c1_i32_0 = arith.constant 1 : i32
    %1 = arith.addi %0, %c1_i32_0 : i32
    %c0_i32 = arith.constant 0 : i32
    %c0_i32_1 = arith.constant 0 : i32
    return %arg0, %1, %arg2, %c0_i32 : i32, i32, i32, i32
  }
  func.func @transform_2(%arg0: i32, %arg1: i32, %arg2: i32) -> (i32, i32, i32, i32) {
    %c1_i32 = arith.constant 1 : i32
    %0 = arith.muli %c1_i32, %arg1 : i32
    %c2_i32 = arith.constant 2 : i32
    %1 = arith.addi %0, %c2_i32 : i32
    %c0_i32 = arith.constant 0 : i32
    %c0_i32_0 = arith.constant 0 : i32
    return %arg0, %1, %arg2, %c0_i32 : i32, i32, i32, i32
  }
  func.func @transform_3(%arg0: i32, %arg1: i32, %arg2: i32) -> (i32, i32, i32) {
    %c0_i32 = arith.constant 0 : i32
    %c0_i32_0 = arith.constant 0 : i32
    %c0_i32_1 = arith.constant 0 : i32
    %c0_i32_2 = arith.constant 0 : i32
    return %c0_i32, %c0_i32_0, %c0_i32_1 : i32, i32, i32
  }
  func.func @transform_4(%arg0: i32, %arg1: i32, %arg2: i32) -> (i32, i32) {
    %c0_i32 = arith.constant 0 : i32
    %c0_i32_0 = arith.constant 0 : i32
    %c0_i32_1 = arith.constant 0 : i32
    return %c0_i32, %c0_i32_0 : i32, i32
  }
  func.func @transform_5(%arg0: i32, %arg1: i32, %arg2: i32) -> (i32, i32, i32, i32) {
    %c0_i32 = arith.constant 0 : i32
    %c0_i32_0 = arith.constant 0 : i32
    return %arg0, %arg1, %arg2, %c0_i32 : i32, i32, i32, i32
  }
}

module attributes {stable_mosaic.version = 11 : i64} {
  func.func @kernel(%arg0: i32, %arg1: i32, %arg2: i32, %arg3: memref<1x1x64x72xbf16, #tpu.memory_space<vmem>>, %arg4: memref<1x1x64x72xbf16, #tpu.memory_space<vmem>>, %arg5: memref<1x1x64x72xbf16, #tpu.memory_space<vmem>>, %arg6: memref<3x72x8xbf16, #tpu.memory_space<vmem>>, %arg7: memref<1x8xf32, #tpu.memory_space<vmem>>, %arg8: memref<1x1x64x8xbf16, #tpu.memory_space<vmem>>, %arg9: memref<1x1x64x8xbf16, #tpu.memory_space<vmem>>) attributes {dimension_semantics = [#tpu.dimension_semantics<parallel>, #tpu.dimension_semantics<parallel>, #tpu.dimension_semantics<parallel>], iteration_bounds = array<i64: 2, 8, 1>, scalar_prefetch = 0 : i64, scratch_operands = 0 : i64, tpu.core_type = #tpu.core_type<tc>, window_params = [{transform_indices = @transform_0, window_bounds = array<i64: 1, 1, 64, 72>}, {transform_indices = @transform_1, window_bounds = array<i64: 1, 1, 64, 72>}, {transform_indices = @transform_2, window_bounds = array<i64: 1, 1, 64, 72>}, {pipeline_mode = #tpu.pipeline_mode<synchronous>, transform_indices = @transform_3, window_bounds = array<i64: 3, 72, 8>}, {pipeline_mode = #tpu.pipeline_mode<synchronous>, transform_indices = @transform_4, window_bounds = array<i64: 1, 8>}, {transform_indices = @transform_5, window_bounds = array<i64: 1, 1, 64, 8>}, {transform_indices = @transform_6, window_bounds = array<i64: 1, 1, 64, 8>}]} {
    %c0 = arith.constant 0 : index
    %c0_0 = arith.constant 0 : index
    %c0_1 = arith.constant 0 : index
    %c0_2 = arith.constant 0 : index
    %0 = vector.load %arg3[%c0, %c0_0, %c0_1, %c0_2] : memref<1x1x64x72xbf16, #tpu.memory_space<vmem>>, vector<1x1x64x72xbf16>
    %1 = vector.shape_cast %0 : vector<1x1x64x72xbf16> to vector<64x72xbf16>
    %c0_3 = arith.constant 0 : index
    %c0_4 = arith.constant 0 : index
    %c0_5 = arith.constant 0 : index
    %2 = vector.load %arg6[%c0_3, %c0_4, %c0_5] : memref<3x72x8xbf16, #tpu.memory_space<vmem>>, vector<1x72x8xbf16>
    %3 = vector.shape_cast %2 : vector<1x72x8xbf16> to vector<72x8xbf16>
    %cst = arith.constant dense<0.000000e+00> : vector<64x8xf32>
    %4 = tpu.matmul %1, %3, %cst {dimension_numbers = #tpu.dot_dimension_numbers<[1], [0], [0], [1], [0, 0, 1, 1], [], []>} : vector<64x72xbf16>, vector<72x8xbf16>, vector<64x8xf32> -> vector<64x8xf32>
    %c0_6 = arith.constant 0 : index
    %c0_7 = arith.constant 0 : index
    %c0_8 = arith.constant 0 : index
    %c0_9 = arith.constant 0 : index
    %5 = vector.load %arg4[%c0_6, %c0_7, %c0_8, %c0_9] : memref<1x1x64x72xbf16, #tpu.memory_space<vmem>>, vector<1x1x64x72xbf16>
    %6 = vector.shape_cast %5 : vector<1x1x64x72xbf16> to vector<64x72xbf16>
    %c1 = arith.constant 1 : index
    %c0_10 = arith.constant 0 : index
    %c0_11 = arith.constant 0 : index
    %7 = vector.load %arg6[%c1, %c0_10, %c0_11] : memref<3x72x8xbf16, #tpu.memory_space<vmem>>, vector<1x72x8xbf16>
    %8 = vector.shape_cast %7 : vector<1x72x8xbf16> to vector<72x8xbf16>
    %cst_12 = arith.constant dense<0.000000e+00> : vector<64x8xf32>
    %9 = tpu.matmul %6, %8, %cst_12 {dimension_numbers = #tpu.dot_dimension_numbers<[1], [0], [0], [1], [0, 0, 1, 1], [], []>} : vector<64x72xbf16>, vector<72x8xbf16>, vector<64x8xf32> -> vector<64x8xf32>
    %10 = arith.addf %4, %9 : vector<64x8xf32>
    %c0_13 = arith.constant 0 : index
    %c0_14 = arith.constant 0 : index
    %c0_15 = arith.constant 0 : index
    %c0_16 = arith.constant 0 : index
    %11 = vector.load %arg5[%c0_13, %c0_14, %c0_15, %c0_16] : memref<1x1x64x72xbf16, #tpu.memory_space<vmem>>, vector<1x1x64x72xbf16>
    %12 = vector.shape_cast %11 : vector<1x1x64x72xbf16> to vector<64x72xbf16>
    %c2 = arith.constant 2 : index
    %c0_17 = arith.constant 0 : index
    %c0_18 = arith.constant 0 : index
    %13 = vector.load %arg6[%c2, %c0_17, %c0_18] : memref<3x72x8xbf16, #tpu.memory_space<vmem>>, vector<1x72x8xbf16>
    %14 = vector.shape_cast %13 : vector<1x72x8xbf16> to vector<72x8xbf16>
    %cst_19 = arith.constant dense<0.000000e+00> : vector<64x8xf32>
    %15 = tpu.matmul %12, %14, %cst_19 {dimension_numbers = #tpu.dot_dimension_numbers<[1], [0], [0], [1], [0, 0, 1, 1], [], []>} : vector<64x72xbf16>, vector<72x8xbf16>, vector<64x8xf32> -> vector<64x8xf32>
    %16 = arith.addf %10, %15 : vector<64x8xf32>
    %c0_20 = arith.constant 0 : index
    %c0_21 = arith.constant 0 : index
    %17 = vector.load %arg7[%c0_20, %c0_21] : memref<1x8xf32, #tpu.memory_space<vmem>>, vector<1x8xf32>
    %18 = vector.broadcast %17 : vector<1x8xf32> to vector<64x8xf32>
    %19 = arith.addf %16, %18 : vector<64x8xf32>
    %c0_22 = arith.constant 0 : index
    %c0_23 = arith.constant 0 : index
    %c0_24 = arith.constant 0 : index
    %c0_25 = arith.constant 0 : index
    %20 = vector.load %arg8[%c0_22, %c0_23, %c0_24, %c0_25] : memref<1x1x64x8xbf16, #tpu.memory_space<vmem>>, vector<1x1x64x8xbf16>
    %21 = vector.shape_cast %20 : vector<1x1x64x8xbf16> to vector<64x8xbf16>
    %22 = arith.extf %21 : vector<64x8xbf16> to vector<64x8xf32>
    %23 = arith.addf %19, %22 : vector<64x8xf32>
    %cst_26 = arith.constant 0.000000e+00 : f32
    %24 = vector.broadcast %cst_26 : f32 to vector<64x8xf32>
    %25 = arith.maximumf %23, %24 : vector<64x8xf32>
    %26 = arith.truncf %25 : vector<64x8xf32> to vector<64x8xbf16>
    %c0_27 = arith.constant 0 : index
    %c0_28 = arith.constant 0 : index
    %c0_29 = arith.constant 0 : index
    %c0_30 = arith.constant 0 : index
    %27 = vector.load %arg9[%c0_27, %c0_28, %c0_29, %c0_30] : memref<1x1x64x8xbf16, #tpu.memory_space<vmem>>, vector<1x1x64x8xbf16>
    %28 = vector.shape_cast %27 : vector<1x1x64x8xbf16> to vector<64x8xbf16>
    %29 = vector.shape_cast %26 : vector<64x8xbf16> to vector<1x1x64x8xbf16>
    tpu.vector_store %arg9[%c0_27, %c0_28, %c0_29, %c0_30], %29 {strides = array<i32>} : memref<1x1x64x8xbf16, #tpu.memory_space<vmem>>, vector<1x1x64x8xbf16>,
    return
  }
  func.func @transform_0(%arg0: i32, %arg1: i32, %arg2: i32) -> (i32, i32, i32, i32) {
    %c1_i32 = arith.constant 1 : i32
    %0 = arith.muli %c1_i32, %arg1 : i32
    %c0_i32 = arith.constant 0 : i32
    %1 = arith.addi %0, %c0_i32 : i32
    %c0_i32_0 = arith.constant 0 : i32
    %c0_i32_1 = arith.constant 0 : i32
    return %arg0, %1, %arg2, %c0_i32_0 : i32, i32, i32, i32
  }
  func.func @transform_1(%arg0: i32, %arg1: i32, %arg2: i32) -> (i32, i32, i32, i32) {
    %c1_i32 = arith.constant 1 : i32
    %0 = arith.muli %c1_i32, %arg1 : i32
    %c1_i32_0 = arith.constant 1 : i32
    %1 = arith.addi %0, %c1_i32_0 : i32
    %c0_i32 = arith.constant 0 : i32
    %c0_i32_1 = arith.constant 0 : i32
    return %arg0, %1, %arg2, %c0_i32 : i32, i32, i32, i32
  }
  func.func @transform_2(%arg0: i32, %arg1: i32, %arg2: i32) -> (i32, i32, i32, i32) {
    %c1_i32 = arith.constant 1 : i32
    %0 = arith.muli %c1_i32, %arg1 : i32
    %c2_i32 = arith.constant 2 : i32
    %1 = arith.addi %0, %c2_i32 : i32
    %c0_i32 = arith.constant 0 : i32
    %c0_i32_0 = arith.constant 0 : i32
    return %arg0, %1, %arg2, %c0_i32 : i32, i32, i32, i32
  }
  func.func @transform_3(%arg0: i32, %arg1: i32, %arg2: i32) -> (i32, i32, i32) {
    %c0_i32 = arith.constant 0 : i32
    %c0_i32_0 = arith.constant 0 : i32
    %c0_i32_1 = arith.constant 0 : i32
    %c0_i32_2 = arith.constant 0 : i32
    return %c0_i32, %c0_i32_0, %c0_i32_1 : i32, i32, i32
  }
  func.func @transform_4(%arg0: i32, %arg1: i32, %arg2: i32) -> (i32, i32) {
    %c0_i32 = arith.constant 0 : i32
    %c0_i32_0 = arith.constant 0 : i32
    %c0_i32_1 = arith.constant 0 : i32
    return %c0_i32, %c0_i32_0 : i32, i32
  }
  func.func @transform_5(%arg0: i32, %arg1: i32, %arg2: i32) -> (i32, i32, i32, i32) {
    %c0_i32 = arith.constant 0 : i32
    %c0_i32_0 = arith.constant 0 : i32
    return %arg0, %arg1, %arg2, %c0_i32 : i32, i32, i32, i32
  }
  func.func @transform_6(%arg0: i32, %arg1: i32, %arg2: i32) -> (i32, i32, i32, i32) {
    %c0_i32 = arith.constant 0 : i32
    %c0_i32_0 = arith.constant 0 : i32
    return %arg0, %arg1, %arg2, %c0_i32 : i32, i32, i32, i32
  }
}

module attributes {stable_mosaic.version = 11 : i64} {
  func.func @kernel(%arg0: i32, %arg1: i32, %arg2: i32, %arg3: memref<1x1x16x72xbf16, #tpu.memory_space<vmem>>, %arg4: memref<1x1x16x72xbf16, #tpu.memory_space<vmem>>, %arg5: memref<1x1x16x72xbf16, #tpu.memory_space<vmem>>, %arg6: memref<3x72x16xbf16, #tpu.memory_space<vmem>>, %arg7: memref<1x16xf32, #tpu.memory_space<vmem>>, %arg8: memref<1x1x16x16xbf16, #tpu.memory_space<vmem>>) attributes {dimension_semantics = [#tpu.dimension_semantics<parallel>, #tpu.dimension_semantics<parallel>, #tpu.dimension_semantics<parallel>], iteration_bounds = array<i64: 2, 4, 1>, scalar_prefetch = 0 : i64, scratch_operands = 0 : i64, tpu.core_type = #tpu.core_type<tc>, window_params = [{transform_indices = @transform_0, window_bounds = array<i64: 1, 1, 16, 72>}, {transform_indices = @transform_1, window_bounds = array<i64: 1, 1, 16, 72>}, {transform_indices = @transform_2, window_bounds = array<i64: 1, 1, 16, 72>}, {pipeline_mode = #tpu.pipeline_mode<synchronous>, transform_indices = @transform_3, window_bounds = array<i64: 3, 72, 16>}, {pipeline_mode = #tpu.pipeline_mode<synchronous>, transform_indices = @transform_4, window_bounds = array<i64: 1, 16>}, {transform_indices = @transform_5, window_bounds = array<i64: 1, 1, 16, 16>}]} {
    %c0 = arith.constant 0 : index
    %c0_0 = arith.constant 0 : index
    %c0_1 = arith.constant 0 : index
    %c0_2 = arith.constant 0 : index
    %0 = vector.load %arg3[%c0, %c0_0, %c0_1, %c0_2] : memref<1x1x16x72xbf16, #tpu.memory_space<vmem>>, vector<1x1x16x72xbf16>
    %1 = vector.shape_cast %0 : vector<1x1x16x72xbf16> to vector<16x72xbf16>
    %c0_3 = arith.constant 0 : index
    %c0_4 = arith.constant 0 : index
    %c0_5 = arith.constant 0 : index
    %2 = vector.load %arg6[%c0_3, %c0_4, %c0_5] : memref<3x72x16xbf16, #tpu.memory_space<vmem>>, vector<1x72x16xbf16>
    %3 = vector.shape_cast %2 : vector<1x72x16xbf16> to vector<72x16xbf16>
    %cst = arith.constant dense<0.000000e+00> : vector<16x16xf32>
    %4 = tpu.matmul %1, %3, %cst {dimension_numbers = #tpu.dot_dimension_numbers<[1], [0], [0], [1], [0, 0, 1, 1], [], []>} : vector<16x72xbf16>, vector<72x16xbf16>, vector<16x16xf32> -> vector<16x16xf32>
    %c0_6 = arith.constant 0 : index
    %c0_7 = arith.constant 0 : index
    %c0_8 = arith.constant 0 : index
    %c0_9 = arith.constant 0 : index
    %5 = vector.load %arg4[%c0_6, %c0_7, %c0_8, %c0_9] : memref<1x1x16x72xbf16, #tpu.memory_space<vmem>>, vector<1x1x16x72xbf16>
    %6 = vector.shape_cast %5 : vector<1x1x16x72xbf16> to vector<16x72xbf16>
    %c1 = arith.constant 1 : index
    %c0_10 = arith.constant 0 : index
    %c0_11 = arith.constant 0 : index
    %7 = vector.load %arg6[%c1, %c0_10, %c0_11] : memref<3x72x16xbf16, #tpu.memory_space<vmem>>, vector<1x72x16xbf16>
    %8 = vector.shape_cast %7 : vector<1x72x16xbf16> to vector<72x16xbf16>
    %cst_12 = arith.constant dense<0.000000e+00> : vector<16x16xf32>
    %9 = tpu.matmul %6, %8, %cst_12 {dimension_numbers = #tpu.dot_dimension_numbers<[1], [0], [0], [1], [0, 0, 1, 1], [], []>} : vector<16x72xbf16>, vector<72x16xbf16>, vector<16x16xf32> -> vector<16x16xf32>
    %10 = arith.addf %4, %9 : vector<16x16xf32>
    %c0_13 = arith.constant 0 : index
    %c0_14 = arith.constant 0 : index
    %c0_15 = arith.constant 0 : index
    %c0_16 = arith.constant 0 : index
    %11 = vector.load %arg5[%c0_13, %c0_14, %c0_15, %c0_16] : memref<1x1x16x72xbf16, #tpu.memory_space<vmem>>, vector<1x1x16x72xbf16>
    %12 = vector.shape_cast %11 : vector<1x1x16x72xbf16> to vector<16x72xbf16>
    %c2 = arith.constant 2 : index
    %c0_17 = arith.constant 0 : index
    %c0_18 = arith.constant 0 : index
    %13 = vector.load %arg6[%c2, %c0_17, %c0_18] : memref<3x72x16xbf16, #tpu.memory_space<vmem>>, vector<1x72x16xbf16>
    %14 = vector.shape_cast %13 : vector<1x72x16xbf16> to vector<72x16xbf16>
    %cst_19 = arith.constant dense<0.000000e+00> : vector<16x16xf32>
    %15 = tpu.matmul %12, %14, %cst_19 {dimension_numbers = #tpu.dot_dimension_numbers<[1], [0], [0], [1], [0, 0, 1, 1], [], []>} : vector<16x72xbf16>, vector<72x16xbf16>, vector<16x16xf32> -> vector<16x16xf32>
    %16 = arith.addf %10, %15 : vector<16x16xf32>
    %c0_20 = arith.constant 0 : index
    %c0_21 = arith.constant 0 : index
    %17 = vector.load %arg7[%c0_20, %c0_21] : memref<1x16xf32, #tpu.memory_space<vmem>>, vector<1x16xf32>
    %18 = vector.broadcast %17 : vector<1x16xf32> to vector<16x16xf32>
    %19 = arith.addf %16, %18 : vector<16x16xf32>
    %cst_22 = arith.constant 0.000000e+00 : f32
    %20 = vector.broadcast %cst_22 : f32 to vector<16x16xf32>
    %21 = arith.maximumf %19, %20 : vector<16x16xf32>
    %22 = arith.truncf %21 : vector<16x16xf32> to vector<16x16xbf16>
    %c0_23 = arith.constant 0 : index
    %c0_24 = arith.constant 0 : index
    %c0_25 = arith.constant 0 : index
    %c0_26 = arith.constant 0 : index
    %23 = vector.load %arg8[%c0_23, %c0_24, %c0_25, %c0_26] : memref<1x1x16x16xbf16, #tpu.memory_space<vmem>>, vector<1x1x16x16xbf16>
    %24 = vector.shape_cast %23 : vector<1x1x16x16xbf16> to vector<16x16xbf16>
    %25 = vector.shape_cast %22 : vector<16x16xbf16> to vector<1x1x16x16xbf16>
    tpu.vector_store %arg8[%c0_23, %c0_24, %c0_25, %c0_26], %25 {strides = array<i32>} : memref<1x1x16x16xbf16, #tpu.memory_space<vmem>>, vector<1x1x16x16xbf16>,
    return
  }
  func.func @transform_0(%arg0: i32, %arg1: i32, %arg2: i32) -> (i32, i32, i32, i32) {
    %c2_i32 = arith.constant 2 : i32
    %0 = arith.muli %c2_i32, %arg1 : i32
    %c0_i32 = arith.constant 0 : i32
    %1 = arith.addi %0, %c0_i32 : i32
    %c0_i32_0 = arith.constant 0 : i32
    %c0_i32_1 = arith.constant 0 : i32
    return %arg0, %1, %arg2, %c0_i32_0 : i32, i32, i32, i32
  }
  func.func @transform_1(%arg0: i32, %arg1: i32, %arg2: i32) -> (i32, i32, i32, i32) {
    %c2_i32 = arith.constant 2 : i32
    %0 = arith.muli %c2_i32, %arg1 : i32
    %c1_i32 = arith.constant 1 : i32
    %1 = arith.addi %0, %c1_i32 : i32
    %c0_i32 = arith.constant 0 : i32
    %c0_i32_0 = arith.constant 0 : i32
    return %arg0, %1, %arg2, %c0_i32 : i32, i32, i32, i32
  }
  func.func @transform_2(%arg0: i32, %arg1: i32, %arg2: i32) -> (i32, i32, i32, i32) {
    %c2_i32 = arith.constant 2 : i32
    %0 = arith.muli %c2_i32, %arg1 : i32
    %c2_i32_0 = arith.constant 2 : i32
    %1 = arith.addi %0, %c2_i32_0 : i32
    %c0_i32 = arith.constant 0 : i32
    %c0_i32_1 = arith.constant 0 : i32
    return %arg0, %1, %arg2, %c0_i32 : i32, i32, i32, i32
  }
  func.func @transform_3(%arg0: i32, %arg1: i32, %arg2: i32) -> (i32, i32, i32) {
    %c0_i32 = arith.constant 0 : i32
    %c0_i32_0 = arith.constant 0 : i32
    %c0_i32_1 = arith.constant 0 : i32
    %c0_i32_2 = arith.constant 0 : i32
    return %c0_i32, %c0_i32_0, %c0_i32_1 : i32, i32, i32
  }
  func.func @transform_4(%arg0: i32, %arg1: i32, %arg2: i32) -> (i32, i32) {
    %c0_i32 = arith.constant 0 : i32
    %c0_i32_0 = arith.constant 0 : i32
    %c0_i32_1 = arith.constant 0 : i32
    return %c0_i32, %c0_i32_0 : i32, i32
  }
  func.func @transform_5(%arg0: i32, %arg1: i32, %arg2: i32) -> (i32, i32, i32, i32) {
    %c0_i32 = arith.constant 0 : i32
    %c0_i32_0 = arith.constant 0 : i32
    return %arg0, %arg1, %arg2, %c0_i32 : i32, i32, i32, i32
  }
}

module attributes {stable_mosaic.version = 11 : i64} {
  func.func @kernel(%arg0: i32, %arg1: i32, %arg2: i32, %arg3: memref<1x1x16x144xbf16, #tpu.memory_space<vmem>>, %arg4: memref<1x1x16x144xbf16, #tpu.memory_space<vmem>>, %arg5: memref<1x1x16x144xbf16, #tpu.memory_space<vmem>>, %arg6: memref<3x144x16xbf16, #tpu.memory_space<vmem>>, %arg7: memref<1x16xf32, #tpu.memory_space<vmem>>, %arg8: memref<1x1x16x8xbf16, #tpu.memory_space<vmem>>, %arg9: memref<1x8x16xbf16, #tpu.memory_space<vmem>>, %arg10: memref<1x16xf32, #tpu.memory_space<vmem>>, %arg11: memref<1x1x16x16xbf16, #tpu.memory_space<vmem>>) attributes {dimension_semantics = [#tpu.dimension_semantics<parallel>, #tpu.dimension_semantics<parallel>, #tpu.dimension_semantics<parallel>], iteration_bounds = array<i64: 2, 4, 1>, scalar_prefetch = 0 : i64, scratch_operands = 0 : i64, tpu.core_type = #tpu.core_type<tc>, window_params = [{transform_indices = @transform_0, window_bounds = array<i64: 1, 1, 16, 144>}, {transform_indices = @transform_1, window_bounds = array<i64: 1, 1, 16, 144>}, {transform_indices = @transform_2, window_bounds = array<i64: 1, 1, 16, 144>}, {pipeline_mode = #tpu.pipeline_mode<synchronous>, transform_indices = @transform_3, window_bounds = array<i64: 3, 144, 16>}, {pipeline_mode = #tpu.pipeline_mode<synchronous>, transform_indices = @transform_4, window_bounds = array<i64: 1, 16>}, {transform_indices = @transform_5, window_bounds = array<i64: 1, 1, 16, 8>}, {pipeline_mode = #tpu.pipeline_mode<synchronous>, transform_indices = @transform_6, window_bounds = array<i64: 1, 8, 16>}, {pipeline_mode = #tpu.pipeline_mode<synchronous>, transform_indices = @transform_7, window_bounds = array<i64: 1, 16>}, {transform_indices = @transform_8, window_bounds = array<i64: 1, 1, 16, 16>}]} {
    %c0 = arith.constant 0 : index
    %c0_0 = arith.constant 0 : index
    %c0_1 = arith.constant 0 : index
    %c0_2 = arith.constant 0 : index
    %0 = vector.load %arg3[%c0, %c0_0, %c0_1, %c0_2] : memref<1x1x16x144xbf16, #tpu.memory_space<vmem>>, vector<1x1x16x144xbf16>
    %1 = vector.shape_cast %0 : vector<1x1x16x144xbf16> to vector<16x144xbf16>
    %c0_3 = arith.constant 0 : index
    %c0_4 = arith.constant 0 : index
    %c0_5 = arith.constant 0 : index
    %2 = vector.load %arg6[%c0_3, %c0_4, %c0_5] : memref<3x144x16xbf16, #tpu.memory_space<vmem>>, vector<1x144x16xbf16>
    %3 = vector.shape_cast %2 : vector<1x144x16xbf16> to vector<144x16xbf16>
    %cst = arith.constant dense<0.000000e+00> : vector<16x16xf32>
    %4 = tpu.matmul %1, %3, %cst {dimension_numbers = #tpu.dot_dimension_numbers<[1], [0], [0], [1], [0, 0, 1, 1], [], []>} : vector<16x144xbf16>, vector<144x16xbf16>, vector<16x16xf32> -> vector<16x16xf32>
    %c0_6 = arith.constant 0 : index
    %c0_7 = arith.constant 0 : index
    %c0_8 = arith.constant 0 : index
    %c0_9 = arith.constant 0 : index
    %5 = vector.load %arg4[%c0_6, %c0_7, %c0_8, %c0_9] : memref<1x1x16x144xbf16, #tpu.memory_space<vmem>>, vector<1x1x16x144xbf16>
    %6 = vector.shape_cast %5 : vector<1x1x16x144xbf16> to vector<16x144xbf16>
    %c1 = arith.constant 1 : index
    %c0_10 = arith.constant 0 : index
    %c0_11 = arith.constant 0 : index
    %7 = vector.load %arg6[%c1, %c0_10, %c0_11] : memref<3x144x16xbf16, #tpu.memory_space<vmem>>, vector<1x144x16xbf16>
    %8 = vector.shape_cast %7 : vector<1x144x16xbf16> to vector<144x16xbf16>
    %cst_12 = arith.constant dense<0.000000e+00> : vector<16x16xf32>
    %9 = tpu.matmul %6, %8, %cst_12 {dimension_numbers = #tpu.dot_dimension_numbers<[1], [0], [0], [1], [0, 0, 1, 1], [], []>} : vector<16x144xbf16>, vector<144x16xbf16>, vector<16x16xf32> -> vector<16x16xf32>
    %10 = arith.addf %4, %9 : vector<16x16xf32>
    %c0_13 = arith.constant 0 : index
    %c0_14 = arith.constant 0 : index
    %c0_15 = arith.constant 0 : index
    %c0_16 = arith.constant 0 : index
    %11 = vector.load %arg5[%c0_13, %c0_14, %c0_15, %c0_16] : memref<1x1x16x144xbf16, #tpu.memory_space<vmem>>, vector<1x1x16x144xbf16>
    %12 = vector.shape_cast %11 : vector<1x1x16x144xbf16> to vector<16x144xbf16>
    %c2 = arith.constant 2 : index
    %c0_17 = arith.constant 0 : index
    %c0_18 = arith.constant 0 : index
    %13 = vector.load %arg6[%c2, %c0_17, %c0_18] : memref<3x144x16xbf16, #tpu.memory_space<vmem>>, vector<1x144x16xbf16>
    %14 = vector.shape_cast %13 : vector<1x144x16xbf16> to vector<144x16xbf16>
    %cst_19 = arith.constant dense<0.000000e+00> : vector<16x16xf32>
    %15 = tpu.matmul %12, %14, %cst_19 {dimension_numbers = #tpu.dot_dimension_numbers<[1], [0], [0], [1], [0, 0, 1, 1], [], []>} : vector<16x144xbf16>, vector<144x16xbf16>, vector<16x16xf32> -> vector<16x16xf32>
    %16 = arith.addf %10, %15 : vector<16x16xf32>
    %c0_20 = arith.constant 0 : index
    %c0_21 = arith.constant 0 : index
    %17 = vector.load %arg7[%c0_20, %c0_21] : memref<1x16xf32, #tpu.memory_space<vmem>>, vector<1x16xf32>
    %18 = vector.broadcast %17 : vector<1x16xf32> to vector<16x16xf32>
    %19 = arith.addf %16, %18 : vector<16x16xf32>
    %c0_22 = arith.constant 0 : index
    %c0_23 = arith.constant 0 : index
    %c0_24 = arith.constant 0 : index
    %c0_25 = arith.constant 0 : index
    %20 = vector.load %arg8[%c0_22, %c0_23, %c0_24, %c0_25] : memref<1x1x16x8xbf16, #tpu.memory_space<vmem>>, vector<1x1x16x8xbf16>
    %21 = vector.shape_cast %20 : vector<1x1x16x8xbf16> to vector<16x8xbf16>
    %c0_26 = arith.constant 0 : index
    %c0_27 = arith.constant 0 : index
    %c0_28 = arith.constant 0 : index
    %22 = vector.load %arg9[%c0_26, %c0_27, %c0_28] : memref<1x8x16xbf16, #tpu.memory_space<vmem>>, vector<1x8x16xbf16>
    %23 = vector.shape_cast %22 : vector<1x8x16xbf16> to vector<8x16xbf16>
    %cst_29 = arith.constant dense<0.000000e+00> : vector<16x16xf32>
    %24 = tpu.matmul %21, %23, %cst_29 {dimension_numbers = #tpu.dot_dimension_numbers<[1], [0], [0], [1], [0, 0, 1, 1], [], []>} : vector<16x8xbf16>, vector<8x16xbf16>, vector<16x16xf32> -> vector<16x16xf32>
    %c0_30 = arith.constant 0 : index
    %c0_31 = arith.constant 0 : index
    %25 = vector.load %arg10[%c0_30, %c0_31] : memref<1x16xf32, #tpu.memory_space<vmem>>, vector<1x16xf32>
    %26 = vector.broadcast %25 : vector<1x16xf32> to vector<16x16xf32>
    %27 = arith.addf %24, %26 : vector<16x16xf32>
    %28 = arith.addf %19, %27 : vector<16x16xf32>
    %cst_32 = arith.constant 0.000000e+00 : f32
    %29 = vector.broadcast %cst_32 : f32 to vector<16x16xf32>
    %30 = arith.maximumf %28, %29 : vector<16x16xf32>
    %31 = arith.truncf %30 : vector<16x16xf32> to vector<16x16xbf16>
    %c0_33 = arith.constant 0 : index
    %c0_34 = arith.constant 0 : index
    %c0_35 = arith.constant 0 : index
    %c0_36 = arith.constant 0 : index
    %32 = vector.load %arg11[%c0_33, %c0_34, %c0_35, %c0_36] : memref<1x1x16x16xbf16, #tpu.memory_space<vmem>>, vector<1x1x16x16xbf16>
    %33 = vector.shape_cast %32 : vector<1x1x16x16xbf16> to vector<16x16xbf16>
    %34 = vector.shape_cast %31 : vector<16x16xbf16> to vector<1x1x16x16xbf16>
    tpu.vector_store %arg11[%c0_33, %c0_34, %c0_35, %c0_36], %34 {strides = array<i32>} : memref<1x1x16x16xbf16, #tpu.memory_space<vmem>>, vector<1x1x16x16xbf16>,
    return
  }
  func.func @transform_0(%arg0: i32, %arg1: i32, %arg2: i32) -> (i32, i32, i32, i32) {
    %c1_i32 = arith.constant 1 : i32
    %0 = arith.muli %c1_i32, %arg1 : i32
    %c0_i32 = arith.constant 0 : i32
    %1 = arith.addi %0, %c0_i32 : i32
    %c0_i32_0 = arith.constant 0 : i32
    %c0_i32_1 = arith.constant 0 : i32
    return %arg0, %1, %arg2, %c0_i32_0 : i32, i32, i32, i32
  }
  func.func @transform_1(%arg0: i32, %arg1: i32, %arg2: i32) -> (i32, i32, i32, i32) {
    %c1_i32 = arith.constant 1 : i32
    %0 = arith.muli %c1_i32, %arg1 : i32
    %c1_i32_0 = arith.constant 1 : i32
    %1 = arith.addi %0, %c1_i32_0 : i32
    %c0_i32 = arith.constant 0 : i32
    %c0_i32_1 = arith.constant 0 : i32
    return %arg0, %1, %arg2, %c0_i32 : i32, i32, i32, i32
  }
  func.func @transform_2(%arg0: i32, %arg1: i32, %arg2: i32) -> (i32, i32, i32, i32) {
    %c1_i32 = arith.constant 1 : i32
    %0 = arith.muli %c1_i32, %arg1 : i32
    %c2_i32 = arith.constant 2 : i32
    %1 = arith.addi %0, %c2_i32 : i32
    %c0_i32 = arith.constant 0 : i32
    %c0_i32_0 = arith.constant 0 : i32
    return %arg0, %1, %arg2, %c0_i32 : i32, i32, i32, i32
  }
  func.func @transform_3(%arg0: i32, %arg1: i32, %arg2: i32) -> (i32, i32, i32) {
    %c0_i32 = arith.constant 0 : i32
    %c0_i32_0 = arith.constant 0 : i32
    %c0_i32_1 = arith.constant 0 : i32
    %c0_i32_2 = arith.constant 0 : i32
    return %c0_i32, %c0_i32_0, %c0_i32_1 : i32, i32, i32
  }
  func.func @transform_4(%arg0: i32, %arg1: i32, %arg2: i32) -> (i32, i32) {
    %c0_i32 = arith.constant 0 : i32
    %c0_i32_0 = arith.constant 0 : i32
    %c0_i32_1 = arith.constant 0 : i32
    return %c0_i32, %c0_i32_0 : i32, i32
  }
  func.func @transform_5(%arg0: i32, %arg1: i32, %arg2: i32) -> (i32, i32, i32, i32) {
    %c0_i32 = arith.constant 0 : i32
    %c0_i32_0 = arith.constant 0 : i32
    return %arg0, %arg1, %arg2, %c0_i32 : i32, i32, i32, i32
  }
  func.func @transform_6(%arg0: i32, %arg1: i32, %arg2: i32) -> (i32, i32, i32) {
    %c0_i32 = arith.constant 0 : i32
    %c0_i32_0 = arith.constant 0 : i32
    %c0_i32_1 = arith.constant 0 : i32
    %c0_i32_2 = arith.constant 0 : i32
    return %c0_i32, %c0_i32_0, %c0_i32_1 : i32, i32, i32
  }
  func.func @transform_7(%arg0: i32, %arg1: i32, %arg2: i32) -> (i32, i32) {
    %c0_i32 = arith.constant 0 : i32
    %c0_i32_0 = arith.constant 0 : i32
    %c0_i32_1 = arith.constant 0 : i32
    return %c0_i32, %c0_i32_0 : i32, i32
  }
  func.func @transform_8(%arg0: i32, %arg1: i32, %arg2: i32) -> (i32, i32, i32, i32) {
    %c0_i32 = arith.constant 0 : i32
    %c0_i32_0 = arith.constant 0 : i32
    return %arg0, %arg1, %arg2, %c0_i32 : i32, i32, i32, i32
  }
}

module attributes {stable_mosaic.version = 11 : i64} {
  func.func @kernel(%arg0: i32, %arg1: i32, %arg2: i32, %arg3: memref<1x1x8x144xbf16, #tpu.memory_space<vmem>>, %arg4: memref<1x1x8x144xbf16, #tpu.memory_space<vmem>>, %arg5: memref<1x1x8x144xbf16, #tpu.memory_space<vmem>>, %arg6: memref<3x144x32xbf16, #tpu.memory_space<vmem>>, %arg7: memref<1x32xf32, #tpu.memory_space<vmem>>, %arg8: memref<1x1x8x32xbf16, #tpu.memory_space<vmem>>) attributes {dimension_semantics = [#tpu.dimension_semantics<parallel>, #tpu.dimension_semantics<parallel>, #tpu.dimension_semantics<parallel>], iteration_bounds = array<i64: 2, 2, 1>, scalar_prefetch = 0 : i64, scratch_operands = 0 : i64, tpu.core_type = #tpu.core_type<tc>, window_params = [{transform_indices = @transform_0, window_bounds = array<i64: 1, 1, 8, 144>}, {transform_indices = @transform_1, window_bounds = array<i64: 1, 1, 8, 144>}, {transform_indices = @transform_2, window_bounds = array<i64: 1, 1, 8, 144>}, {pipeline_mode = #tpu.pipeline_mode<synchronous>, transform_indices = @transform_3, window_bounds = array<i64: 3, 144, 32>}, {pipeline_mode = #tpu.pipeline_mode<synchronous>, transform_indices = @transform_4, window_bounds = array<i64: 1, 32>}, {transform_indices = @transform_5, window_bounds = array<i64: 1, 1, 8, 32>}]} {
    %c0 = arith.constant 0 : index
    %c0_0 = arith.constant 0 : index
    %c0_1 = arith.constant 0 : index
    %c0_2 = arith.constant 0 : index
    %0 = vector.load %arg3[%c0, %c0_0, %c0_1, %c0_2] : memref<1x1x8x144xbf16, #tpu.memory_space<vmem>>, vector<1x1x8x144xbf16>
    %1 = vector.shape_cast %0 : vector<1x1x8x144xbf16> to vector<8x144xbf16>
    %c0_3 = arith.constant 0 : index
    %c0_4 = arith.constant 0 : index
    %c0_5 = arith.constant 0 : index
    %2 = vector.load %arg6[%c0_3, %c0_4, %c0_5] : memref<3x144x32xbf16, #tpu.memory_space<vmem>>, vector<1x144x32xbf16>
    %3 = vector.shape_cast %2 : vector<1x144x32xbf16> to vector<144x32xbf16>
    %cst = arith.constant dense<0.000000e+00> : vector<8x32xf32>
    %4 = tpu.matmul %1, %3, %cst {dimension_numbers = #tpu.dot_dimension_numbers<[1], [0], [0], [1], [0, 0, 1, 1], [], []>} : vector<8x144xbf16>, vector<144x32xbf16>, vector<8x32xf32> -> vector<8x32xf32>
    %c0_6 = arith.constant 0 : index
    %c0_7 = arith.constant 0 : index
    %c0_8 = arith.constant 0 : index
    %c0_9 = arith.constant 0 : index
    %5 = vector.load %arg4[%c0_6, %c0_7, %c0_8, %c0_9] : memref<1x1x8x144xbf16, #tpu.memory_space<vmem>>, vector<1x1x8x144xbf16>
    %6 = vector.shape_cast %5 : vector<1x1x8x144xbf16> to vector<8x144xbf16>
    %c1 = arith.constant 1 : index
    %c0_10 = arith.constant 0 : index
    %c0_11 = arith.constant 0 : index
    %7 = vector.load %arg6[%c1, %c0_10, %c0_11] : memref<3x144x32xbf16, #tpu.memory_space<vmem>>, vector<1x144x32xbf16>
    %8 = vector.shape_cast %7 : vector<1x144x32xbf16> to vector<144x32xbf16>
    %cst_12 = arith.constant dense<0.000000e+00> : vector<8x32xf32>
    %9 = tpu.matmul %6, %8, %cst_12 {dimension_numbers = #tpu.dot_dimension_numbers<[1], [0], [0], [1], [0, 0, 1, 1], [], []>} : vector<8x144xbf16>, vector<144x32xbf16>, vector<8x32xf32> -> vector<8x32xf32>
    %10 = arith.addf %4, %9 : vector<8x32xf32>
    %c0_13 = arith.constant 0 : index
    %c0_14 = arith.constant 0 : index
    %c0_15 = arith.constant 0 : index
    %c0_16 = arith.constant 0 : index
    %11 = vector.load %arg5[%c0_13, %c0_14, %c0_15, %c0_16] : memref<1x1x8x144xbf16, #tpu.memory_space<vmem>>, vector<1x1x8x144xbf16>
    %12 = vector.shape_cast %11 : vector<1x1x8x144xbf16> to vector<8x144xbf16>
    %c2 = arith.constant 2 : index
    %c0_17 = arith.constant 0 : index
    %c0_18 = arith.constant 0 : index
    %13 = vector.load %arg6[%c2, %c0_17, %c0_18] : memref<3x144x32xbf16, #tpu.memory_space<vmem>>, vector<1x144x32xbf16>
    %14 = vector.shape_cast %13 : vector<1x144x32xbf16> to vector<144x32xbf16>
    %cst_19 = arith.constant dense<0.000000e+00> : vector<8x32xf32>
    %15 = tpu.matmul %12, %14, %cst_19 {dimension_numbers = #tpu.dot_dimension_numbers<[1], [0], [0], [1], [0, 0, 1, 1], [], []>} : vector<8x144xbf16>, vector<144x32xbf16>, vector<8x32xf32> -> vector<8x32xf32>
    %16 = arith.addf %10, %15 : vector<8x32xf32>
    %c0_20 = arith.constant 0 : index
    %c0_21 = arith.constant 0 : index
    %17 = vector.load %arg7[%c0_20, %c0_21] : memref<1x32xf32, #tpu.memory_space<vmem>>, vector<1x32xf32>
    %18 = vector.broadcast %17 : vector<1x32xf32> to vector<8x32xf32>
    %19 = arith.addf %16, %18 : vector<8x32xf32>
    %cst_22 = arith.constant 0.000000e+00 : f32
    %20 = vector.broadcast %cst_22 : f32 to vector<8x32xf32>
    %21 = arith.maximumf %19, %20 : vector<8x32xf32>
    %22 = arith.truncf %21 : vector<8x32xf32> to vector<8x32xbf16>
    %c0_23 = arith.constant 0 : index
    %c0_24 = arith.constant 0 : index
    %c0_25 = arith.constant 0 : index
    %c0_26 = arith.constant 0 : index
    %23 = vector.load %arg8[%c0_23, %c0_24, %c0_25, %c0_26] : memref<1x1x8x32xbf16, #tpu.memory_space<vmem>>, vector<1x1x8x32xbf16>
    %24 = vector.shape_cast %23 : vector<1x1x8x32xbf16> to vector<8x32xbf16>
    %25 = vector.shape_cast %22 : vector<8x32xbf16> to vector<1x1x8x32xbf16>
    tpu.vector_store %arg8[%c0_23, %c0_24, %c0_25, %c0_26], %25 {strides = array<i32>} : memref<1x1x8x32xbf16, #tpu.memory_space<vmem>>, vector<1x1x8x32xbf16>,
    return
  }
  func.func @transform_0(%arg0: i32, %arg1: i32, %arg2: i32) -> (i32, i32, i32, i32) {
    %c2_i32 = arith.constant 2 : i32
    %0 = arith.muli %c2_i32, %arg1 : i32
    %c0_i32 = arith.constant 0 : i32
    %1 = arith.addi %0, %c0_i32 : i32
    %c0_i32_0 = arith.constant 0 : i32
    %c0_i32_1 = arith.constant 0 : i32
    return %arg0, %1, %arg2, %c0_i32_0 : i32, i32, i32, i32
  }
  func.func @transform_1(%arg0: i32, %arg1: i32, %arg2: i32) -> (i32, i32, i32, i32) {
    %c2_i32 = arith.constant 2 : i32
    %0 = arith.muli %c2_i32, %arg1 : i32
    %c1_i32 = arith.constant 1 : i32
    %1 = arith.addi %0, %c1_i32 : i32
    %c0_i32 = arith.constant 0 : i32
    %c0_i32_0 = arith.constant 0 : i32
    return %arg0, %1, %arg2, %c0_i32 : i32, i32, i32, i32
  }
  func.func @transform_2(%arg0: i32, %arg1: i32, %arg2: i32) -> (i32, i32, i32, i32) {
    %c2_i32 = arith.constant 2 : i32
    %0 = arith.muli %c2_i32, %arg1 : i32
    %c2_i32_0 = arith.constant 2 : i32
    %1 = arith.addi %0, %c2_i32_0 : i32
    %c0_i32 = arith.constant 0 : i32
    %c0_i32_1 = arith.constant 0 : i32
    return %arg0, %1, %arg2, %c0_i32 : i32, i32, i32, i32
  }
  func.func @transform_3(%arg0: i32, %arg1: i32, %arg2: i32) -> (i32, i32, i32) {
    %c0_i32 = arith.constant 0 : i32
    %c0_i32_0 = arith.constant 0 : i32
    %c0_i32_1 = arith.constant 0 : i32
    %c0_i32_2 = arith.constant 0 : i32
    return %c0_i32, %c0_i32_0, %c0_i32_1 : i32, i32, i32
  }
  func.func @transform_4(%arg0: i32, %arg1: i32, %arg2: i32) -> (i32, i32) {
    %c0_i32 = arith.constant 0 : i32
    %c0_i32_0 = arith.constant 0 : i32
    %c0_i32_1 = arith.constant 0 : i32
    return %c0_i32, %c0_i32_0 : i32, i32
  }
  func.func @transform_5(%arg0: i32, %arg1: i32, %arg2: i32) -> (i32, i32, i32, i32) {
    %c0_i32 = arith.constant 0 : i32
    %c0_i32_0 = arith.constant 0 : i32
    return %arg0, %arg1, %arg2, %c0_i32 : i32, i32, i32, i32
  }
}

module attributes {stable_mosaic.version = 11 : i64} {
  func.func @kernel(%arg0: i32, %arg1: i32, %arg2: i32, %arg3: memref<1x1x8x288xbf16, #tpu.memory_space<vmem>>, %arg4: memref<1x1x8x288xbf16, #tpu.memory_space<vmem>>, %arg5: memref<1x1x8x288xbf16, #tpu.memory_space<vmem>>, %arg6: memref<3x288x32xbf16, #tpu.memory_space<vmem>>, %arg7: memref<1x32xf32, #tpu.memory_space<vmem>>, %arg8: memref<1x1x8x16xbf16, #tpu.memory_space<vmem>>, %arg9: memref<1x16x32xbf16, #tpu.memory_space<vmem>>, %arg10: memref<1x32xf32, #tpu.memory_space<vmem>>, %arg11: memref<1x1x8x32xbf16, #tpu.memory_space<vmem>>) attributes {dimension_semantics = [#tpu.dimension_semantics<parallel>, #tpu.dimension_semantics<parallel>, #tpu.dimension_semantics<parallel>], iteration_bounds = array<i64: 2, 2, 1>, scalar_prefetch = 0 : i64, scratch_operands = 0 : i64, tpu.core_type = #tpu.core_type<tc>, window_params = [{transform_indices = @transform_0, window_bounds = array<i64: 1, 1, 8, 288>}, {transform_indices = @transform_1, window_bounds = array<i64: 1, 1, 8, 288>}, {transform_indices = @transform_2, window_bounds = array<i64: 1, 1, 8, 288>}, {pipeline_mode = #tpu.pipeline_mode<synchronous>, transform_indices = @transform_3, window_bounds = array<i64: 3, 288, 32>}, {pipeline_mode = #tpu.pipeline_mode<synchronous>, transform_indices = @transform_4, window_bounds = array<i64: 1, 32>}, {transform_indices = @transform_5, window_bounds = array<i64: 1, 1, 8, 16>}, {pipeline_mode = #tpu.pipeline_mode<synchronous>, transform_indices = @transform_6, window_bounds = array<i64: 1, 16, 32>}, {pipeline_mode = #tpu.pipeline_mode<synchronous>, transform_indices = @transform_7, window_bounds = array<i64: 1, 32>}, {transform_indices = @transform_8, window_bounds = array<i64: 1, 1, 8, 32>}]} {
    %c0 = arith.constant 0 : index
    %c0_0 = arith.constant 0 : index
    %c0_1 = arith.constant 0 : index
    %c0_2 = arith.constant 0 : index
    %0 = vector.load %arg3[%c0, %c0_0, %c0_1, %c0_2] : memref<1x1x8x288xbf16, #tpu.memory_space<vmem>>, vector<1x1x8x288xbf16>
    %1 = vector.shape_cast %0 : vector<1x1x8x288xbf16> to vector<8x288xbf16>
    %c0_3 = arith.constant 0 : index
    %c0_4 = arith.constant 0 : index
    %c0_5 = arith.constant 0 : index
    %2 = vector.load %arg6[%c0_3, %c0_4, %c0_5] : memref<3x288x32xbf16, #tpu.memory_space<vmem>>, vector<1x288x32xbf16>
    %3 = vector.shape_cast %2 : vector<1x288x32xbf16> to vector<288x32xbf16>
    %cst = arith.constant dense<0.000000e+00> : vector<8x32xf32>
    %4 = tpu.matmul %1, %3, %cst {dimension_numbers = #tpu.dot_dimension_numbers<[1], [0], [0], [1], [0, 0, 1, 1], [], []>} : vector<8x288xbf16>, vector<288x32xbf16>, vector<8x32xf32> -> vector<8x32xf32>
    %c0_6 = arith.constant 0 : index
    %c0_7 = arith.constant 0 : index
    %c0_8 = arith.constant 0 : index
    %c0_9 = arith.constant 0 : index
    %5 = vector.load %arg4[%c0_6, %c0_7, %c0_8, %c0_9] : memref<1x1x8x288xbf16, #tpu.memory_space<vmem>>, vector<1x1x8x288xbf16>
    %6 = vector.shape_cast %5 : vector<1x1x8x288xbf16> to vector<8x288xbf16>
    %c1 = arith.constant 1 : index
    %c0_10 = arith.constant 0 : index
    %c0_11 = arith.constant 0 : index
    %7 = vector.load %arg6[%c1, %c0_10, %c0_11] : memref<3x288x32xbf16, #tpu.memory_space<vmem>>, vector<1x288x32xbf16>
    %8 = vector.shape_cast %7 : vector<1x288x32xbf16> to vector<288x32xbf16>
    %cst_12 = arith.constant dense<0.000000e+00> : vector<8x32xf32>
    %9 = tpu.matmul %6, %8, %cst_12 {dimension_numbers = #tpu.dot_dimension_numbers<[1], [0], [0], [1], [0, 0, 1, 1], [], []>} : vector<8x288xbf16>, vector<288x32xbf16>, vector<8x32xf32> -> vector<8x32xf32>
    %10 = arith.addf %4, %9 : vector<8x32xf32>
    %c0_13 = arith.constant 0 : index
    %c0_14 = arith.constant 0 : index
    %c0_15 = arith.constant 0 : index
    %c0_16 = arith.constant 0 : index
    %11 = vector.load %arg5[%c0_13, %c0_14, %c0_15, %c0_16] : memref<1x1x8x288xbf16, #tpu.memory_space<vmem>>, vector<1x1x8x288xbf16>
    %12 = vector.shape_cast %11 : vector<1x1x8x288xbf16> to vector<8x288xbf16>
    %c2 = arith.constant 2 : index
    %c0_17 = arith.constant 0 : index
    %c0_18 = arith.constant 0 : index
    %13 = vector.load %arg6[%c2, %c0_17, %c0_18] : memref<3x288x32xbf16, #tpu.memory_space<vmem>>, vector<1x288x32xbf16>
    %14 = vector.shape_cast %13 : vector<1x288x32xbf16> to vector<288x32xbf16>
    %cst_19 = arith.constant dense<0.000000e+00> : vector<8x32xf32>
    %15 = tpu.matmul %12, %14, %cst_19 {dimension_numbers = #tpu.dot_dimension_numbers<[1], [0], [0], [1], [0, 0, 1, 1], [], []>} : vector<8x288xbf16>, vector<288x32xbf16>, vector<8x32xf32> -> vector<8x32xf32>
    %16 = arith.addf %10, %15 : vector<8x32xf32>
    %c0_20 = arith.constant 0 : index
    %c0_21 = arith.constant 0 : index
    %17 = vector.load %arg7[%c0_20, %c0_21] : memref<1x32xf32, #tpu.memory_space<vmem>>, vector<1x32xf32>
    %18 = vector.broadcast %17 : vector<1x32xf32> to vector<8x32xf32>
    %19 = arith.addf %16, %18 : vector<8x32xf32>
    %c0_22 = arith.constant 0 : index
    %c0_23 = arith.constant 0 : index
    %c0_24 = arith.constant 0 : index
    %c0_25 = arith.constant 0 : index
    %20 = vector.load %arg8[%c0_22, %c0_23, %c0_24, %c0_25] : memref<1x1x8x16xbf16, #tpu.memory_space<vmem>>, vector<1x1x8x16xbf16>
    %21 = vector.shape_cast %20 : vector<1x1x8x16xbf16> to vector<8x16xbf16>
    %c0_26 = arith.constant 0 : index
    %c0_27 = arith.constant 0 : index
    %c0_28 = arith.constant 0 : index
    %22 = vector.load %arg9[%c0_26, %c0_27, %c0_28] : memref<1x16x32xbf16, #tpu.memory_space<vmem>>, vector<1x16x32xbf16>
    %23 = vector.shape_cast %22 : vector<1x16x32xbf16> to vector<16x32xbf16>
    %cst_29 = arith.constant dense<0.000000e+00> : vector<8x32xf32>
    %24 = tpu.matmul %21, %23, %cst_29 {dimension_numbers = #tpu.dot_dimension_numbers<[1], [0], [0], [1], [0, 0, 1, 1], [], []>} : vector<8x16xbf16>, vector<16x32xbf16>, vector<8x32xf32> -> vector<8x32xf32>
    %c0_30 = arith.constant 0 : index
    %c0_31 = arith.constant 0 : index
    %25 = vector.load %arg10[%c0_30, %c0_31] : memref<1x32xf32, #tpu.memory_space<vmem>>, vector<1x32xf32>
    %26 = vector.broadcast %25 : vector<1x32xf32> to vector<8x32xf32>
    %27 = arith.addf %24, %26 : vector<8x32xf32>
    %28 = arith.addf %19, %27 : vector<8x32xf32>
    %cst_32 = arith.constant 0.000000e+00 : f32
    %29 = vector.broadcast %cst_32 : f32 to vector<8x32xf32>
    %30 = arith.maximumf %28, %29 : vector<8x32xf32>
    %31 = arith.truncf %30 : vector<8x32xf32> to vector<8x32xbf16>
    %c0_33 = arith.constant 0 : index
    %c0_34 = arith.constant 0 : index
    %c0_35 = arith.constant 0 : index
    %c0_36 = arith.constant 0 : index
    %32 = vector.load %arg11[%c0_33, %c0_34, %c0_35, %c0_36] : memref<1x1x8x32xbf16, #tpu.memory_space<vmem>>, vector<1x1x8x32xbf16>
    %33 = vector.shape_cast %32 : vector<1x1x8x32xbf16> to vector<8x32xbf16>
    %34 = vector.shape_cast %31 : vector<8x32xbf16> to vector<1x1x8x32xbf16>
    tpu.vector_store %arg11[%c0_33, %c0_34, %c0_35, %c0_36], %34 {strides = array<i32>} : memref<1x1x8x32xbf16, #tpu.memory_space<vmem>>, vector<1x1x8x32xbf16>,
    return
  }
  func.func @transform_0(%arg0: i32, %arg1: i32, %arg2: i32) -> (i32, i32, i32, i32) {
    %c1_i32 = arith.constant 1 : i32
    %0 = arith.muli %c1_i32, %arg1 : i32
    %c0_i32 = arith.constant 0 : i32
    %1 = arith.addi %0, %c0_i32 : i32
    %c0_i32_0 = arith.constant 0 : i32
    %c0_i32_1 = arith.constant 0 : i32
    return %arg0, %1, %arg2, %c0_i32_0 : i32, i32, i32, i32
  }
  func.func @transform_1(%arg0: i32, %arg1: i32, %arg2: i32) -> (i32, i32, i32, i32) {
    %c1_i32 = arith.constant 1 : i32
    %0 = arith.muli %c1_i32, %arg1 : i32
    %c1_i32_0 = arith.constant 1 : i32
    %1 = arith.addi %0, %c1_i32_0 : i32
    %c0_i32 = arith.constant 0 : i32
    %c0_i32_1 = arith.constant 0 : i32
    return %arg0, %1, %arg2, %c0_i32 : i32, i32, i32, i32
  }
  func.func @transform_2(%arg0: i32, %arg1: i32, %arg2: i32) -> (i32, i32, i32, i32) {
    %c1_i32 = arith.constant 1 : i32
    %0 = arith.muli %c1_i32, %arg1 : i32
    %c2_i32 = arith.constant 2 : i32
    %1 = arith.addi %0, %c2_i32 : i32
    %c0_i32 = arith.constant 0 : i32
    %c0_i32_0 = arith.constant 0 : i32
    return %arg0, %1, %arg2, %c0_i32 : i32, i32, i32, i32
  }
  func.func @transform_3(%arg0: i32, %arg1: i32, %arg2: i32) -> (i32, i32, i32) {
    %c0_i32 = arith.constant 0 : i32
    %c0_i32_0 = arith.constant 0 : i32
    %c0_i32_1 = arith.constant 0 : i32
    %c0_i32_2 = arith.constant 0 : i32
    return %c0_i32, %c0_i32_0, %c0_i32_1 : i32, i32, i32
  }
  func.func @transform_4(%arg0: i32, %arg1: i32, %arg2: i32) -> (i32, i32) {
    %c0_i32 = arith.constant 0 : i32
    %c0_i32_0 = arith.constant 0 : i32
    %c0_i32_1 = arith.constant 0 : i32
    return %c0_i32, %c0_i32_0 : i32, i32
  }
  func.func @transform_5(%arg0: i32, %arg1: i32, %arg2: i32) -> (i32, i32, i32, i32) {
    %c0_i32 = arith.constant 0 : i32
    %c0_i32_0 = arith.constant 0 : i32
    return %arg0, %arg1, %arg2, %c0_i32 : i32, i32, i32, i32
  }
  func.func @transform_6(%arg0: i32, %arg1: i32, %arg2: i32) -> (i32, i32, i32) {
    %c0_i32 = arith.constant 0 : i32
    %c0_i32_0 = arith.constant 0 : i32
    %c0_i32_1 = arith.constant 0 : i32
    %c0_i32_2 = arith.constant 0 : i32
    return %c0_i32, %c0_i32_0, %c0_i32_1 : i32, i32, i32
  }
  func.func @transform_7(%arg0: i32, %arg1: i32, %arg2: i32) -> (i32, i32) {
    %c0_i32 = arith.constant 0 : i32
    %c0_i32_0 = arith.constant 0 : i32
    %c0_i32_1 = arith.constant 0 : i32
    return %c0_i32, %c0_i32_0 : i32, i32
  }
  func.func @transform_8(%arg0: i32, %arg1: i32, %arg2: i32) -> (i32, i32, i32, i32) {
    %c0_i32 = arith.constant 0 : i32
    %c0_i32_0 = arith.constant 0 : i32
    return %arg0, %arg1, %arg2, %c0_i32 : i32, i32, i32, i32
  }
}

module attributes {stable_mosaic.version = 11 : i64} {
  func.func @kernel(%arg0: i32, %arg1: i32, %arg2: i32, %arg3: memref<1x1x8x288xbf16, #tpu.memory_space<vmem>>, %arg4: memref<1x1x8x288xbf16, #tpu.memory_space<vmem>>, %arg5: memref<1x1x8x288xbf16, #tpu.memory_space<vmem>>, %arg6: memref<3x288x64xbf16, #tpu.memory_space<vmem>>, %arg7: memref<1x64xf32, #tpu.memory_space<vmem>>, %arg8: memref<1x1x8x64xbf16, #tpu.memory_space<vmem>>) attributes {dimension_semantics = [#tpu.dimension_semantics<parallel>, #tpu.dimension_semantics<parallel>, #tpu.dimension_semantics<parallel>], iteration_bounds = array<i64: 2, 1, 1>, scalar_prefetch = 0 : i64, scratch_operands = 0 : i64, tpu.core_type = #tpu.core_type<tc>, window_params = [{transform_indices = @transform_0, window_bounds = array<i64: 1, 1, 8, 288>}, {transform_indices = @transform_1, window_bounds = array<i64: 1, 1, 8, 288>}, {transform_indices = @transform_2, window_bounds = array<i64: 1, 1, 8, 288>}, {pipeline_mode = #tpu.pipeline_mode<synchronous>, transform_indices = @transform_3, window_bounds = array<i64: 3, 288, 64>}, {pipeline_mode = #tpu.pipeline_mode<synchronous>, transform_indices = @transform_4, window_bounds = array<i64: 1, 64>}, {transform_indices = @transform_5, window_bounds = array<i64: 1, 1, 8, 64>}]} {
    %c0 = arith.constant 0 : index
    %c0_0 = arith.constant 0 : index
    %c0_1 = arith.constant 0 : index
    %c0_2 = arith.constant 0 : index
    %0 = vector.load %arg3[%c0, %c0_0, %c0_1, %c0_2] : memref<1x1x8x288xbf16, #tpu.memory_space<vmem>>, vector<1x1x8x288xbf16>
    %1 = vector.shape_cast %0 : vector<1x1x8x288xbf16> to vector<8x288xbf16>
    %c0_3 = arith.constant 0 : index
    %c0_4 = arith.constant 0 : index
    %c0_5 = arith.constant 0 : index
    %2 = vector.load %arg6[%c0_3, %c0_4, %c0_5] : memref<3x288x64xbf16, #tpu.memory_space<vmem>>, vector<1x288x64xbf16>
    %3 = vector.shape_cast %2 : vector<1x288x64xbf16> to vector<288x64xbf16>
    %cst = arith.constant dense<0.000000e+00> : vector<8x64xf32>
    %4 = tpu.matmul %1, %3, %cst {dimension_numbers = #tpu.dot_dimension_numbers<[1], [0], [0], [1], [0, 0, 1, 1], [], []>} : vector<8x288xbf16>, vector<288x64xbf16>, vector<8x64xf32> -> vector<8x64xf32>
    %c0_6 = arith.constant 0 : index
    %c0_7 = arith.constant 0 : index
    %c0_8 = arith.constant 0 : index
    %c0_9 = arith.constant 0 : index
    %5 = vector.load %arg4[%c0_6, %c0_7, %c0_8, %c0_9] : memref<1x1x8x288xbf16, #tpu.memory_space<vmem>>, vector<1x1x8x288xbf16>
    %6 = vector.shape_cast %5 : vector<1x1x8x288xbf16> to vector<8x288xbf16>
    %c1 = arith.constant 1 : index
    %c0_10 = arith.constant 0 : index
    %c0_11 = arith.constant 0 : index
    %7 = vector.load %arg6[%c1, %c0_10, %c0_11] : memref<3x288x64xbf16, #tpu.memory_space<vmem>>, vector<1x288x64xbf16>
    %8 = vector.shape_cast %7 : vector<1x288x64xbf16> to vector<288x64xbf16>
    %cst_12 = arith.constant dense<0.000000e+00> : vector<8x64xf32>
    %9 = tpu.matmul %6, %8, %cst_12 {dimension_numbers = #tpu.dot_dimension_numbers<[1], [0], [0], [1], [0, 0, 1, 1], [], []>} : vector<8x288xbf16>, vector<288x64xbf16>, vector<8x64xf32> -> vector<8x64xf32>
    %10 = arith.addf %4, %9 : vector<8x64xf32>
    %c0_13 = arith.constant 0 : index
    %c0_14 = arith.constant 0 : index
    %c0_15 = arith.constant 0 : index
    %c0_16 = arith.constant 0 : index
    %11 = vector.load %arg5[%c0_13, %c0_14, %c0_15, %c0_16] : memref<1x1x8x288xbf16, #tpu.memory_space<vmem>>, vector<1x1x8x288xbf16>
    %12 = vector.shape_cast %11 : vector<1x1x8x288xbf16> to vector<8x288xbf16>
    %c2 = arith.constant 2 : index
    %c0_17 = arith.constant 0 : index
    %c0_18 = arith.constant 0 : index
    %13 = vector.load %arg6[%c2, %c0_17, %c0_18] : memref<3x288x64xbf16, #tpu.memory_space<vmem>>, vector<1x288x64xbf16>
    %14 = vector.shape_cast %13 : vector<1x288x64xbf16> to vector<288x64xbf16>
    %cst_19 = arith.constant dense<0.000000e+00> : vector<8x64xf32>
    %15 = tpu.matmul %12, %14, %cst_19 {dimension_numbers = #tpu.dot_dimension_numbers<[1], [0], [0], [1], [0, 0, 1, 1], [], []>} : vector<8x288xbf16>, vector<288x64xbf16>, vector<8x64xf32> -> vector<8x64xf32>
    %16 = arith.addf %10, %15 : vector<8x64xf32>
    %c0_20 = arith.constant 0 : index
    %c0_21 = arith.constant 0 : index
    %17 = vector.load %arg7[%c0_20, %c0_21] : memref<1x64xf32, #tpu.memory_space<vmem>>, vector<1x64xf32>
    %18 = vector.broadcast %17 : vector<1x64xf32> to vector<8x64xf32>
    %19 = arith.addf %16, %18 : vector<8x64xf32>
    %cst_22 = arith.constant 0.000000e+00 : f32
    %20 = vector.broadcast %cst_22 : f32 to vector<8x64xf32>
    %21 = arith.maximumf %19, %20 : vector<8x64xf32>
    %22 = arith.truncf %21 : vector<8x64xf32> to vector<8x64xbf16>
    %c0_23 = arith.constant 0 : index
    %c0_24 = arith.constant 0 : index
    %c0_25 = arith.constant 0 : index
    %c0_26 = arith.constant 0 : index
    %23 = vector.load %arg8[%c0_23, %c0_24, %c0_25, %c0_26] : memref<1x1x8x64xbf16, #tpu.memory_space<vmem>>, vector<1x1x8x64xbf16>
    %24 = vector.shape_cast %23 : vector<1x1x8x64xbf16> to vector<8x64xbf16>
    %25 = vector.shape_cast %22 : vector<8x64xbf16> to vector<1x1x8x64xbf16>
    tpu.vector_store %arg8[%c0_23, %c0_24, %c0_25, %c0_26], %25 {strides = array<i32>} : memref<1x1x8x64xbf16, #tpu.memory_space<vmem>>, vector<1x1x8x64xbf16>,
    return
  }
  func.func @transform_0(%arg0: i32, %arg1: i32, %arg2: i32) -> (i32, i32, i32, i32) {
    %c2_i32 = arith.constant 2 : i32
    %0 = arith.muli %c2_i32, %arg1 : i32
    %c0_i32 = arith.constant 0 : i32
    %1 = arith.addi %0, %c0_i32 : i32
    %c0_i32_0 = arith.constant 0 : i32
    %c0_i32_1 = arith.constant 0 : i32
    return %arg0, %1, %arg2, %c0_i32_0 : i32, i32, i32, i32
  }
  func.func @transform_1(%arg0: i32, %arg1: i32, %arg2: i32) -> (i32, i32, i32, i32) {
    %c2_i32 = arith.constant 2 : i32
    %0 = arith.muli %c2_i32, %arg1 : i32
    %c1_i32 = arith.constant 1 : i32
    %1 = arith.addi %0, %c1_i32 : i32
    %c0_i32 = arith.constant 0 : i32
    %c0_i32_0 = arith.constant 0 : i32
    return %arg0, %1, %arg2, %c0_i32 : i32, i32, i32, i32
  }
  func.func @transform_2(%arg0: i32, %arg1: i32, %arg2: i32) -> (i32, i32, i32, i32) {
    %c2_i32 = arith.constant 2 : i32
    %0 = arith.muli %c2_i32, %arg1 : i32
    %c2_i32_0 = arith.constant 2 : i32
    %1 = arith.addi %0, %c2_i32_0 : i32
    %c0_i32 = arith.constant 0 : i32
    %c0_i32_1 = arith.constant 0 : i32
    return %arg0, %1, %arg2, %c0_i32 : i32, i32, i32, i32
  }
  func.func @transform_3(%arg0: i32, %arg1: i32, %arg2: i32) -> (i32, i32, i32) {
    %c0_i32 = arith.constant 0 : i32
    %c0_i32_0 = arith.constant 0 : i32
    %c0_i32_1 = arith.constant 0 : i32
    %c0_i32_2 = arith.constant 0 : i32
    return %c0_i32, %c0_i32_0, %c0_i32_1 : i32, i32, i32
  }
  func.func @transform_4(%arg0: i32, %arg1: i32, %arg2: i32) -> (i32, i32) {
    %c0_i32 = arith.constant 0 : i32
    %c0_i32_0 = arith.constant 0 : i32
    %c0_i32_1 = arith.constant 0 : i32
    return %c0_i32, %c0_i32_0 : i32, i32
  }
  func.func @transform_5(%arg0: i32, %arg1: i32, %arg2: i32) -> (i32, i32, i32, i32) {
    %c0_i32 = arith.constant 0 : i32
    %c0_i32_0 = arith.constant 0 : i32
    return %arg0, %arg1, %arg2, %c0_i32 : i32, i32, i32, i32
  }
}

module attributes {stable_mosaic.version = 11 : i64} {
  func.func @kernel(%arg0: i32, %arg1: i32, %arg2: i32, %arg3: memref<1x1x8x576xbf16, #tpu.memory_space<vmem>>, %arg4: memref<1x1x8x576xbf16, #tpu.memory_space<vmem>>, %arg5: memref<1x1x8x576xbf16, #tpu.memory_space<vmem>>, %arg6: memref<3x576x64xbf16, #tpu.memory_space<vmem>>, %arg7: memref<1x64xf32, #tpu.memory_space<vmem>>, %arg8: memref<1x1x8x32xbf16, #tpu.memory_space<vmem>>, %arg9: memref<1x32x64xbf16, #tpu.memory_space<vmem>>, %arg10: memref<1x64xf32, #tpu.memory_space<vmem>>, %arg11: memref<1x1x8x64xbf16, #tpu.memory_space<vmem>>) attributes {dimension_semantics = [#tpu.dimension_semantics<parallel>, #tpu.dimension_semantics<parallel>, #tpu.dimension_semantics<parallel>], iteration_bounds = array<i64: 2, 1, 1>, scalar_prefetch = 0 : i64, scratch_operands = 0 : i64, tpu.core_type = #tpu.core_type<tc>, window_params = [{transform_indices = @transform_0, window_bounds = array<i64: 1, 1, 8, 576>}, {transform_indices = @transform_1, window_bounds = array<i64: 1, 1, 8, 576>}, {transform_indices = @transform_2, window_bounds = array<i64: 1, 1, 8, 576>}, {pipeline_mode = #tpu.pipeline_mode<synchronous>, transform_indices = @transform_3, window_bounds = array<i64: 3, 576, 64>}, {pipeline_mode = #tpu.pipeline_mode<synchronous>, transform_indices = @transform_4, window_bounds = array<i64: 1, 64>}, {transform_indices = @transform_5, window_bounds = array<i64: 1, 1, 8, 32>}, {pipeline_mode = #tpu.pipeline_mode<synchronous>, transform_indices = @transform_6, window_bounds = array<i64: 1, 32, 64>}, {pipeline_mode = #tpu.pipeline_mode<synchronous>, transform_indices = @transform_7, window_bounds = array<i64: 1, 64>}, {transform_indices = @transform_8, window_bounds = array<i64: 1, 1, 8, 64>}]} {
    %c0 = arith.constant 0 : index
    %c0_0 = arith.constant 0 : index
    %c0_1 = arith.constant 0 : index
    %c0_2 = arith.constant 0 : index
    %0 = vector.load %arg3[%c0, %c0_0, %c0_1, %c0_2] : memref<1x1x8x576xbf16, #tpu.memory_space<vmem>>, vector<1x1x8x576xbf16>
    %1 = vector.shape_cast %0 : vector<1x1x8x576xbf16> to vector<8x576xbf16>
    %c0_3 = arith.constant 0 : index
    %c0_4 = arith.constant 0 : index
    %c0_5 = arith.constant 0 : index
    %2 = vector.load %arg6[%c0_3, %c0_4, %c0_5] : memref<3x576x64xbf16, #tpu.memory_space<vmem>>, vector<1x576x64xbf16>
    %3 = vector.shape_cast %2 : vector<1x576x64xbf16> to vector<576x64xbf16>
    %cst = arith.constant dense<0.000000e+00> : vector<8x64xf32>
    %4 = tpu.matmul %1, %3, %cst {dimension_numbers = #tpu.dot_dimension_numbers<[1], [0], [0], [1], [0, 0, 1, 1], [], []>} : vector<8x576xbf16>, vector<576x64xbf16>, vector<8x64xf32> -> vector<8x64xf32>
    %c0_6 = arith.constant 0 : index
    %c0_7 = arith.constant 0 : index
    %c0_8 = arith.constant 0 : index
    %c0_9 = arith.constant 0 : index
    %5 = vector.load %arg4[%c0_6, %c0_7, %c0_8, %c0_9] : memref<1x1x8x576xbf16, #tpu.memory_space<vmem>>, vector<1x1x8x576xbf16>
    %6 = vector.shape_cast %5 : vector<1x1x8x576xbf16> to vector<8x576xbf16>
    %c1 = arith.constant 1 : index
    %c0_10 = arith.constant 0 : index
    %c0_11 = arith.constant 0 : index
    %7 = vector.load %arg6[%c1, %c0_10, %c0_11] : memref<3x576x64xbf16, #tpu.memory_space<vmem>>, vector<1x576x64xbf16>
    %8 = vector.shape_cast %7 : vector<1x576x64xbf16> to vector<576x64xbf16>
    %cst_12 = arith.constant dense<0.000000e+00> : vector<8x64xf32>
    %9 = tpu.matmul %6, %8, %cst_12 {dimension_numbers = #tpu.dot_dimension_numbers<[1], [0], [0], [1], [0, 0, 1, 1], [], []>} : vector<8x576xbf16>, vector<576x64xbf16>, vector<8x64xf32> -> vector<8x64xf32>
    %10 = arith.addf %4, %9 : vector<8x64xf32>
    %c0_13 = arith.constant 0 : index
    %c0_14 = arith.constant 0 : index
    %c0_15 = arith.constant 0 : index
    %c0_16 = arith.constant 0 : index
    %11 = vector.load %arg5[%c0_13, %c0_14, %c0_15, %c0_16] : memref<1x1x8x576xbf16, #tpu.memory_space<vmem>>, vector<1x1x8x576xbf16>
    %12 = vector.shape_cast %11 : vector<1x1x8x576xbf16> to vector<8x576xbf16>
    %c2 = arith.constant 2 : index
    %c0_17 = arith.constant 0 : index
    %c0_18 = arith.constant 0 : index
    %13 = vector.load %arg6[%c2, %c0_17, %c0_18] : memref<3x576x64xbf16, #tpu.memory_space<vmem>>, vector<1x576x64xbf16>
    %14 = vector.shape_cast %13 : vector<1x576x64xbf16> to vector<576x64xbf16>
    %cst_19 = arith.constant dense<0.000000e+00> : vector<8x64xf32>
    %15 = tpu.matmul %12, %14, %cst_19 {dimension_numbers = #tpu.dot_dimension_numbers<[1], [0], [0], [1], [0, 0, 1, 1], [], []>} : vector<8x576xbf16>, vector<576x64xbf16>, vector<8x64xf32> -> vector<8x64xf32>
    %16 = arith.addf %10, %15 : vector<8x64xf32>
    %c0_20 = arith.constant 0 : index
    %c0_21 = arith.constant 0 : index
    %17 = vector.load %arg7[%c0_20, %c0_21] : memref<1x64xf32, #tpu.memory_space<vmem>>, vector<1x64xf32>
    %18 = vector.broadcast %17 : vector<1x64xf32> to vector<8x64xf32>
    %19 = arith.addf %16, %18 : vector<8x64xf32>
    %c0_22 = arith.constant 0 : index
    %c0_23 = arith.constant 0 : index
    %c0_24 = arith.constant 0 : index
    %c0_25 = arith.constant 0 : index
    %20 = vector.load %arg8[%c0_22, %c0_23, %c0_24, %c0_25] : memref<1x1x8x32xbf16, #tpu.memory_space<vmem>>, vector<1x1x8x32xbf16>
    %21 = vector.shape_cast %20 : vector<1x1x8x32xbf16> to vector<8x32xbf16>
    %c0_26 = arith.constant 0 : index
    %c0_27 = arith.constant 0 : index
    %c0_28 = arith.constant 0 : index
    %22 = vector.load %arg9[%c0_26, %c0_27, %c0_28] : memref<1x32x64xbf16, #tpu.memory_space<vmem>>, vector<1x32x64xbf16>
    %23 = vector.shape_cast %22 : vector<1x32x64xbf16> to vector<32x64xbf16>
    %cst_29 = arith.constant dense<0.000000e+00> : vector<8x64xf32>
    %24 = tpu.matmul %21, %23, %cst_29 {dimension_numbers = #tpu.dot_dimension_numbers<[1], [0], [0], [1], [0, 0, 1, 1], [], []>} : vector<8x32xbf16>, vector<32x64xbf16>, vector<8x64xf32> -> vector<8x64xf32>
    %c0_30 = arith.constant 0 : index
    %c0_31 = arith.constant 0 : index
    %25 = vector.load %arg10[%c0_30, %c0_31] : memref<1x64xf32, #tpu.memory_space<vmem>>, vector<1x64xf32>
    %26 = vector.broadcast %25 : vector<1x64xf32> to vector<8x64xf32>
    %27 = arith.addf %24, %26 : vector<8x64xf32>
    %28 = arith.addf %19, %27 : vector<8x64xf32>
    %cst_32 = arith.constant 0.000000e+00 : f32
    %29 = vector.broadcast %cst_32 : f32 to vector<8x64xf32>
    %30 = arith.maximumf %28, %29 : vector<8x64xf32>
    %31 = arith.truncf %30 : vector<8x64xf32> to vector<8x64xbf16>
    %c0_33 = arith.constant 0 : index
    %c0_34 = arith.constant 0 : index
    %c0_35 = arith.constant 0 : index
    %c0_36 = arith.constant 0 : index
    %32 = vector.load %arg11[%c0_33, %c0_34, %c0_35, %c0_36] : memref<1x1x8x64xbf16, #tpu.memory_space<vmem>>, vector<1x1x8x64xbf16>
    %33 = vector.shape_cast %32 : vector<1x1x8x64xbf16> to vector<8x64xbf16>
    %34 = vector.shape_cast %31 : vector<8x64xbf16> to vector<1x1x8x64xbf16>
    tpu.vector_store %arg11[%c0_33, %c0_34, %c0_35, %c0_36], %34 {strides = array<i32>} : memref<1x1x8x64xbf16, #tpu.memory_space<vmem>>, vector<1x1x8x64xbf16>,
    return
  }
  func.func @transform_0(%arg0: i32, %arg1: i32, %arg2: i32) -> (i32, i32, i32, i32) {
    %c1_i32 = arith.constant 1 : i32
    %0 = arith.muli %c1_i32, %arg1 : i32
    %c0_i32 = arith.constant 0 : i32
    %1 = arith.addi %0, %c0_i32 : i32
    %c0_i32_0 = arith.constant 0 : i32
    %c0_i32_1 = arith.constant 0 : i32
    return %arg0, %1, %arg2, %c0_i32_0 : i32, i32, i32, i32
  }
  func.func @transform_1(%arg0: i32, %arg1: i32, %arg2: i32) -> (i32, i32, i32, i32) {
    %c1_i32 = arith.constant 1 : i32
    %0 = arith.muli %c1_i32, %arg1 : i32
    %c1_i32_0 = arith.constant 1 : i32
    %1 = arith.addi %0, %c1_i32_0 : i32
    %c0_i32 = arith.constant 0 : i32
    %c0_i32_1 = arith.constant 0 : i32
    return %arg0, %1, %arg2, %c0_i32 : i32, i32, i32, i32
  }
  func.func @transform_2(%arg0: i32, %arg1: i32, %arg2: i32) -> (i32, i32, i32, i32) {
    %c1_i32 = arith.constant 1 : i32
    %0 = arith.muli %c1_i32, %arg1 : i32
    %c2_i32 = arith.constant 2 : i32
    %1 = arith.addi %0, %c2_i32 : i32
    %c0_i32 = arith.constant 0 : i32
    %c0_i32_0 = arith.constant 0 : i32
    return %arg0, %1, %arg2, %c0_i32 : i32, i32, i32, i32
  }
  func.func @transform_3(%arg0: i32, %arg1: i32, %arg2: i32) -> (i32, i32, i32) {
    %c0_i32 = arith.constant 0 : i32
    %c0_i32_0 = arith.constant 0 : i32
    %c0_i32_1 = arith.constant 0 : i32
    %c0_i32_2 = arith.constant 0 : i32
    return %c0_i32, %c0_i32_0, %c0_i32_1 : i32, i32, i32
  }
  func.func @transform_4(%arg0: i32, %arg1: i32, %arg2: i32) -> (i32, i32) {
    %c0_i32 = arith.constant 0 : i32
    %c0_i32_0 = arith.constant 0 : i32
    %c0_i32_1 = arith.constant 0 : i32
    return %c0_i32, %c0_i32_0 : i32, i32
  }
  func.func @transform_5(%arg0: i32, %arg1: i32, %arg2: i32) -> (i32, i32, i32, i32) {
    %c0_i32 = arith.constant 0 : i32
    %c0_i32_0 = arith.constant 0 : i32
    return %arg0, %arg1, %arg2, %c0_i32 : i32, i32, i32, i32
  }
  func.func @transform_6(%arg0: i32, %arg1: i32, %arg2: i32) -> (i32, i32, i32) {
    %c0_i32 = arith.constant 0 : i32
    %c0_i32_0 = arith.constant 0 : i32
    %c0_i32_1 = arith.constant 0 : i32
    %c0_i32_2 = arith.constant 0 : i32
    return %c0_i32, %c0_i32_0, %c0_i32_1 : i32, i32, i32
  }
  func.func @transform_7(%arg0: i32, %arg1: i32, %arg2: i32) -> (i32, i32) {
    %c0_i32 = arith.constant 0 : i32
    %c0_i32_0 = arith.constant 0 : i32
    %c0_i32_1 = arith.constant 0 : i32
    return %c0_i32, %c0_i32_0 : i32, i32
  }
  func.func @transform_8(%arg0: i32, %arg1: i32, %arg2: i32) -> (i32, i32, i32, i32) {
    %c0_i32 = arith.constant 0 : i32
    %c0_i32_0 = arith.constant 0 : i32
    return %arg0, %arg1, %arg2, %c0_i32 : i32, i32, i32, i32
  }
}

</mosaic_0001>

<bundles_post_ra>
// kernel: _lambda_.9
= control target key start
LH: loop header
LB: loop body
LE: loop exit
PB: predicated region body
PF: predicated region fallthrough
CT: control target
= control target key end

     0   :  { %s3936_s24 = smov 0   ;;  %s3938_s25 = smov 0   ;;  %s4694_s0 = inlined_call_operand.vmem [shape: bf16[2,20,256,100], index: 0, kind: input, shape index: {}, may-alias: {0,1,2,3,4}]   ;;  %s4695_s1 = inlined_call_operand.vmem [shape: bf16[2,20,256,100], index: 1, kind: input, shape index: {}, may-alias: {0,1,2,3,4}]   ;;  %s4696_s2 = inlined_call_operand.vmem [shape: bf16[2,20,256,100], index: 2, kind: input, shape index: {}, may-alias: {0,1,2,3,4}]   ;;  %s4697_s3 = inlined_call_operand.vmem [shape: bf16[2,20,256,100], index: 3, kind: input, shape index: {}, may-alias: {0,1,2,3,4}]   ;;  %s4698_s4 = inlined_call_operand.vmem [shape: bf16[2,20,256,100], index: 4, kind: input, shape index: {}, may-alias: {0,1,2,3,4}]   ;;  %s4699_s5 = inlined_call_operand.vmem [shape: bf16[5,100,8], index: 5, kind: input, shape index: {}]   ;;  %s4700_s6 = inlined_call_operand.vmem [shape: f32[1,8], index: 6, kind: input, shape index: {}]   ;;  %s4701_s7 = inlined_call_operand.vmem [shape: bf16[2,16,256,8], index: 7, kind: output, shape index: {}]  }
   0x1   :  { %s3940_s26 = smov 0   ;;  %s3942_s27 = smov 0  }
   0x2   :  { %s3944_s28 = smov 0  }
   0x3 LB: > { %s32_s29 = sadd.s32 1, %s3886_s26  ;;  %s36_s30 = sadd.s32 1, %s3890_s27  ;;  %s3894_s28 = sphi %s3944_s28, %s17_s28   ;;  %s3890_s27 = sphi %s3942_s27, %s4787_s27   ;;  %s3886_s26 = sphi %s3940_s26, %s4786_s26   ;;  %s3882_s25 = sphi %s3938_s25, %s4785_s25   ;;  %s3878_s24 = sphi %s3936_s24, %s4784_s24  }
   0x4   : > { %p34_p0 = scmp.ge.s32.totalorder %s32_s29, 16  ;;  %p3007_p1 = scmp.ge.s32.totalorder %s3894_s28, 1 }
   0x5   : > { %p381_p2 = scmp.lt.s32.totalorder %s3894_s28, 33 }
   0x6   : > { %s4789_s29 = smov (%p34_p0, %s32_s29), 0  ;;  %s4791_s30 = smov (!%p34_p0, %s36_s30), %s3890_s27 }
   0x7   : > { %p382_p3 = pnand %p3007_p1, %p381_p2  ;;  %p38_p4 = scmp.ge.s32.totalorder %s4791_s30, 2 }
   0x9   : > { %s4793_s30 = smov (%p38_p4, %s4791_s30), 0  ;;  %385 = sbr.rel (%p382_p3) target bundleno = 405 (0x195), region = 48 }
   0xe   : > { %v3741_v0 = vld [vmem:[%s4699_s5 + $0x64] ss:$0 sps:$4 sm:$0x33]   ;;  %vm837_vm0 = vcmask 1041408   ;;  %v3742_v1 = vld [vmem:[%s4699_s5 + $0x5c] sm:$0xff]   ;;  %p486_p5 = scmp.lt.s32.totalorder %s3882_s25, 1 }
   0xf   : > { %3694 = vmatprep.subr.msk.bf16.mxu0 %vm837_vm0, %v3741_v0  ;;  %3695 = vmatprep.subr.msk.bf16.mxu1 %vm837_vm0, %v3741_v0  ;;  %v839_v2 = vsel %vm837_vm0, %v3741_v0, 0  ;;  %v3743_v3 = vld [vmem:[%s4699_s5 + $0x54] sm:$0xff]   ;;  %s499_s14 = sadd.s32 1, %s3878_s24  ;;  %v3744_v4 = vld [vmem:[%s4699_s5 + $0x4c] sm:$0xff]   ;;  %v3745_v5 = vld [vmem:[%s4699_s5 + $0x44] sm:$0xff]   ;;  %vm788_vm1 = vcmask 818176  }
  0x10   : > { %3451 = vmatpush3.bf16.msra.mxu0 %v839_v2  ;;  %3687 = vmatpush3.bf16.msra.mxu1 %v839_v2  ;;  %s4795_s25 = smov (!%p486_p5, %s3882_s25), 1  ;;  %p503_p6 = scmp.lt.s32.totalorder %s499_s14, 19  ;;  %v3746_v8 = vld [vmem:[%s4699_s5 + $0x3c] sm:$0xff]   ;;  %v3752_v9 = vld [vmem:[%s4699_s5 + $0x30] ss:$0 sps:$4 sm:$0x33]  }
  0x11   : > { %3452 = vmatprep.subr.bf16.mxu0 %v3742_v1  ;;  %3681 = vmatprep.subr.bf16.mxu1 %v3742_v1  ;;  %s3984_s15 = smul.u32 640, %s4795_s25  ;;  %s515_s12 = sadd.s32 2, %s3878_s24  ;;  %v3747_v10 = vld [vmem:[%s4699_s5 + $0x34] sm:$0xff]   ;;  %v1170_v13 = vsel %vm837_vm0, %v3752_v9, 0  ;;  %v3754_v16 = vld [vmem:[%s4699_s5 + $0x28] sm:$0xff]   ;;  %v3760_v20 = vld [vmem:[%s4699_s5 + $0x20] sm:$0xff]  }
  0x12   : > { %s4797_s14 = smov (!%p503_p6, %s499_s14), 19  ;;  %p488_p7 = scmp.lt.s32.totalorder %s3878_s24, 19  ;;  %v3753_v11 = vld [vmem:[%s4699_s5 + $0x98] ss:$0 sps:$4 sm:$0x33]   ;;  %v3757_v17 = vld [vmem:[%s4699_s5 + $0x90] sm:$0xff]  }
  0x13   : > { %s3010_s18 = sshll.u32 %s4797_s14, 5  ;;  %p519_p8 = scmp.lt.s32.totalorder %s515_s12, 19  ;;  %v1547_v15 = vsel %vm837_vm0, %v3753_v11, 0  ;;  %v3761_v21 = vld [vmem:[%s4699_s5 + $0x88] sm:$0xff]   ;;  %v3762_v24 = vld [vmem:[%s4699_s5 + $0x18] sm:$0xff]   ;;  %v3767_v27 = vld [vmem:[%s4699_s5 + $0x80] sm:$0xff]  }
  0x14   : > { %3453 = vmatpush3.bf16.msra.mxu0 %v3742_v1  ;;  %3688 = vmatpush3.bf16.msra.mxu1 %v3742_v1  ;;  %s510_s19 = sadd.s32 %s3984_s15, %s3010_s18  ;;  %v3768_v28 = vld [vmem:[%s4699_s5 + $0x10] sm:$0xff]   ;;  %v3769_v29 = vld [vmem:[%s4699_s5 + $0x78] sm:$0xff]   ;;  %v3772_v34 = vld [vmem:[%s4699_s5 + $0x8] sm:$0xff]   ;;  %s531_s8 = sadd.s32 3, %s3878_s24  ;;  %vm2759_vm2 = vcmask 60416  }
  0x15   : > { %3454 = vmatprep.subr.bf16.mxu0 %v3743_v3  ;;  %3682 = vmatprep.subr.bf16.mxu1 %v3743_v3  ;;  %s3011_s22 = sshll.u32 %s510_s19, 2  ;;  %s4799_s12 = smov (!%p519_p8, %s515_s12), 19  ;;  %v3775_v35 = vld [vmem:[%s4699_s5 + $0x70] sm:$0xff]   ;;  %v3776_v36 = vld [vmem:[%s4699_s5] sm:$0xff]   ;;  %v3777_v37 = vld [vmem:[%s4699_s5 + $0x68] sm:$0xff]  }
  0x16   : > { %s3996_s9 = scalar_lea.vmem %s4695_s1, %s3011_s22  ;;  %s3012_s11 = sshll.u32 %s4799_s12, 5  ;;  %v3782_v41 = vld [vmem:[%s4699_s5 + $0xcc] ss:$0 sps:$4 sm:$0x33]   ;;  %v3788_v50 = vld [vmem:[%s4699_s5 + $0xc4] sm:$0xff]   ;;  %v3789_v51 = vld [vmem:[%s4699_s5 + $0xf8] sm:$0xff]  }
  0x17   : > { %v3748_v6 = vld [vmem:[%s3996_s9] sm:$0xff]   ;;  %s489_s20 = scalar_select %p488_p7, %s3878_s24, 19  ;;  %v3750_v12 = vld [vmem:[%s3996_s9 + $0x8] sm:$0xff]   ;;  %v3755_v18 = vld [vmem:[%s3996_s9 + $0x10] sm:$0xff]   ;;  %v1956_v47 = vsel %vm837_vm0, %v3782_v41, 0 }
  0x18   : > { %3455 = vmatpush3.bf16.msra.mxu0 %v3743_v3  ;;  %3689 = vmatpush3.bf16.msra.mxu1 %v3743_v3  ;;  %v3749_v7 = vld [vmem:[%s3996_s9 + $0x40] sm:$0xff]   ;;  %v3751_v14 = vld [vmem:[%s3996_s9 + $0x48] sm:$0xff]   ;;  %v3756_v19 = vld [vmem:[%s3996_s9 + $0x50] sm:$0xff]   ;;  %s526_s19 = sadd.s32 %s3984_s15, %s3012_s11  ;;  %s547_s11 = sadd.s32 4, %s3878_s24 }
  0x19   : > { %3456 = vmatprep.subr.bf16.mxu0 %v3744_v4  ;;  %3683 = vmatprep.subr.bf16.mxu1 %v3744_v4  ;;  %s3008_s10 = sshll.u32 %s489_s20, 5  ;;  %v3758_v22 = vld [vmem:[%s3996_s9 + $0x18] sm:$0xff]   ;;  %s3013_s22 = sshll.u32 %s526_s19, 2  ;;  %v3763_v25 = vld [vmem:[%s3996_s9 + $0x20] sm:$0xff]   ;;  %v3765_v30 = vld [vmem:[%s3996_s9 + $0x28] sm:$0xff]  }
  0x1a   : > { %3464 = vmatprep.mubr.msk.bf16.mxu0 %vm788_vm1, %v3748_v6  ;;  %3480 = vmatprep.mubr.msk.bf16.mxu1 %vm788_vm1, %v3749_v7  ;;  %s495_s16 = sadd.s32 %s3984_s15, %s3008_s10  ;;  %v3759_v23 = vld [vmem:[%s3996_s9 + $0x58] sm:$0xff]   ;;  %v3764_v26 = vld [vmem:[%s3996_s9 + $0x60] sm:$0xff]   ;;  %s4061_s17 = scalar_lea.vmem %s4696_s2, %s3013_s22  ;;  %v3766_v31 = vld [vmem:[%s3996_s9 + $0x68] sm:$0xff]  }
  0x1b   : > { %s3009_s12 = sshll.u32 %s495_s16, 2  ;;  %v3770_v32 = vld [vmem:[%s3996_s9 + $0x30] sm:$0xff]   ;;  %v3773_v38 = vld [vmem:[%s3996_s9 + $0x38] sm:$0xff]   ;;  %v3783_v42 = vld [vmem:[%s4699_s5 + $0x100] ss:$0 sps:$4 sm:$0x33]  }
  0x1c   : > { %3457 = vmatpush3.bf16.msra.mxu0 %v3744_v4  ;;  %3690 = vmatpush3.bf16.msra.mxu1 %v3744_v4  ;;  %s4053_s10 = scalar_lea.vmem %s4694_s0, %s3009_s12  ;;  %v3771_v33 = vld [vmem:[%s3996_s9 + $0x70] sm:$0xff]   ;;  %v3774_v39 = vld [vmem:[%s3996_s9 + $0x78] sm:$0xff]   ;;  %v3779_v43 = vld [vmem:[%s4061_s17] sm:$0xff]   ;;  %v2365_v49 = vsel %vm837_vm0, %v3783_v42, 0  ;;  %p535_p9 = scmp.lt.s32.totalorder %s531_s8, 19 }
  0x1d   : > { %3458 = vmatprep.subr.bf16.mxu0 %v3745_v5  ;;  %3684 = vmatprep.subr.bf16.mxu1 %v3745_v5  ;;  %v3778_v40 = vld [vmem:[%s4053_s10] sm:$0xff]   ;;  %v3780_v44 = vld [vmem:[%s4053_s10 + $0x8] sm:$0xff]   ;;  %v3784_v46 = vld [vmem:[%s4053_s10 + $0x10] sm:$0xff]   ;;  %p551_p10 = scmp.lt.s32.totalorder %s547_s11, 19  ;;  %p566_p11 = scmp.lt.s32.totalorder %s3878_s24, 15 }
  0x1e   : > { %v3781_v45 = vld [vmem:[%s4061_s17 + $0x8] sm:$0xff]   ;;  %v3785_v48 = vld [vmem:[%s4061_s17 + $0x10] sm:$0xff]   ;;  %v3794_v52 = vld [vmem:[%s4699_s5 + $0xbc] sm:$0xff]   ;;  %s4801_s8 = smov (!%p535_p9, %s531_s8), 19 }
  0x1f   : > { %v3786_v53 = vld [vmem:[%s4053_s10 + $0x18] sm:$0xff]   ;;  %v3795_v54 = vld [vmem:[%s4699_s5 + $0xf0] sm:$0xff]   ;;  %v3790_v56 = vld [vmem:[%s4053_s10 + $0x20] sm:$0xff]   ;;  %s4803_s11 = smov (!%p551_p10, %s547_s11), 19  ;;  %s3014_s23 = sshll.u32 %s4801_s8, 5 }
  0x20   : > { %3459 = vmatpush3.bf16.msra.mxu0 %v3745_v5  ;;  %3691 = vmatpush3.bf16.msra.mxu1 %v3745_v5  ;;  %v3787_v55 = vld [vmem:[%s4061_s17 + $0x18] sm:$0xff]   ;;  %v3791_v57 = vld [vmem:[%s4061_s17 + $0x20] sm:$0xff]   ;;  %v3801_v59 = vld [vmem:[%s4699_s5 + $0xe8] sm:$0xff]   ;;  %s3016_s16 = sshll.u32 %s4803_s11, 5  ;;  %s542_s18 = sadd.s32 %s3984_s15, %s3014_s23 }
  0x21   : > { %3460 = vmatprep.subr.bf16.mxu0 %v3746_v8  ;;  %3685 = vmatprep.subr.bf16.mxu1 %v3746_v8  ;;  %v3800_v58 = vld [vmem:[%s4699_s5 + $0xb4] sm:$0xff]   ;;  %v3792_v60 = vld [vmem:[%s4053_s10 + $0x28] sm:$0xff]   ;;  %v3809_v63 = vld [vmem:[%s4699_s5 + $0xe0] sm:$0xff]   ;;  %s558_s8 = sadd.s32 %s3984_s15, %s3016_s16  ;;  %s3015_s11 = sshll.u32 %s542_s18, 2 }
  0x22   : > { %v3793_v61 = vld [vmem:[%s4061_s17 + $0x28] sm:$0xff]   ;;  %v3796_v0 = vld [vmem:[%s4053_s10 + $0x30] sm:$0xff]   ;;  %v3817_v3 = vld [vmem:[%s4699_s5 + $0xd8] sm:$0xff]   ;;  %s3017_s21 = sshll.u32 %s558_s8, 2  ;;  %s4178_s14 = scalar_lea.vmem %s4697_s3, %s3015_s11 }
  0x23   : > { %v3806_v62 = vld [vmem:[%s4699_s5 + $0xac] sm:$0xff]   ;;  %v3812_v2 = vld [vmem:[%s4699_s5 + $0xa4] sm:$0xff]   ;;  %v3798_v4 = vld [vmem:[%s4053_s10 + $0x38] sm:$0xff]   ;;  %s4186_s8 = scalar_lea.vmem %s4698_s4, %s3017_s21  ;;  %s4805_s24 = smov (!%p566_p11, %s3878_s24), 15 }
  0x24   : > { %3461 = vmatpush3.bf16.msra.mxu0 %v3746_v8  ;;  %3692 = vmatpush3.bf16.msra.mxu1 %v3746_v8  ;;  %v3797_v1 = vld [vmem:[%s4061_s17 + $0x30] sm:$0xff]   ;;  %v3799_v5 = vld [vmem:[%s4061_s17 + $0x38] sm:$0xff]   ;;  %v3802_v6 = vld [vmem:[%s4053_s10 + $0x40] sm:$0xff]  }
  0x25   : > { %3462 = vmatprep.subr.bf16.mxu0 %v3747_v10  ;;  %3686 = vmatprep.subr.bf16.mxu1 %v3747_v10  ;;  %v3820_v7 = vld [vmem:[%s4699_s5 + $0x9c] sm:$0xff]   ;;  %v3823_v8 = vld [vmem:[%s4699_s5 + $0xd0] sm:$0xff]  }
  0x28   : > { %3463 = vmatpush3.bf16.msra.mxu0 %v3747_v10  ;;  %3693 = vmatpush3.bf16.msra.mxu1 %v3747_v10  ;;  %v3804_v10 = vld [vmem:[%s4053_s10 + $0x48] sm:$0xff]  }
  0x29   : > { %3696 = vmatprep.subr.msk.bf16.mxu1 %vm837_vm0, %v3752_v9  ;;  %3697 = vmatprep.subr.msk.bf16.mxu0 %vm837_vm0, %v3753_v11  ;;  %v3803_v9 = vld [vmem:[%s4061_s17 + $0x40] sm:$0xff]   ;;  %v3805_v11 = vld [vmem:[%s4061_s17 + $0x48] sm:$0xff]  }
  0x2b   : > { %3465 = vmatmul.mubr.msk.bf16.vlgmr.msra.gmra.mxu0 %vm788_vm1, %v3750_v12  ;;  %3481 = vmatmul.mubr.msk.bf16.vlgmr.msra.gmra.mxu1 %vm788_vm1, %v3751_v14  ;;  %v3807_v12 = vld [vmem:[%s4053_s10 + $0x50] sm:$0xff]   ;;  %v3810_v14 = vld [vmem:[%s4053_s10 + $0x58] sm:$0xff]  }
  0x2c   : > { %3497 = vmatpush3.bf16.msra.mxu1 %v1170_v13  ;;  %3543 = vmatpush3.bf16.msra.mxu0 %v1547_v15  ;;  %v3808_v13 = vld [vmem:[%s4061_s17 + $0x50] sm:$0xff]   ;;  %v3811_v15 = vld [vmem:[%s4061_s17 + $0x58] sm:$0xff]  }
  0x2d   : > { %3498 = vmatprep.subr.bf16.mxu1 %v3754_v16  ;;  %3468 = vmatprep.mubr.msk.bf16.mxu0 %vm788_vm1, %v3755_v18  ;;  %v3815_v18 = vld [vmem:[%s4053_s10 + $0x68] sm:$0xff]  }
  0x2e   : > { %3484 = vmatprep.mubr.msk.bf16.mxu1 %vm788_vm1, %v3756_v19  ;;  %3544 = vmatprep.subr.bf16.mxu0 %v3757_v17  ;;  %v3816_v19 = vld [vmem:[%s4061_s17 + $0x68] sm:$0xff]  }
  0x30   : > { %3499 = vmatpush3.bf16.msra.mxu1 %v3754_v16  ;;  %3545 = vmatpush3.bf16.msra.mxu0 %v3757_v17  ;;  %v3813_v16 = vld [vmem:[%s4053_s10 + $0x60] sm:$0xff]  }
  0x31   : > { %3500 = vmatprep.subr.bf16.mxu1 %v3760_v20  ;;  %3546 = vmatprep.subr.bf16.mxu0 %v3761_v21  ;;  %v3814_v17 = vld [vmem:[%s4061_s17 + $0x60] sm:$0xff]  }
  0x33   : > { %3469 = vmatmul.mubr.msk.bf16.gmra.mxu0 %vm788_vm1, %v3758_v22  ;;  %3485 = vmatmul.mubr.msk.bf16.gmra.mxu1 %vm788_vm1, %v3759_v23  ;;  %v3821_v22 = vld [vmem:[%s4053_s10 + $0x78] sm:$0xff]  }
  0x34   : > { %3501 = vmatpush3.bf16.msra.mxu1 %v3760_v20  ;;  %3547 = vmatpush3.bf16.msra.mxu0 %v3761_v21  ;;  %v3818_v20 = vld [vmem:[%s4053_s10 + $0x70] sm:$0xff]   ;;  %v3822_v23 = vld [vmem:[%s4061_s17 + $0x78] sm:$0xff]   ;;  %s3018_s10 = sshll.u32 %s4805_s24, 5 }
  0x35   : > { %3502 = vmatprep.subr.bf16.mxu1 %v3762_v24  ;;  %3472 = vmatprep.mubr.msk.bf16.mxu0 %vm788_vm1, %v3763_v25  ;;  %v3819_v21 = vld [vmem:[%s4061_s17 + $0x70] sm:$0xff]   ;;  %v3825_v25 = vld [vmem:[%s4186_s8] sm:$0xff]   ;;  %s3019_s17 = sshll.u32 %s4795_s25, 9 }
  0x36   : > { %3488 = vmatprep.mubr.msk.bf16.mxu1 %vm788_vm1, %v3764_v26  ;;  %3548 = vmatprep.subr.bf16.mxu0 %v3767_v27  ;;  %v3826_v26 = vld [vmem:[%s4178_s14 + $0x8] sm:$0xff]   ;;  %s573_s20 = sadd.s32 %s3019_s17, %s3018_s10 }
  0x37   : > { %s3020_s24 = sshll.u32 %s573_s20, 2 }
  0x38   : > { %3503 = vmatpush3.bf16.msra.mxu1 %v3762_v24  ;;  %3549 = vmatpush3.bf16.msra.mxu0 %v3767_v27  ;;  %v3824_v24 = vld [vmem:[%s4178_s14] sm:$0xff]   ;;  %v3827_v27 = vld [vmem:[%s4186_s8 + $0x8] sm:$0xff]   ;;  %s4509_s15 = scalar_lea.vmem %s4701_s7, %s3020_s24 }
  0x39   : > { %3504 = vmatprep.subr.bf16.mxu1 %v3768_v28  ;;  %3550 = vmatprep.subr.bf16.mxu0 %v3769_v29 }
  0x3b   : > { %3473 = vmatmul.mubr.msk.bf16.gmra.mxu0 %vm788_vm1, %v3765_v30  ;;  %3489 = vmatmul.mubr.msk.bf16.gmra.mxu1 %vm788_vm1, %v3766_v31  ;;  %v3830_v30 = vld [vmem:[%s4178_s14 + $0x18] sm:$0xff]  }
  0x3c   : > { %3505 = vmatpush3.bf16.msra.mxu1 %v3768_v28  ;;  %3551 = vmatpush3.bf16.msra.mxu0 %v3769_v29  ;;  %v3828_v28 = vld [vmem:[%s4178_s14 + $0x10] sm:$0xff]   ;;  %v3831_v31 = vld [vmem:[%s4186_s8 + $0x18] sm:$0xff]  }
  0x3d   : > { %3476 = vmatprep.mubr.msk.bf16.mxu0 %vm788_vm1, %v3770_v32  ;;  %3492 = vmatprep.mubr.msk.bf16.mxu1 %vm788_vm1, %v3771_v33  ;;  %v3829_v29 = vld [vmem:[%s4186_s8 + $0x10] sm:$0xff]   ;;  %v3832_v32 = vld [vmem:[%s4178_s14 + $0x20] sm:$0xff]  }
  0x3e   : > { %3506 = vmatprep.subr.bf16.mxu1 %v3772_v34  ;;  %3552 = vmatprep.subr.bf16.mxu0 %v3775_v35  ;;  %v3833_v33 = vld [vmem:[%s4186_s8 + $0x20] sm:$0xff]  }
  0x40   : > { %3507 = vmatpush3.bf16.msra.mxu1 %v3772_v34  ;;  %3553 = vmatpush3.bf16.msra.mxu0 %v3775_v35  ;;  %v3834_v34 = vld [vmem:[%s4178_s14 + $0x28] sm:$0xff]  }
  0x41   : > { %3508 = vmatprep.subr.bf16.mxu1 %v3776_v36  ;;  %3554 = vmatprep.subr.bf16.mxu0 %v3777_v37  ;;  %v3835_v35 = vld [vmem:[%s4186_s8 + $0x28] sm:$0xff]  }
  0x43   : > { %3477 = vmatmul.mubr.msk.bf16.gmra.mxu0 %vm788_vm1, %v3773_v38  ;;  %3493 = vmatmul.mubr.msk.bf16.gmra.mxu1 %vm788_vm1, %v3774_v39  ;;  %v3838_v38 = vld [vmem:[%s4178_s14 + $0x38] sm:$0xff]  }
  0x44   : > { %3509 = vmatpush3.bf16.msra.mxu1 %v3776_v36  ;;  %3555 = vmatpush3.bf16.msra.mxu0 %v3777_v37  ;;  %v3836_v36 = vld [vmem:[%s4178_s14 + $0x30] sm:$0xff]   ;;  %v3839_v39 = vld [vmem:[%s4186_s8 + $0x38] sm:$0xff]  }
  0x45   : > { %3510 = vmatprep.mubr.msk.bf16.mxu1 %vm788_vm1, %v3778_v40  ;;  %3556 = vmatprep.mubr.msk.bf16.mxu0 %vm788_vm1, %v3779_v43  ;;  %v3837_v37 = vld [vmem:[%s4186_s8 + $0x30] sm:$0xff]   ;;  %v3840_v40 = vld [vmem:[%s4178_s14 + $0x40] sm:$0xff]   ;;  %v3843_v43 = vld [vmem:[%s4186_s8 + $0x48] sm:$0xff]  }
  0x46   : > { %3698 = vmatprep.subr.msk.bf16.mxu1 %vm837_vm0, %v3782_v41  ;;  %3699 = vmatprep.subr.msk.bf16.mxu0 %vm837_vm0, %v3783_v42  ;;  %v3841_v41 = vld [vmem:[%s4186_s8 + $0x40] sm:$0xff]   ;;  %v3842_v42 = vld [vmem:[%s4178_s14 + $0x48] sm:$0xff]  }
  0x4b   : > { %3511 = vmatmul.mubr.msk.bf16.vlgmr.msra.gmra.mxu1 %vm788_vm1, %v3780_v44  ;;  %3557 = vmatmul.mubr.msk.bf16.vlgmr.msra.gmra.mxu0 %vm788_vm1, %v3781_v45  ;;  %v3844_v44 = vld [vmem:[%s4178_s14 + $0x50] sm:$0xff]  }
  0x4c   : > { %3589 = vmatpush3.bf16.msra.mxu1 %v1956_v47  ;;  %3635 = vmatpush3.bf16.msra.mxu0 %v2365_v49  ;;  %v3845_v45 = vld [vmem:[%s4186_s8 + $0x50] sm:$0xff]   ;;  %v3847_v47 = vld [vmem:[%s4186_s8 + $0x58] sm:$0xff]   ;;  %v3849_v49 = vld [vmem:[%s4186_s8 + $0x60] sm:$0xff]  }
  0x4d   : > { %3514 = vmatprep.mubr.msk.bf16.mxu1 %vm788_vm1, %v3784_v46  ;;  %3560 = vmatprep.mubr.msk.bf16.mxu0 %vm788_vm1, %v3785_v48  ;;  %v3846_v46 = vld [vmem:[%s4178_s14 + $0x58] sm:$0xff]   ;;  %v3848_v48 = vld [vmem:[%s4178_s14 + $0x60] sm:$0xff]  }
  0x4e   : > { %3590 = vmatprep.subr.bf16.mxu1 %v3788_v50  ;;  %3636 = vmatprep.subr.bf16.mxu0 %v3789_v51 }
  0x50   : > { %3591 = vmatpush3.bf16.msra.mxu1 %v3788_v50  ;;  %3637 = vmatpush3.bf16.msra.mxu0 %v3789_v51  ;;  %v3850_v50 = vld [vmem:[%s4178_s14 + $0x68] sm:$0xff]  }
  0x51   : > { %3592 = vmatprep.subr.bf16.mxu1 %v3794_v52  ;;  %3638 = vmatprep.subr.bf16.mxu0 %v3795_v54  ;;  %v3851_v51 = vld [vmem:[%s4186_s8 + $0x68] sm:$0xff]  }
  0x53   : > { %3515 = vmatmul.mubr.msk.bf16.gmra.mxu1 %vm788_vm1, %v3786_v53  ;;  %3561 = vmatmul.mubr.msk.bf16.gmra.mxu0 %vm788_vm1, %v3787_v55  ;;  %v3853_v53 = vld [vmem:[%s4186_s8 + $0x70] sm:$0xff]   ;;  %v3855_v55 = vld [vmem:[%s4186_s8 + $0x78] sm:$0xff]  }
  0x54   : > { %3518 = vmatprep.mubr.msk.bf16.mxu1 %vm788_vm1, %v3790_v56  ;;  %3564 = vmatprep.mubr.msk.bf16.mxu0 %vm788_vm1, %v3791_v57 }
  0x55   : > { %3593 = vmatpush3.bf16.msra.mxu1 %v3794_v52  ;;  %3639 = vmatpush3.bf16.msra.mxu0 %v3795_v54  ;;  %v3852_v52 = vld [vmem:[%s4178_s14 + $0x70] sm:$0xff]   ;;  %v3854_v54 = vld [vmem:[%s4178_s14 + $0x78] sm:$0xff]  }
  0x56   : > { %3594 = vmatprep.subr.bf16.mxu1 %v3800_v58  ;;  %3640 = vmatprep.subr.bf16.mxu0 %v3801_v59 }
  0x59   : > { %3595 = vmatpush3.bf16.msra.mxu1 %v3800_v58  ;;  %3641 = vmatpush3.bf16.msra.mxu0 %v3801_v59 }
  0x5a   : > { %3596 = vmatprep.subr.bf16.mxu1 %v3806_v62  ;;  %3642 = vmatprep.subr.bf16.mxu0 %v3809_v63 }
  0x5b   : > { %3519 = vmatmul.mubr.msk.bf16.gmra.mxu1 %vm788_vm1, %v3792_v60  ;;  %3565 = vmatmul.mubr.msk.bf16.gmra.mxu0 %vm788_vm1, %v3793_v61 }
  0x5c   : > { %3522 = vmatprep.mubr.msk.bf16.mxu1 %vm788_vm1, %v3796_v0  ;;  %3568 = vmatprep.mubr.msk.bf16.mxu0 %vm788_vm1, %v3797_v1 }
  0x5d   : > { %3597 = vmatpush3.bf16.msra.mxu1 %v3806_v62  ;;  %3643 = vmatpush3.bf16.msra.mxu0 %v3809_v63 }
  0x5e   : > { %3598 = vmatprep.subr.bf16.mxu1 %v3812_v2  ;;  %3644 = vmatprep.subr.bf16.mxu0 %v3817_v3 }
  0x61   : > { %3599 = vmatpush3.bf16.msra.mxu1 %v3812_v2  ;;  %3645 = vmatpush3.bf16.msra.mxu0 %v3817_v3 }
  0x62   : > { %3600 = vmatprep.subr.bf16.mxu1 %v3820_v7  ;;  %3646 = vmatprep.subr.bf16.mxu0 %v3823_v8 }
  0x63   : > { %3523 = vmatmul.mubr.msk.bf16.gmra.mxu1 %vm788_vm1, %v3798_v4  ;;  %3569 = vmatmul.mubr.msk.bf16.gmra.mxu0 %vm788_vm1, %v3799_v5 }
  0x64   : > { %3526 = vmatprep.mubr.msk.bf16.mxu1 %vm788_vm1, %v3802_v6  ;;  %3572 = vmatprep.mubr.msk.bf16.mxu0 %vm788_vm1, %v3803_v9 }
  0x65   : > { %3601 = vmatpush3.bf16.msra.mxu1 %v3820_v7  ;;  %3647 = vmatpush3.bf16.msra.mxu0 %v3823_v8 }
  0x6b   : > { %3527 = vmatmul.mubr.msk.bf16.gmra.mxu1 %vm788_vm1, %v3804_v10  ;;  %3573 = vmatmul.mubr.msk.bf16.gmra.mxu0 %vm788_vm1, %v3805_v11 }
  0x6c   : > { %3530 = vmatprep.mubr.msk.bf16.mxu1 %vm788_vm1, %v3807_v12  ;;  %3576 = vmatprep.mubr.msk.bf16.mxu0 %vm788_vm1, %v3808_v13 }
  0x73   : > { %3531 = vmatmul.mubr.msk.bf16.gmra.mxu1 %vm788_vm1, %v3810_v14  ;;  %3577 = vmatmul.mubr.msk.bf16.gmra.mxu0 %vm788_vm1, %v3811_v15 }
  0x74   : > { %3534 = vmatprep.mubr.msk.bf16.mxu1 %vm788_vm1, %v3813_v16  ;;  %3580 = vmatprep.mubr.msk.bf16.mxu0 %vm788_vm1, %v3814_v17 }
  0x7b   : > { %3535 = vmatmul.mubr.msk.bf16.gmra.mxu1 %vm788_vm1, %v3815_v18  ;;  %3581 = vmatmul.mubr.msk.bf16.gmra.mxu0 %vm788_vm1, %v3816_v19 }
  0x7c   : > { %3538 = vmatprep.mubr.msk.bf16.mxu1 %vm788_vm1, %v3818_v20  ;;  %3584 = vmatprep.mubr.msk.bf16.mxu0 %vm788_vm1, %v3819_v21 }
  0x83   : > { %3539 = vmatmul.mubr.msk.bf16.gmra.mxu1 %vm788_vm1, %v3821_v22  ;;  %3585 = vmatmul.mubr.msk.bf16.gmra.mxu0 %vm788_vm1, %v3822_v23 }
  0x84   : > { %3602 = vmatprep.mubr.msk.bf16.mxu1 %vm788_vm1, %v3824_v24  ;;  %3648 = vmatprep.mubr.msk.bf16.mxu0 %vm788_vm1, %v3825_v25 }
  0x8b   : > { %3603 = vmatmul.mubr.msk.bf16.vlgmr.msra.gmra.mxu1 %vm788_vm1, %v3826_v26  ;;  %3649 = vmatmul.mubr.msk.bf16.vlgmr.msra.gmra.mxu0 %vm788_vm1, %v3827_v27 }
  0x8c   : > { %3606 = vmatprep.mubr.msk.bf16.mxu1 %vm788_vm1, %v3828_v28  ;;  %3652 = vmatprep.mubr.msk.bf16.mxu0 %vm788_vm1, %v3829_v29 }
  0x93   : > { %3607 = vmatmul.mubr.msk.bf16.gmra.mxu1 %vm788_vm1, %v3830_v30  ;;  %3653 = vmatmul.mubr.msk.bf16.gmra.mxu0 %vm788_vm1, %v3831_v31 }
  0x94   : > { %3610 = vmatprep.mubr.msk.bf16.mxu1 %vm788_vm1, %v3832_v32  ;;  %3656 = vmatprep.mubr.msk.bf16.mxu0 %vm788_vm1, %v3833_v33 }
  0x9b   : > { %3611 = vmatmul.mubr.msk.bf16.gmra.mxu1 %vm788_vm1, %v3834_v34  ;;  %3657 = vmatmul.mubr.msk.bf16.gmra.mxu0 %vm788_vm1, %v3835_v35 }
  0x9c   : > { %3614 = vmatprep.mubr.msk.bf16.mxu1 %vm788_vm1, %v3836_v36  ;;  %3660 = vmatprep.mubr.msk.bf16.mxu0 %vm788_vm1, %v3837_v37 }
  0xa3   : > { %3615 = vmatmul.mubr.msk.bf16.gmra.mxu1 %vm788_vm1, %v3838_v38  ;;  %3661 = vmatmul.mubr.msk.bf16.gmra.mxu0 %vm788_vm1, %v3839_v39 }
  0xa4   : > { %3618 = vmatprep.mubr.msk.bf16.mxu1 %vm788_vm1, %v3840_v40  ;;  %3664 = vmatprep.mubr.msk.bf16.mxu0 %vm788_vm1, %v3841_v41 }
  0xab   : > { %3619 = vmatmul.mubr.msk.bf16.gmra.mxu1 %vm788_vm1, %v3842_v42  ;;  %3665 = vmatmul.mubr.msk.bf16.gmra.mxu0 %vm788_vm1, %v3843_v43 }
  0xac   : > { %3622 = vmatprep.mubr.msk.bf16.mxu1 %vm788_vm1, %v3844_v44  ;;  %3668 = vmatprep.mubr.msk.bf16.mxu0 %vm788_vm1, %v3845_v45 }
  0xb3   : > { %3623 = vmatmul.mubr.msk.bf16.gmra.mxu1 %vm788_vm1, %v3846_v46  ;;  %3669 = vmatmul.mubr.msk.bf16.gmra.mxu0 %vm788_vm1, %v3847_v47 }
  0xb4   : > { %3626 = vmatprep.mubr.msk.bf16.mxu1 %vm788_vm1, %v3848_v48  ;;  %3672 = vmatprep.mubr.msk.bf16.mxu0 %vm788_vm1, %v3849_v49 }
  0xbb   : > { %3627 = vmatmul.mubr.msk.bf16.gmra.mxu1 %vm788_vm1, %v3850_v50  ;;  %3673 = vmatmul.mubr.msk.bf16.gmra.mxu0 %vm788_vm1, %v3851_v51 }
  0xbc   : > { %3630 = vmatprep.mubr.msk.bf16.mxu1 %vm788_vm1, %v3852_v52  ;;  %3676 = vmatprep.mubr.msk.bf16.mxu0 %vm788_vm1, %v3853_v53 }
  0xc3   : > { %3631 = vmatmul.mubr.msk.bf16.gmra.mxu1 %vm788_vm1, %v3854_v54  ;;  %3677 = vmatmul.mubr.msk.bf16.gmra.mxu0 %vm788_vm1, %v3855_v55 }
  0xeb   : > { %v4285_v56 = vpop.f32.mrf.mxu0  ;;  %v4287_v57 = vpop.f32.mrf.mxu1 }
  0xed   : > { %v4289_v58 = vpop.f32.mrf.mxu0  ;;  %v4291_v59 = vpop.f32.mrf.mxu1 }
  0xef   : > { %v4293_v60 = vpop.f32.mrf.mxu0  ;;  %v4295_v61 = vpop.f32.mrf.mxu1 }
  0xf1   : > { %v4297_v62 = vpop.f32.mrf.mxu0  ;;  %v4299_v63 = vpop.f32.mrf.mxu1 }
  0xf2   : > { %4702 = vst [vmem:[#allocation2_spill] sm:$0xff] %v4299_v63 }
  0xf3   : > { %v4301_v0 = vpop.f32.mrf.mxu0  ;;  %v4303_v1 = vpop.f32.mrf.mxu1 }
  0xf4   : > { %4703 = vst [vmem:[#allocation3_spill] sm:$0xff] %v4303_v1 }
  0xf5   : > { %v4305_v2 = vpop.f32.mrf.mxu0  ;;  %v4307_v3 = vpop.f32.mrf.mxu1 }
  0xf6   : > { %4704 = vst [vmem:[#allocation4_spill] sm:$0xff] %v4307_v3 }
  0xf7   : > { %v4309_v4 = vpop.f32.mrf.mxu0  ;;  %v4311_v5 = vpop.f32.mrf.mxu1 }
  0xf8   : > { %4705 = vst [vmem:[#allocation5_spill] sm:$0xff] %v4311_v5 }
  0xf9   : > { %v4313_v6 = vpop.f32.mrf.mxu0  ;;  %v4315_v7 = vpop.f32.mrf.mxu1 }
  0xfa   : > { %4706 = vst [vmem:[#allocation6_spill] sm:$0xff] %v4315_v7 }
  0xfb   : > { %v4317_v8 = vpop.f32.mrf.mxu0  ;;  %v4319_v9 = vpop.f32.mrf.mxu1 }
  0xfc   : > { %4707 = vst [vmem:[#allocation7_spill] sm:$0xff] %v4319_v9 }
  0xfd   : > { %v4321_v10 = vpop.f32.mrf.mxu0  ;;  %v4323_v11 = vpop.f32.mrf.mxu1 }
  0xfe   : > { %4708 = vst [vmem:[#allocation8_spill] sm:$0xff] %v4323_v11 }
  0xff   : > { %v4325_v12 = vpop.f32.mrf.mxu0  ;;  %v4327_v13 = vpop.f32.mrf.mxu1 }
 0x100   : > { %4709 = vst [vmem:[#allocation9_spill] sm:$0xff] %v4327_v13 }
 0x101   : > { %v4329_v14 = vpop.f32.mrf.mxu0  ;;  %v4331_v15 = vpop.f32.mrf.mxu1 }
 0x102   : > { %4710 = vst [vmem:[#allocation10_spill] sm:$0xff] %v4331_v15 }
 0x103   : > { %v4333_v16 = vpop.f32.mrf.mxu0  ;;  %v4335_v17 = vpop.f32.mrf.mxu1 }
 0x104   : > { %4711 = vst [vmem:[#allocation11_spill] sm:$0xff] %v4335_v17 }
 0x105   : > { %v4337_v18 = vpop.f32.mrf.mxu0  ;;  %v4339_v19 = vpop.f32.mrf.mxu1 }
 0x106   : > { %4712 = vst [vmem:[#allocation12_spill] sm:$0xff] %v4339_v19 }
 0x107   : > { %v4341_v20 = vpop.f32.mrf.mxu0  ;;  %v4343_v21 = vpop.f32.mrf.mxu1 }
 0x108   : > { %4713 = vst [vmem:[#allocation13_spill] sm:$0xff] %v4343_v21 }
 0x109   : > { %v4345_v22 = vpop.f32.mrf.mxu0  ;;  %v4347_v23 = vpop.f32.mrf.mxu1 }
 0x10a   : > { %4714 = vst [vmem:[#allocation14_spill] sm:$0xff] %v4347_v23 }
 0x10b   : > { %v3512_v24 = vpop.f32.mrf.mxu1  ;;  %v4349_v25 = vpop.f32.mrf.mxu0 }
 0x10d   : > { %v4351_v26 = vpop.f32.mrf.mxu1  ;;  %v4353_v27 = vpop.f32.mrf.mxu0 }
 0x10f   : > { %v4355_v28 = vpop.f32.mrf.mxu1  ;;  %v4357_v29 = vpop.f32.mrf.mxu0 }
 0x111   : > { %v4359_v30 = vpop.f32.mrf.mxu1  ;;  %v4361_v31 = vpop.f32.mrf.mxu0 }
 0x113   : > { %v4363_v32 = vpop.f32.mrf.mxu1  ;;  %v4365_v33 = vpop.f32.mrf.mxu0 }
 0x115   : > { %v4367_v34 = vpop.f32.mrf.mxu1  ;;  %v4369_v35 = vpop.f32.mrf.mxu0 }
 0x117   : > { %v4371_v36 = vpop.f32.mrf.mxu1  ;;  %v4373_v37 = vpop.f32.mrf.mxu0 }
 0x119   : > { %v4375_v38 = vpop.f32.mrf.mxu1  ;;  %v4377_v39 = vpop.f32.mrf.mxu0 }
 0x11b   : > { %v4379_v40 = vpop.f32.mrf.mxu1  ;;  %v4381_v41 = vpop.f32.mrf.mxu0 }
 0x11d   : > { %v4383_v42 = vpop.f32.mrf.mxu1  ;;  %v4385_v43 = vpop.f32.mrf.mxu0 }
 0x11f   : > { %v4387_v44 = vpop.f32.mrf.mxu1  ;;  %v4389_v45 = vpop.f32.mrf.mxu0 }
 0x121   : > { %v4391_v46 = vpop.f32.mrf.mxu1  ;;  %v4393_v47 = vpop.f32.mrf.mxu0 }
 0x123   : > { %v4395_v48 = vpop.f32.mrf.mxu1  ;;  %v4397_v49 = vpop.f32.mrf.mxu0 }
 0x125   : > { %v4399_v50 = vpop.f32.mrf.mxu1  ;;  %v4401_v51 = vpop.f32.mrf.mxu0 }
 0x127   : > { %v4403_v52 = vpop.f32.mrf.mxu1  ;;  %v4405_v53 = vpop.f32.mrf.mxu0 }
 0x129   : > { %v4407_v54 = vpop.f32.mrf.mxu1  ;;  %v4409_v55 = vpop.f32.mrf.mxu0 }
 0x12b   : > { %v4411_v23 = vpop.f32.mrf.mxu1  ;;  %v4413_v21 = vpop.f32.mrf.mxu0 }
 0x12d   : > { %v4415_v19 = vpop.f32.mrf.mxu1  ;;  %v4417_v17 = vpop.f32.mrf.mxu0 }
 0x12e   : > { %4715 = vst [vmem:[#allocation15_spill] sm:$0xff] %v4417_v17 }
 0x12f   : > { %v4419_v15 = vpop.f32.mrf.mxu1  ;;  %v4421_v13 = vpop.f32.mrf.mxu0 }
 0x130   : > { %4716 = vst [vmem:[#allocation16_spill] sm:$0xff] %v4419_v15  ;;  %4717 = vst [vmem:[#allocation17_spill] sm:$0xff] %v4421_v13 }
 0x131   : > { %v4423_v11 = vpop.f32.mrf.mxu1  ;;  %v4425_v9 = vpop.f32.mrf.mxu0 }
 0x132   : > { %4718 = vst [vmem:[#allocation18_spill] sm:$0xff] %v4423_v11  ;;  %4719 = vst [vmem:[#allocation19_spill] sm:$0xff] %v4425_v9 }
 0x133   : > { %v4427_v7 = vpop.f32.mrf.mxu1  ;;  %v4429_v5 = vpop.f32.mrf.mxu0 }
 0x134   : > { %4720 = vst [vmem:[#allocation20_spill] sm:$0xff] %v4427_v7  ;;  %4721 = vst [vmem:[#allocation21_spill] sm:$0xff] %v4429_v5 }
 0x135   : > { %v4431_v3 = vpop.f32.mrf.mxu1  ;;  %v4433_v1 = vpop.f32.mrf.mxu0 }
 0x136   : > { %4722 = vst [vmem:[#allocation22_spill] sm:$0xff] %v4431_v3  ;;  %4723 = vst [vmem:[#allocation23_spill] sm:$0xff] %v4433_v1 }
 0x137   : > { %v4435_v63 = vpop.f32.mrf.mxu1  ;;  %v4437_v17 = vpop.f32.mrf.mxu0 }
 0x138   : > { %4724 = vst [vmem:[#allocation24_spill] sm:$0xff] %v4435_v63  ;;  %4725 = vst [vmem:[#allocation25_spill] sm:$0xff] %v4437_v17 }
 0x139   : > { %v4439_v15 = vpop.f32.mrf.mxu1  ;;  %v4441_v13 = vpop.f32.mrf.mxu0 }
 0x13a   : > { %4726 = vst [vmem:[#allocation26_spill] sm:$0xff] %v4439_v15  ;;  %4727 = vst [vmem:[#allocation27_spill] sm:$0xff] %v4441_v13 }
 0x13b   : > { %v4443_v11 = vpop.f32.mrf.mxu1  ;;  %v4445_v9 = vpop.f32.mrf.mxu0 }
 0x13c   : > { %4728 = vst [vmem:[#allocation28_spill] sm:$0xff] %v4443_v11  ;;  %4729 = vst [vmem:[#allocation29_spill] sm:$0xff] %v4445_v9 }
 0x13d   : > { %v4447_v7 = vpop.f32.mrf.mxu1  ;;  %v4449_v5 = vpop.f32.mrf.mxu0 }
 0x13e   : > { %4730 = vst [vmem:[#allocation30_spill] sm:$0xff] %v4447_v7  ;;  %4731 = vst [vmem:[#allocation31_spill] sm:$0xff] %v4449_v5  ;;  %v1215_v5 = vadd.f32 %v3512_v24, %v4285_v56 }
 0x13f   : > { %v4451_v3 = vpop.f32.mrf.mxu1  ;;  %v4453_v1 = vpop.f32.mrf.mxu0 }
 0x140   : > { %4732 = vst [vmem:[#allocation32_spill] sm:$0xff] %v4451_v3  ;;  %4733 = vst [vmem:[#allocation33_spill] sm:$0xff] %v4453_v1 }
 0x141   : > { %v4455_v63 = vpop.f32.mrf.mxu1  ;;  %v4457_v17 = vpop.f32.mrf.mxu0 }
 0x142   : > { %4734 = vst [vmem:[#allocation34_spill] sm:$0xff] %v4455_v63  ;;  %4735 = vst [vmem:[#allocation35_spill] sm:$0xff] %v4457_v17  ;;  %v1207_v17 = vadd.f32 %v4351_v26, %v4289_v58  ;;  %v4490_v58 = vld [vmem:[%s4700_s6] ss:$0 sm:$0xff] }
 0x143   : > { %v4460_v15 = vpop.f32.mrf.mxu1  ;;  %v4462_v13 = vpop.f32.mrf.mxu0 }
 0x144   : > { %4736 = vst [vmem:[#allocation36_spill] sm:$0xff] %v4462_v13  ;;  %v1712_v13 = vadd.f32 %v4349_v25, %v1215_v5 }
 0x145   : > { %v4464_v11 = vpop.f32.mrf.mxu1  ;;  %v4466_v9 = vpop.f32.mrf.mxu0 }
 0x146   : > { %4737 = vst [vmem:[#allocation37_spill] sm:$0xff] %v4464_v11  ;;  %4738 = vst [vmem:[#allocation38_spill] sm:$0xff] %v4466_v9  ;;  %v1218_v11 = vadd.f32 %v4355_v28, %v4293_v60  ;;  %v1710_v9 = vadd.f32 %v4353_v27, %v1207_v17  ;;  %v1223_v17 = vadd.f32 %v4367_v34, %v4305_v2 }
 0x147   : > { %v4470_v3 = vpop.f32.mrf.mxu1  ;;  %v4472_v1 = vpop.f32.mrf.mxu0 }
 0x148   : > { %4739 = vst [vmem:[#allocation39_spill] sm:$0xff] %v4470_v3  ;;  %4740 = vst [vmem:[#allocation40_spill] sm:$0xff] %v4472_v1  ;;  %v1210_v1 = vadd.f32 %v4359_v30, %v4297_v62  ;;  %v1713_v60 = vadd.f32 %v4357_v29, %v1218_v11  ;;  %v1234_v11 = vadd.f32 %v4371_v36, %v4309_v4 }
 0x149   : > { %v4476_v63 = vpop.f32.mrf.mxu1  ;;  %v4478_v7 = vpop.f32.mrf.mxu0  ;;  %v1714_v34 = vadd.f32 %v4369_v35, %v1223_v17 }
 0x14a   : > { %4741 = vst [vmem:[#allocation41_spill] sm:$0xff] %v4476_v63  ;;  %4742 = vst [vmem:[#allocation42_spill] sm:$0xff] %v4478_v7  ;;  %v1231_v7 = vadd.f32 %v4363_v32, %v4301_v0  ;;  %v1711_v27 = vadd.f32 %v4361_v31, %v1210_v1  ;;  %v1226_v1 = vadd.f32 %v4375_v38, %v4313_v6 }
 0x14b   : > { %v3604_v56 = vpop.f32.mrf.mxu1  ;;  %v3650_v24 = vpop.f32.mrf.mxu0  ;;  %v1247_v6 = vadd.f32 %v4379_v40, %v4317_v8 }
 0x14c   : > { %v2121_v3 = vadd.f32 %v3604_v56, %v1712_v13  ;;  %v1716_v2 = vadd.f32 %v4365_v33, %v1231_v7  ;;  %v1717_v33 = vadd.f32 %v4373_v37, %v1234_v11 }
 0x14d   : > { %v1992_v5 = vpop.f32.mrf.mxu1  ;;  %v2401_v25 = vpop.f32.mrf.mxu0  ;;  %v1720_v11 = vadd.f32 %v4381_v41, %v1247_v6  ;;  %v1242_v41 = vadd.f32 %v4391_v46, %v4329_v14 }
 0x14e   : > { %v2530_v26 = vadd.f32 %v3650_v24, %v2121_v3  ;;  %v2119_v28 = vadd.f32 %v1992_v5, %v1710_v9 }
 0x14f   : > { %v3605_v62 = vpop.f32.mrf.mxu1  ;;  %v3651_v13 = vpop.f32.mrf.mxu0 }
 0x150   : > { %v2569_v30 = vadd.f32 %v4490_v58, %v2530_v26  ;;  %v2528_v56 = vadd.f32 %v2401_v25, %v2119_v28  ;;  %v2122_v63 = vadd.f32 %v3605_v62, %v1713_v60  ;;  %v1715_v62 = vadd.f32 %v4377_v39, %v1226_v1 }
 0x151   : > { %v1995_v3 = vpop.f32.mrf.mxu1  ;;  %v2404_v9 = vpop.f32.mrf.mxu0 }
 0x152   : > { %v2601_v29 = vmax.f32 %v2569_v30, 0.0  ;;  %v2567_v0 = vadd.f32 %v4490_v58, %v2528_v56  ;;  %v2531_v32 = vadd.f32 %v3651_v13, %v2122_v63  ;;  %v2120_v24 = vadd.f32 %v1995_v3, %v1711_v27 }
 0x153   : > { %v3608_v4 = vpop.f32.mrf.mxu1  ;;  %v3654_v31 = vpop.f32.mrf.mxu0  ;;  %v1239_v3 = vadd.f32 %v4383_v42, %v4321_v10 }
 0x154   : > { %v3305_v36 = vpack.c.bf16 %v2601_v29, %v2601_v29  ;;  %v2599_v5 = vmax.f32 %v2567_v0, 0.0  ;;  %v2570_v63 = vadd.f32 %v4490_v58, %v2531_v32  ;;  %v2529_v7 = vadd.f32 %v2404_v9, %v2120_v24 }
 0x155   : > { %v2125_v35 = vadd.f32 %v3608_v4, %v1716_v2  ;;  %v2008_v38 = vpop.f32.mrf.mxu1  ;;  %v2417_v25 = vpop.f32.mrf.mxu0  ;;  %v1250_v9 = vadd.f32 %v4387_v44, %v4325_v12 }
 0x156   : > { %2762 = vst.msk [vmem:[%s4509_s15 + $0x8] sm:$0xf] %vm2759_vm2, %v3305_v36  ;;  %v3303_v60 = vpack.c.bf16 %v2599_v5, %v2599_v5  ;;  %v2602_v26 = vmax.f32 %v2570_v63, 0.0  ;;  %v2568_v28 = vadd.f32 %v4490_v58, %v2529_v7  ;;  %v2123_v17 = vadd.f32 %v2008_v38, %v1714_v34 }
 0x157   : > { %v2534_v13 = vadd.f32 %v3654_v31, %v2125_v35  ;;  %v3609_v27 = vpop.f32.mrf.mxu1  ;;  %v3655_v30 = vpop.f32.mrf.mxu0  ;;  %v1718_v36 = vadd.f32 %v4385_v43, %v1239_v3  ;;  %v1721_v5 = vadd.f32 %v4389_v45, %v1250_v9  ;;  %v1263_v63 = vadd.f32 %v4395_v48, %v4333_v16 }
 0x158   : > { %2760 = vst.msk [vmem:[%s4509_s15] sm:$0xf] %vm2759_vm2, %v3303_v60  ;;  %v3306_v37 = vpack.c.bf16 %v2602_v26, %v2602_v26  ;;  %v2600_v8 = vmax.f32 %v2568_v28, 0.0  ;;  %v2532_v40 = vadd.f32 %v2417_v25, %v2123_v17  ;;  %v2126_v56 = vadd.f32 %v3609_v27, %v1717_v33 }
 0x159   : > { %v2573_v39 = vadd.f32 %v4490_v58, %v2534_v13  ;;  %v2011_v29 = vpop.f32.mrf.mxu1  ;;  %v2420_v0 = vpop.f32.mrf.mxu0  ;;  %v1719_v25 = vadd.f32 %v4393_v47, %v1242_v41  ;;  %v1255_v43 = vadd.f32 %v4399_v50, %v4337_v18 }
 0x15a   : > { %2763 = vst.msk [vmem:[%s4509_s15 + $0xc] sm:$0xf] %vm2759_vm2, %v3306_v37  ;;  %v3304_v32 = vpack.c.bf16 %v2600_v8, %v2600_v8  ;;  %v2571_v24 = vadd.f32 %v4490_v58, %v2532_v40  ;;  %v2535_v2 = vadd.f32 %v3655_v30, %v2126_v56  ;;  %v2124_v34 = vadd.f32 %v2011_v29, %v1715_v62 }
 0x15b   : > { %v2605_v1 = vmax.f32 %v2573_v39, 0.0  ;;  %v3612_v4 = vpop.f32.mrf.mxu1  ;;  %v3658_v10 = vpop.f32.mrf.mxu0  ;;  %v1724_v62 = vadd.f32 %v4397_v49, %v1263_v63  ;;  %v1722_v8 = vadd.f32 %v4401_v51, %v1255_v43  ;;  %v1266_v40 = vadd.f32 %v4403_v52, %v4341_v20 }
 0x15c   : > { %2761 = vst.msk [vmem:[%s4509_s15 + $0x4] sm:$0xf] %vm2759_vm2, %v3304_v32  ;;  %v2603_v12 = vmax.f32 %v2571_v24, 0.0  ;;  %v2574_v42 = vadd.f32 %v4490_v58, %v2535_v2  ;;  %v2533_v44 = vadd.f32 %v2420_v0, %v2124_v34  ;;  %v2129_v31 = vadd.f32 %v3612_v4, %v1720_v11 }
 0x15d   : > { %v3309_v14 = vpack.c.bf16 %v2605_v1, %v2605_v1  ;;  %v2024_v46 = vpop.f32.mrf.mxu1  ;;  %v2433_v7 = vpop.f32.mrf.mxu0  ;;  %v1258_v56 = vadd.f32 %v4407_v54, %v4345_v22  ;;  %v1279_v51 = vadd.f32 %v4411_v23, %v4287_v57  ;;  %v1725_v34 = vadd.f32 %v4405_v53, %v1266_v40  ;;  %v4751_v40 = vld [vmem:[#allocation22_spill] sm:$0xff] }
 0x15e   : > { %v3307_v33 = vpack.c.bf16 %v2603_v12, %v2603_v12  ;;  %v2606_v6 = vmax.f32 %v2574_v42, 0.0  ;;  %v2572_v35 = vadd.f32 %v4490_v58, %v2533_v44  ;;  %v2538_v38 = vadd.f32 %v3658_v10, %v2129_v31 }
 0x15f   : > { %2766 = vst.msk [vmem:[%s4509_s15 + $0x18] sm:$0xf] %vm2759_vm2, %v3309_v14  ;;  %v2127_v45 = vadd.f32 %v2024_v46, %v1718_v36  ;;  %v3613_v60 = vpop.f32.mrf.mxu1  ;;  %v3659_v26 = vpop.f32.mrf.mxu0  ;;  %v1723_v41 = vadd.f32 %v4409_v55, %v1258_v56  ;;  %v1271_v1 = vadd.f32 %v4415_v19, %v4291_v59  ;;  %v1728_v31 = vadd.f32 %v4413_v21, %v1279_v51  ;;  %v4743_v36 = vld [vmem:[#allocation16_spill] sm:$0xff]  ;;  %v4752_v51 = vld [vmem:[#allocation19_spill] sm:$0xff] }
 0x160   : > { %2764 = vst.msk [vmem:[%s4509_s15 + $0x10] sm:$0xf] %vm2759_vm2, %v3307_v33  ;;  %v3310_v16 = vpack.c.bf16 %v2606_v6, %v2606_v6  ;;  %v2604_v48 = vmax.f32 %v2572_v35, 0.0  ;;  %v2577_v28 = vadd.f32 %v4490_v58, %v2538_v38  ;;  %v2130_v17 = vadd.f32 %v3613_v60, %v1721_v5 }
 0x161   : > { %v2536_v13 = vadd.f32 %v2433_v7, %v2127_v45  ;;  %v2027_v47 = vpop.f32.mrf.mxu1  ;;  %v2436_v27 = vpop.f32.mrf.mxu0  ;;  %v1282_v53 = vadd.f32 %v4743_v36, %v4295_v61  ;;  %v4744_v7 = vld [vmem:[#allocation15_spill] sm:$0xff]  ;;  %v4745_v45 = vld [vmem:[#allocation17_spill] sm:$0xff] }
 0x162   : > { %2767 = vst.msk [vmem:[%s4509_s15 + $0x1c] sm:$0xf] %vm2759_vm2, %v3310_v16  ;;  %v3308_v18 = vpack.c.bf16 %v2604_v48, %v2604_v48  ;;  %v2609_v50 = vmax.f32 %v2577_v28, 0.0  ;;  %v2539_v30 = vadd.f32 %v3659_v26, %v2130_v17  ;;  %v2128_v37 = vadd.f32 %v2027_v47, %v1719_v25  ;;  %v4746_v26 = vld [vmem:[#allocation2_spill] sm:$0xff]  ;;  %v4748_v28 = vld [vmem:[#allocation3_spill] sm:$0xff]  ;;  %v4749_v17 = vld [vmem:[#allocation20_spill] sm:$0xff] }
 0x163   : > { %v2575_v49 = vadd.f32 %v4490_v58, %v2536_v13  ;;  %v3616_v11 = vpop.f32.mrf.mxu1  ;;  %v3662_v3 = vpop.f32.mrf.mxu0  ;;  %v1726_v33 = vadd.f32 %v4744_v7, %v1271_v1  ;;  %v1729_v60 = vadd.f32 %v4745_v45, %v1282_v53  ;;  %v4747_v16 = vld [vmem:[#allocation18_spill] sm:$0xff]  ;;  %v4761_v45 = vld [vmem:[#allocation7_spill] sm:$0xff] }
 0x164   : > { %2765 = vst.msk [vmem:[%s4509_s15 + $0x14] sm:$0xf] %vm2759_vm2, %v3308_v18  ;;  %v3313_v9 = vpack.c.bf16 %v2609_v50, %v2609_v50  ;;  %v2578_v39 = vadd.f32 %v4490_v58, %v2539_v30  ;;  %v2537_v29 = vadd.f32 %v2436_v27, %v2128_v37  ;;  %v2133_v0 = vadd.f32 %v3616_v11, %v1724_v62 }
 0x165   : > { %v2607_v32 = vmax.f32 %v2575_v49, 0.0  ;;  %v2040_v24 = vpop.f32.mrf.mxu1  ;;  %v2449_v20 = vpop.f32.mrf.mxu0  ;;  %v1274_v48 = vadd.f32 %v4747_v16, %v4746_v26  ;;  %v1295_v62 = vadd.f32 %v4749_v17, %v4748_v28  ;;  %v4763_v16 = vld [vmem:[#allocation8_spill] sm:$0xff] }
 0x166   : > { %2770 = vst.msk [vmem:[%s4509_s15 + $0x28] sm:$0xf] %vm2759_vm2, %v3313_v9  ;;  %v2610_v22 = vmax.f32 %v2578_v39, 0.0  ;;  %v2576_v52 = vadd.f32 %v4490_v58, %v2537_v29  ;;  %v2542_v54 = vadd.f32 %v3662_v3, %v2133_v0  ;;  %v2131_v2 = vadd.f32 %v2040_v24, %v1722_v8  ;;  %v4750_v8 = vld [vmem:[#allocation4_spill] sm:$0xff]  ;;  %v4753_v24 = vld [vmem:[#allocation21_spill] sm:$0xff] }
 0x167   : > { %v3311_v57 = vpack.c.bf16 %v2607_v32, %v2607_v32  ;;  %v3617_v23 = vpop.f32.mrf.mxu1  ;;  %v3663_v4 = vpop.f32.mrf.mxu0  ;;  %v1287_v56 = vadd.f32 %v4751_v40, %v4750_v8  ;;  %v1727_v32 = vadd.f32 %v4752_v51, %v1274_v48  ;;  %v4764_v48 = vld [vmem:[#allocation30_spill] sm:$0xff]  ;;  %v4768_v51 = vld [vmem:[#allocation31_spill] sm:$0xff] }
 0x168   : > { %v3314_v10 = vpack.c.bf16 %v2610_v22, %v2610_v22  ;;  %v2608_v12 = vmax.f32 %v2576_v52, 0.0  ;;  %v2581_v42 = vadd.f32 %v4490_v58, %v2542_v54  ;;  %v2540_v44 = vadd.f32 %v2449_v20, %v2131_v2  ;;  %v4754_v22 = vld [vmem:[#allocation5_spill] sm:$0xff]  ;;  %v4755_v52 = vld [vmem:[#allocation24_spill] sm:$0xff] }
 0x169   : > { %2768 = vst.msk [vmem:[%s4509_s15 + $0x20] sm:$0xf] %vm2759_vm2, %v3311_v57  ;;  %v2134_v55 = vadd.f32 %v3617_v23, %v1725_v34  ;;  %v2043_v5 = vpop.f32.mrf.mxu1  ;;  %v2452_v63 = vpop.f32.mrf.mxu0  ;;  %v1732_v20 = vadd.f32 %v4753_v24, %v1295_v62  ;;  %v1298_v54 = vadd.f32 %v4755_v52, %v4754_v22  ;;  %v1303_v28 = vadd.f32 %v4764_v48, %v4763_v16  ;;  %v4769_v24 = vld [vmem:[#allocation10_spill] sm:$0xff] }
 0x16a   : > { %2771 = vst.msk [vmem:[%s4509_s15 + $0x2c] sm:$0xf] %vm2759_vm2, %v3314_v10  ;;  %v3312_v59 = vpack.c.bf16 %v2608_v12, %v2608_v12  ;;  %v2613_v19 = vmax.f32 %v2581_v42, 0.0  ;;  %v2579_v14 = vadd.f32 %v4490_v58, %v2540_v44  ;;  %v2132_v46 = vadd.f32 %v2043_v5, %v1723_v41  ;;  %v4756_v10 = vld [vmem:[#allocation23_spill] sm:$0xff]  ;;  %v4757_v42 = vld [vmem:[#allocation6_spill] sm:$0xff] }
 0x16b   : > { %v2543_v6 = vadd.f32 %v3663_v4, %v2134_v55  ;;  %v3620_v21 = vpop.f32.mrf.mxu1  ;;  %v3666_v35 = vpop.f32.mrf.mxu0  ;;  %v1730_v12 = vadd.f32 %v4756_v10, %v1287_v56  ;;  %v4758_v44 = vld [vmem:[#allocation26_spill] sm:$0xff]  ;;  %v4772_v10 = vld [vmem:[#allocation11_spill] sm:$0xff] }
 0x16c   : > { %2769 = vst.msk [vmem:[%s4509_s15 + $0x24] sm:$0xf] %vm2759_vm2, %v3312_v59  ;;  %v3317_v61 = vpack.c.bf16 %v2613_v19, %v2613_v19  ;;  %v2611_v38 = vmax.f32 %v2579_v14, 0.0  ;;  %v2541_v25 = vadd.f32 %v2452_v63, %v2132_v46  ;;  %v2137_v43 = vadd.f32 %v3620_v21, %v1728_v31  ;;  %v4759_v14 = vld [vmem:[#allocation25_spill] sm:$0xff] }
 0x16d   : > { %v2582_v13 = vadd.f32 %v4490_v58, %v2543_v6  ;;  %v2056_v47 = vpop.f32.mrf.mxu1  ;;  %v2465_v27 = vpop.f32.mrf.mxu0  ;;  %v1290_v31 = vadd.f32 %v4758_v44, %v4757_v42  ;;  %v1733_v46 = vadd.f32 %v4759_v14, %v1298_v54 }
 0x16e   : > { %2774 = vst.msk [vmem:[%s4509_s15 + $0x38] sm:$0xf] %vm2759_vm2, %v3317_v61  ;;  %v3315_v18 = vpack.c.bf16 %v2611_v38, %v2611_v38  ;;  %v2580_v50 = vadd.f32 %v4490_v58, %v2541_v25  ;;  %v2546_v30 = vadd.f32 %v3666_v35, %v2137_v43  ;;  %v2135_v37 = vadd.f32 %v2056_v47, %v1726_v33  ;;  %v4760_v25 = vld [vmem:[#allocation27_spill] sm:$0xff] }
 0x16f   : > { %v2614_v49 = vmax.f32 %v2582_v13, 0.0  ;;  %v3621_v11 = vpop.f32.mrf.mxu1  ;;  %v3667_v3 = vpop.f32.mrf.mxu0  ;;  %v1731_v43 = vadd.f32 %v4760_v25, %v1290_v31 }
 0x170   : > { %2772 = vst.msk [vmem:[%s4509_s15 + $0x30] sm:$0xf] %vm2759_vm2, %v3315_v18  ;;  %v2612_v9 = vmax.f32 %v2580_v50, 0.0  ;;  %v2585_v39 = vadd.f32 %v4490_v58, %v2546_v30  ;;  %v2544_v29 = vadd.f32 %v2465_v27, %v2135_v37  ;;  %v2138_v0 = vadd.f32 %v3621_v11, %v1729_v60  ;;  %v4762_v60 = vld [vmem:[#allocation28_spill] sm:$0xff]  ;;  %v4765_v30 = vld [vmem:[#allocation9_spill] sm:$0xff] }
 0x171   : > { %v3318_v2 = vpack.c.bf16 %v2614_v49, %v2614_v49  ;;  %v2059_v34 = vpop.f32.mrf.mxu1  ;;  %v2468_v41 = vpop.f32.mrf.mxu0  ;;  %v1311_v26 = vadd.f32 %v4762_v60, %v4761_v45  ;;  %v4766_v37 = vld [vmem:[#allocation32_spill] sm:$0xff]  ;;  %v4778_v45 = vld [vmem:[#allocation39_spill] sm:$0xff] }
 0x172   : > { %v3316_v1 = vpack.c.bf16 %v2612_v9, %v2612_v9  ;;  %v2617_v57 = vmax.f32 %v2585_v39, 0.0  ;;  %v2583_v23 = vadd.f32 %v4490_v58, %v2544_v29  ;;  %v2547_v4 = vadd.f32 %v3667_v3, %v2138_v0  ;;  %v4767_v29 = vld [vmem:[#allocation29_spill] sm:$0xff] }
 0x173   : > { %2775 = vst.msk [vmem:[%s4509_s15 + $0x3c] sm:$0xf] %vm2759_vm2, %v3318_v2  ;;  %v2136_v36 = vadd.f32 %v2059_v34, %v1727_v32  ;;  %v3624_v53 = vpop.f32.mrf.mxu1  ;;  %v3670_v55 = vpop.f32.mrf.mxu0  ;;  %v1314_v8 = vadd.f32 %v4766_v37, %v4765_v30  ;;  %v1736_v0 = vadd.f32 %v4767_v29, %v1311_v26  ;;  %v1734_v32 = vadd.f32 %v4768_v51, %v1303_v28 }
 0x174   : > { %2773 = vst.msk [vmem:[%s4509_s15 + $0x34] sm:$0xf] %vm2759_vm2, %v3316_v1  ;;  %v3321_v5 = vpack.c.bf16 %v2617_v57, %v2617_v57  ;;  %v2615_v63 = vmax.f32 %v2583_v23, 0.0  ;;  %v2586_v59 = vadd.f32 %v4490_v58, %v2547_v4  ;;  %v2141_v19 = vadd.f32 %v3624_v53, %v1732_v20  ;;  %v4770_v20 = vld [vmem:[#allocation34_spill] sm:$0xff]  ;;  %v4771_v23 = vld [vmem:[#allocation33_spill] sm:$0xff] }
 0x175   : > { %v2545_v7 = vadd.f32 %v2468_v41, %v2136_v36  ;;  %v2072_v33 = vpop.f32.mrf.mxu1  ;;  %v2481_v6 = vpop.f32.mrf.mxu0  ;;  %v1306_v22 = vadd.f32 %v4770_v20, %v4769_v24  ;;  %v1737_v4 = vadd.f32 %v4771_v23, %v1314_v8 }
 0x176   : > { %2778 = vst.msk [vmem:[%s4509_s15 + $0x48] sm:$0xf] %vm2759_vm2, %v3321_v5  ;;  %v3319_v21 = vpack.c.bf16 %v2615_v63, %v2615_v63  ;;  %v2618_v35 = vmax.f32 %v2586_v59, 0.0  ;;  %v2550_v61 = vadd.f32 %v3670_v55, %v2141_v19  ;;  %v2139_v38 = vadd.f32 %v2072_v33, %v1730_v12  ;;  %v4773_v63 = vld [vmem:[#allocation35_spill] sm:$0xff] }
 0x177   : > { %v2584_v17 = vadd.f32 %v4490_v58, %v2545_v7  ;;  %v3625_v62 = vpop.f32.mrf.mxu1  ;;  %v3671_v13 = vpop.f32.mrf.mxu0  ;;  %v1327_v12 = vadd.f32 %v4460_v15, %v4772_v10  ;;  %v1735_v59 = vadd.f32 %v4773_v63, %v1306_v22 }
 0x178   : > { %2776 = vst.msk [vmem:[%s4509_s15 + $0x40] sm:$0xf] %vm2759_vm2, %v3319_v21  ;;  %v3322_v47 = vpack.c.bf16 %v2618_v35, %v2618_v35  ;;  %v2589_v27 = vadd.f32 %v4490_v58, %v2550_v61  ;;  %v2548_v18 = vadd.f32 %v2481_v6, %v2139_v38  ;;  %v2142_v50 = vadd.f32 %v3625_v62, %v1733_v46  ;;  %v4774_v21 = vld [vmem:[#allocation36_spill] sm:$0xff]  ;;  %v4776_v38 = vld [vmem:[#allocation37_spill] sm:$0xff] }
 0x179   : > { %v2616_v40 = vmax.f32 %v2584_v17, 0.0  ;;  %v2075_v56 = vpop.f32.mrf.mxu1  ;;  %v2484_v49 = vpop.f32.mrf.mxu0  ;;  %v1740_v35 = vadd.f32 %v4774_v21, %v1327_v12  ;;  %v4775_v61 = vld [vmem:[#allocation12_spill] sm:$0xff] }
 0x17a   : > { %2779 = vst.msk [vmem:[%s4509_s15 + $0x4c] sm:$0xf] %vm2759_vm2, %v3322_v47  ;;  %v2621_v11 = vmax.f32 %v2589_v27, 0.0  ;;  %v2587_v3 = vadd.f32 %v4490_v58, %v2548_v18  ;;  %v2551_v9 = vadd.f32 %v3671_v13, %v2142_v50  ;;  %v2140_v39 = vadd.f32 %v2075_v56, %v1731_v43  ;;  %v4777_v43 = vld [vmem:[#allocation13_spill] sm:$0xff]  ;;  %v4779_v47 = vld [vmem:[#allocation14_spill] sm:$0xff] }
 0x17b   : > { %v3320_v52 = vpack.c.bf16 %v2616_v40, %v2616_v40  ;;  %v3628_v54 = vpop.f32.mrf.mxu1  ;;  %v3674_v2 = vpop.f32.mrf.mxu0  ;;  %v1319_v25 = vadd.f32 %v4776_v38, %v4775_v61  ;;  %v1330_v60 = vadd.f32 %v4778_v45, %v4777_v43  ;;  %v4780_v27 = vld [vmem:[#allocation41_spill] sm:$0xff] }
 0x17c   : > { %v3325_v34 = vpack.c.bf16 %v2621_v11, %v2621_v11  ;;  %v2619_v41 = vmax.f32 %v2587_v3, 0.0  ;;  %v2590_v1 = vadd.f32 %v4490_v58, %v2551_v9  ;;  %v2549_v57 = vadd.f32 %v2484_v49, %v2140_v39  ;;  %v4781_v11 = vld [vmem:[#allocation38_spill] sm:$0xff]  ;;  %v4782_v9 = vld [vmem:[#allocation40_spill] sm:$0xff] }
 0x17d   : > { %2777 = vst.msk [vmem:[%s4509_s15 + $0x44] sm:$0xf] %vm2759_vm2, %v3320_v52  ;;  %v2145_v42 = vadd.f32 %v3628_v54, %v1736_v0  ;;  %v2088_v44 = vpop.f32.mrf.mxu1  ;;  %v2497_v31 = vpop.f32.mrf.mxu0  ;;  %v1322_v18 = vadd.f32 %v4780_v27, %v4779_v47  ;;  %v1738_v3 = vadd.f32 %v4781_v11, %v1319_v25  ;;  %v1741_v39 = vadd.f32 %v4782_v9, %v1330_v60  ;;  %v4783_v52 = vld [vmem:[#allocation42_spill] sm:$0xff] }
 0x17e   : > { %2782 = vst.msk [vmem:[%s4509_s15 + $0x58] sm:$0xf] %vm2759_vm2, %v3325_v34  ;;  %v3323_v36 = vpack.c.bf16 %v2619_v41, %v2619_v41  ;;  %v2622_v53 = vmax.f32 %v2590_v1, 0.0  ;;  %v2588_v55 = vadd.f32 %v4490_v58, %v2549_v57  ;;  %v2143_v5 = vadd.f32 %v2088_v44, %v1734_v32 }
 0x17f   : > { %v2554_v19 = vadd.f32 %v3674_v2, %v2145_v42  ;;  %v3629_v14 = vpop.f32.mrf.mxu1  ;;  %v3675_v46 = vpop.f32.mrf.mxu0  ;;  %v1739_v54 = vadd.f32 %v4783_v52, %v1322_v18 }
 0x180   : > { %2780 = vst.msk [vmem:[%s4509_s15 + $0x50] sm:$0xf] %vm2759_vm2, %v3323_v36  ;;  %v3326_v15 = vpack.c.bf16 %v2622_v53, %v2622_v53  ;;  %v2620_v7 = vmax.f32 %v2588_v55, 0.0  ;;  %v2552_v33 = vadd.f32 %v2497_v31, %v2143_v5  ;;  %v2146_v6 = vadd.f32 %v3629_v14, %v1737_v4 }
 0x181   : > { %v2593_v26 = vadd.f32 %v4490_v58, %v2554_v19  ;;  %v2091_v16 = vpop.f32.mrf.mxu1  ;;  %v2500_v48 = vpop.f32.mrf.mxu0 }
 0x182   : > { %2783 = vst.msk [vmem:[%s4509_s15 + $0x5c] sm:$0xf] %vm2759_vm2, %v3326_v15  ;;  %v3324_v28 = vpack.c.bf16 %v2620_v7, %v2620_v7  ;;  %v2591_v17 = vadd.f32 %v4490_v58, %v2552_v33  ;;  %v2555_v62 = vadd.f32 %v3675_v46, %v2146_v6  ;;  %v2144_v13 = vadd.f32 %v2091_v16, %v1735_v59 }
 0x183   : > { %v2625_v50 = vmax.f32 %v2593_v26, 0.0  ;;  %v3632_v30 = vpop.f32.mrf.mxu1  ;;  %v3678_v37 = vpop.f32.mrf.mxu0 }
 0x184   : > { %2781 = vst.msk [vmem:[%s4509_s15 + $0x54] sm:$0xf] %vm2759_vm2, %v3324_v28  ;;  %v2623_v8 = vmax.f32 %v2591_v17, 0.0  ;;  %v2594_v40 = vadd.f32 %v4490_v58, %v2555_v62  ;;  %v2553_v56 = vadd.f32 %v2500_v48, %v2144_v13  ;;  %v2149_v49 = vadd.f32 %v3632_v30, %v1740_v35 }
 0x185   : > { %v3329_v29 = vpack.c.bf16 %v2625_v50, %v2625_v50  ;;  %v2104_v0 = vpop.f32.mrf.mxu1  ;;  %v2513_v51 = vpop.f32.mrf.mxu0 }
 0x186   : > { %v3327_v32 = vpack.c.bf16 %v2623_v8, %v2623_v8  ;;  %v2626_v24 = vmax.f32 %v2594_v40, 0.0  ;;  %v2592_v20 = vadd.f32 %v4490_v58, %v2553_v56  ;;  %v2558_v22 = vadd.f32 %v3678_v37, %v2149_v49 }
 0x187   : > { %2786 = vst.msk [vmem:[%s4509_s15 + $0x68] sm:$0xf] %vm2759_vm2, %v3329_v29  ;;  %v2147_v2 = vadd.f32 %v2104_v0, %v1738_v3  ;;  %v3633_v34 = vpop.f32.mrf.mxu1  ;;  %v3679_v41 = vpop.f32.mrf.mxu0 }
 0x188   : > { %2784 = vst.msk [vmem:[%s4509_s15 + $0x60] sm:$0xf] %vm2759_vm2, %v3327_v32  ;;  %v3330_v1 = vpack.c.bf16 %v2626_v24, %v2626_v24  ;;  %v2624_v57 = vmax.f32 %v2592_v20, 0.0  ;;  %v2597_v23 = vadd.f32 %v4490_v58, %v2558_v22  ;;  %v2150_v4 = vadd.f32 %v3633_v34, %v1741_v39 }
 0x189   : > { %v2556_v10 = vadd.f32 %v2513_v51, %v2147_v2  ;;  %v2107_v12 = vpop.f32.mrf.mxu1  ;;  %v2516_v55 = vpop.f32.mrf.mxu0 }
 0x18a   : > { %2787 = vst.msk [vmem:[%s4509_s15 + $0x6c] sm:$0xf] %vm2759_vm2, %v3330_v1  ;;  %v3328_v42 = vpack.c.bf16 %v2624_v57, %v2624_v57  ;;  %v2629_v44 = vmax.f32 %v2597_v23, 0.0  ;;  %v2559_v31 = vadd.f32 %v3679_v41, %v2150_v4  ;;  %v2148_v36 = vadd.f32 %v2107_v12, %v1739_v54 }
 0x18b   : > { %v2595_v53 = vadd.f32 %v4490_v58, %v2556_v10 }
 0x18c   : > { %2785 = vst.msk [vmem:[%s4509_s15 + $0x64] sm:$0xf] %vm2759_vm2, %v3328_v42  ;;  %v3333_v5 = vpack.c.bf16 %v2629_v44, %v2629_v44  ;;  %v2598_v63 = vadd.f32 %v4490_v58, %v2559_v31  ;;  %v2557_v59 = vadd.f32 %v2516_v55, %v2148_v36 }
 0x18d   : > { %v2627_v19 = vmax.f32 %v2595_v53, 0.0 }
 0x18e   : > { %2790 = vst.msk [vmem:[%s4509_s15 + $0x78] sm:$0xf] %vm2759_vm2, %v3333_v5  ;;  %v2630_v14 = vmax.f32 %v2598_v63, 0.0  ;;  %v2596_v46 = vadd.f32 %v4490_v58, %v2557_v59 }
 0x18f   : > { %v3331_v15 = vpack.c.bf16 %v2627_v19, %v2627_v19 }
 0x190   : > { %v3334_v7 = vpack.c.bf16 %v2630_v14, %v2630_v14  ;;  %v2628_v33 = vmax.f32 %v2596_v46, 0.0 }
 0x191   : > { %2788 = vst.msk [vmem:[%s4509_s15 + $0x70] sm:$0xf] %vm2759_vm2, %v3331_v15 }
 0x192   : > { %2791 = vst.msk [vmem:[%s4509_s15 + $0x7c] sm:$0xf] %vm2759_vm2, %v3334_v7  ;;  %v3332_v6 = vpack.c.bf16 %v2628_v33, %v2628_v33 }
 0x194   : > { %2789 = vst.msk [vmem:[%s4509_s15 + $0x74] sm:$0xf] %vm2759_vm2, %v3332_v6 }
 0x195 PF: > { %s17_s28 = sadd.s32 1, %s3894_s28   ;;  %s4784_s24 = smov %s3886_s26 }
 0x196   : > { %p14_p12 = scmp.ge.s32.totalorder %s17_s28, 34   ;;  %s4785_s25 = smov %s3890_s27 }
 0x197   : > { %s4786_s26 = smov %s4789_s29  ;;  %s4787_s27 = smov %s4793_s30 }
 0x198   :  { %16 = sbr.rel (!%p14_p12) target bundleno = 3 (0x3), region = 94 }

// kernel: _lambda_.10
= control target key start
LH: loop header
LB: loop body
LE: loop exit
PB: predicated region body
PF: predicated region fallthrough
CT: control target
= control target key end

     0   :  { %s1404_s18 = smov 0   ;;  %s1406_s19 = smov 0   ;;  %s1579_s0 = inlined_call_operand.vmem [shape: bf16[2,10,64,72], index: 0, kind: input, shape index: {}, may-alias: {0,1,2}]   ;;  %s1580_s1 = inlined_call_operand.vmem [shape: bf16[2,10,64,72], index: 1, kind: input, shape index: {}, may-alias: {0,1,2}]   ;;  %s1581_s2 = inlined_call_operand.vmem [shape: bf16[2,10,64,72], index: 2, kind: input, shape index: {}, may-alias: {0,1,2}]   ;;  %s1582_s3 = inlined_call_operand.vmem [shape: bf16[3,72,8], index: 3, kind: input, shape index: {}]   ;;  %s1583_s4 = inlined_call_operand.vmem [shape: f32[1,8], index: 4, kind: input, shape index: {}]   ;;  %s1584_s5 = inlined_call_operand.vmem [shape: bf16[2,8,64,8], index: 5, kind: output, shape index: {}]  }
   0x1   :  { %s1408_s20 = smov 0   ;;  %s1410_s21 = smov 0  }
   0x2   :  { %s1412_s22 = smov 0  }
   0x3 LB: > { %s30_s23 = sadd.s32 1, %s1364_s20  ;;  %s34_s24 = sadd.s32 1, %s1368_s21  ;;  %s1372_s22 = sphi %s1412_s22, %s15_s22   ;;  %s1368_s21 = sphi %s1410_s21, %s1588_s21   ;;  %s1364_s20 = sphi %s1408_s20, %s1587_s20   ;;  %s1360_s19 = sphi %s1406_s19, %s1586_s19   ;;  %s1356_s18 = sphi %s1404_s18, %s1585_s18  }
   0x4   : > { %p32_p0 = scmp.ge.s32.totalorder %s30_s23, 8  ;;  %p1085_p1 = scmp.ge.s32.totalorder %s1372_s22, 1 }
   0x5   : > { %p277_p2 = scmp.lt.s32.totalorder %s1372_s22, 17 }
   0x6   : > { %s1590_s23 = smov (%p32_p0, %s30_s23), 0  ;;  %s1592_s24 = smov (!%p32_p0, %s34_s24), %s1368_s21 }
   0x7   : > { %p278_p3 = pnand %p1085_p1, %p277_p2  ;;  %p36_p4 = scmp.ge.s32.totalorder %s1592_s24, 2 }
   0x8   : > { %p350_p5 = scmp.lt.s32.totalorder (!%p278_p3), %s1360_s19, 1  ;;  %s363_s12 = sadd.s32 (!%p278_p3), 1, %s1356_s18 }
   0x9   : > { %s1594_s24 = smov (%p36_p4, %s1592_s24), 0  ;;  %281 = sbr.rel (%p278_p3) target bundleno = 264 (0x108), region = 40 }
   0xa   : > { %p367_p6 = scmp.lt.s32.totalorder (!%p278_p3), %s363_s12, 9  ;;  %p352_p7 = scmp.lt.s32.totalorder (!%p278_p3), %s1356_s18, 9 }
   0xb   : > { %s379_s27 = sadd.s32 (!%p278_p3), 2, %s1356_s18  ;;  %p398_p9 = scmp.lt.s32.totalorder (!%p278_p3), %s1356_s18, 7 }
   0xc   : > { %p383_p8 = scmp.lt.s32.totalorder (!%p278_p3), %s379_s27, 9 }
   0xe   : > { %v1307_v0 = vld [vmem:[%s1582_s3 + $0x44] ss:$0 sps:$4 sm:$0xff]   ;;  %vm505_vm0 = vcmask 1043456   ;;  %v1309_v1 = vld [vmem:[%s1582_s3 + $0x3c] sm:$0xff]   ;;  %v1311_v6 = vld [vmem:[%s1582_s3 + $0x34] sm:$0xff]   ;;  %s1596_s19 = smov (!%p350_p5, %s1360_s19), 1 }
   0xf   : > { %v1308_v2 = vld [vmem:[%s1582_s3 + $0x20] ss:$0 sps:$4 sm:$0xff]   ;;  %1262 = vmatprep.subr.msk.bf16.mxu0 %vm505_vm0, %v1307_v0  ;;  %v507_v3 = vsel %vm505_vm0, %v1307_v0, 0  ;;  %v1310_v4 = vld [vmem:[%s1582_s3 + $0x18] sm:$0xff]   ;;  %v1312_v7 = vld [vmem:[%s1582_s3 + $0x10] sm:$0xff]   ;;  %s1472_s17 = smul.u32 80, %s1596_s19 }
  0x10   : > { %1263 = vmatprep.subr.msk.bf16.mxu1 %vm505_vm0, %v1308_v2  ;;  %1199 = vmatpush3.bf16.msra.mxu0 %v507_v3  ;;  %v634_v5 = vsel %vm505_vm0, %v1308_v2, 0  ;;  %v1313_v8 = vld [vmem:[%s1582_s3 + $0x2c] sm:$0xff]   ;;  %s1598_s12 = smov (!%p367_p6, %s363_s12), 9  ;;  %v1315_v10 = vld [vmem:[%s1582_s3 + $0x24] sm:$0xff]   ;;  %vm492_vm1 = vcmask 588800   ;;  %s1600_s27 = smov (!%p383_p8, %s379_s27), 9 }
  0x11   : > { %1217 = vmatpush3.bf16.msra.mxu1 %v634_v5  ;;  %1200 = vmatprep.subr.bf16.mxu0 %v1309_v1  ;;  %v1314_v9 = vld [vmem:[%s1582_s3 + $0x8] sm:$0xff]   ;;  %s353_s25 = scalar_select %p352_p7, %s1356_s18, 9  ;;  %v1316_v11 = vld [vmem:[%s1582_s3] sm:$0xff]   ;;  %v1327_v21 = vld [vmem:[%s1582_s3 + $0x58] sm:$0xff]   ;;  %vm909_vm2 = vcmask 60416  }
  0x12   : > { %1218 = vmatprep.subr.bf16.mxu1 %v1310_v4  ;;  %s1088_s28 = sshll.u32 %s1598_s12, 3  ;;  %v1321_v12 = vld [vmem:[%s1582_s3 + $0x68] ss:$0 sps:$4 sm:$0xff]   ;;  %v1322_v18 = vld [vmem:[%s1582_s3 + $0x60] sm:$0xff]   ;;  %s1090_s30 = sshll.u32 %s1600_s27, 3  ;;  %v1328_v24 = vld [vmem:[%s1582_s3 + $0x50] sm:$0xff]  }
  0x13   : > { %s374_s6 = sadd.s32 %s1472_s17, %s1088_s28  ;;  %s1086_s7 = sshll.u32 %s353_s25, 3  ;;  %v779_v17 = vsel %vm505_vm0, %v1321_v12, 0  ;;  %v1329_v27 = vld [vmem:[%s1582_s3 + $0x48] sm:$0xff]   ;;  %v1152_v49 = vld [vmem:[%s1583_s4] ss:$0 sm:$0xff] }
  0x14   : > { %1201 = vmatpush3.bf16.msra.mxu0 %v1309_v1  ;;  %s1089_s8 = sshll.u32 %s374_s6, 2  ;;  %s359_s9 = sadd.s32 %s1472_s17, %s1086_s7 }
  0x15   : > { %1219 = vmatpush3.bf16.msra.mxu1 %v1310_v4  ;;  %1202 = vmatprep.subr.bf16.mxu0 %v1311_v6  ;;  %s1487_s13 = scalar_lea.vmem %s1580_s1, %s1089_s8  ;;  %s1087_s12 = sshll.u32 %s359_s9, 2 }
  0x16   : > { %1220 = vmatprep.subr.bf16.mxu1 %v1312_v7  ;;  %v1317_v13 = vld [vmem:[%s1487_s13] sm:$0xff]   ;;  %s1496_s26 = scalar_lea.vmem %s1579_s0, %s1087_s12  ;;  %v1319_v15 = vld [vmem:[%s1487_s13 + $0x8] sm:$0xff]   ;;  %v1323_v19 = vld [vmem:[%s1487_s13 + $0x10] sm:$0xff]   ;;  %s390_s6 = sadd.s32 %s1472_s17, %s1090_s30 }
  0x17   : > { %v1318_v14 = vld [vmem:[%s1496_s26] sm:$0xff]   ;;  %1208 = vmatprep.mubr.msk.bf16.mxu0 %vm492_vm1, %v1317_v13  ;;  %v1320_v16 = vld [vmem:[%s1496_s26 + $0x8] sm:$0xff]   ;;  %v1324_v20 = vld [vmem:[%s1496_s26 + $0x10] sm:$0xff]   ;;  %s1091_s7 = sshll.u32 %s390_s6, 2  ;;  %s1602_s18 = smov (!%p398_p9, %s1356_s18), 7 }
  0x18   : > { %1203 = vmatpush3.bf16.msra.mxu0 %v1311_v6  ;;  %1226 = vmatprep.mubr.msk.bf16.mxu1 %vm492_vm1, %v1318_v14  ;;  %s392_s12 = scalar_lea.vmem %s1581_s2, %s1091_s7  ;;  %v1325_v22 = vld [vmem:[%s1487_s13 + $0x18] sm:$0xff]   ;;  %s1092_s16 = sshll.u32 %s1602_s18, 3 }
  0x19   : > { %1221 = vmatpush3.bf16.msra.mxu1 %v1312_v7  ;;  %1204 = vmatprep.subr.bf16.mxu0 %v1313_v8  ;;  %v1326_v23 = vld [vmem:[%s1496_s26 + $0x18] sm:$0xff]   ;;  %v1330_v25 = vld [vmem:[%s392_s12] sm:$0xff]   ;;  %v1331_v26 = vld [vmem:[%s392_s12 + $0x10] sm:$0xff]   ;;  %s1093_s25 = sshll.u32 %s1596_s19, 6 }
  0x1a   : > { %1222 = vmatprep.subr.bf16.mxu1 %v1314_v9  ;;  %v1332_v28 = vld [vmem:[%s392_s12 + $0x8] sm:$0xff]   ;;  %v1333_v29 = vld [vmem:[%s392_s12 + $0x18] sm:$0xff]   ;;  %s405_s26 = sadd.s32 %s1093_s25, %s1092_s16 }
  0x1b   : > { %s1094_s29 = sshll.u32 %s405_s26, 2 }
  0x1c   : > { %1205 = vmatpush3.bf16.msra.mxu0 %v1313_v8  ;;  %s1546_s30 = scalar_lea.vmem %s1584_s5, %s1094_s29 }
  0x1d   : > { %1223 = vmatpush3.bf16.msra.mxu1 %v1314_v9  ;;  %1206 = vmatprep.subr.bf16.mxu0 %v1315_v10 }
  0x1e   : > { %1224 = vmatprep.subr.bf16.mxu1 %v1316_v11 }
  0x20   : > { %1207 = vmatpush3.bf16.msra.mxu0 %v1315_v10 }
  0x21   : > { %1225 = vmatpush3.bf16.msra.mxu1 %v1316_v11  ;;  %1264 = vmatprep.subr.msk.bf16.mxu0 %vm505_vm0, %v1321_v12 }
  0x22   : > { %1265 = vmatprep.subr.msk.bf16.mxu1 %vm505_vm0, %v1321_v12 }
  0x23   : > { %1209 = vmatmul.mubr.msk.bf16.vlgmr.msra.gmra.mxu0 %vm492_vm1, %v1319_v15 }
  0x24   : > { %1227 = vmatmul.mubr.msk.bf16.vlgmr.msra.gmra.mxu1 %vm492_vm1, %v1320_v16  ;;  %1235 = vmatpush3.bf16.msra.mxu0 %v779_v17 }
  0x25   : > { %1257 = vmatpush3.bf16.msra.mxu1 %v779_v17  ;;  %1236 = vmatprep.subr.bf16.mxu0 %v1322_v18 }
  0x26   : > { %1253 = vmatprep.subr.bf16.mxu1 %v1322_v18  ;;  %1212 = vmatprep.mubr.msk.bf16.mxu0 %vm492_vm1, %v1323_v19 }
  0x27   : > { %1230 = vmatprep.mubr.msk.bf16.mxu1 %vm492_vm1, %v1324_v20 }
  0x28   : > { %1237 = vmatpush3.bf16.msra.mxu0 %v1322_v18 }
  0x29   : > { %1258 = vmatpush3.bf16.msra.mxu1 %v1322_v18  ;;  %1238 = vmatprep.subr.bf16.mxu0 %v1327_v21 }
  0x2a   : > { %1254 = vmatprep.subr.bf16.mxu1 %v1327_v21 }
  0x2b   : > { %1213 = vmatmul.mubr.msk.bf16.gmra.mxu0 %vm492_vm1, %v1325_v22 }
  0x2c   : > { %1231 = vmatmul.mubr.msk.bf16.gmra.mxu1 %vm492_vm1, %v1326_v23  ;;  %1239 = vmatpush3.bf16.msra.mxu0 %v1327_v21 }
  0x2d   : > { %1259 = vmatpush3.bf16.msra.mxu1 %v1327_v21  ;;  %1240 = vmatprep.subr.bf16.mxu0 %v1328_v24 }
  0x2e   : > { %1255 = vmatprep.subr.bf16.mxu1 %v1328_v24  ;;  %1244 = vmatprep.mubr.msk.bf16.mxu0 %vm492_vm1, %v1330_v25 }
  0x2f   : > { %1248 = vmatprep.mubr.msk.bf16.mxu1 %vm492_vm1, %v1331_v26 }
  0x30   : > { %1241 = vmatpush3.bf16.msra.mxu0 %v1328_v24 }
  0x31   : > { %1260 = vmatpush3.bf16.msra.mxu1 %v1328_v24  ;;  %1242 = vmatprep.subr.bf16.mxu0 %v1329_v27 }
  0x32   : > { %1256 = vmatprep.subr.bf16.mxu1 %v1329_v27 }
  0x34   : > { %1243 = vmatpush3.bf16.msra.mxu0 %v1329_v27 }
  0x35   : > { %1261 = vmatpush3.bf16.msra.mxu1 %v1329_v27 }
  0x37   : > { %1245 = vmatmul.mubr.msk.bf16.vlgmr.msra.gmra.mxu0 %vm492_vm1, %v1332_v28 }
  0x38   : > { %1249 = vmatmul.mubr.msk.bf16.vlgmr.msra.gmra.mxu1 %vm492_vm1, %v1333_v29 }
  0xe3   : > { %v1210_v30 = vpop.f32.mrf.mxu0 }
  0xe4   : > { %v1228_v31 = vpop.f32.mrf.mxu1 }
  0xe5   : > { %v543_v32 = vpop.f32.mrf.mxu0  ;;  %v679_v45 = vadd.f32 %v1228_v31, %v1210_v30 }
  0xe6   : > { %v670_v33 = vpop.f32.mrf.mxu1 }
  0xe7   : > { %v1211_v34 = vpop.f32.mrf.mxu0  ;;  %v671_v50 = vadd.f32 %v670_v33, %v543_v32 }
  0xe8   : > { %v1229_v35 = vpop.f32.mrf.mxu1 }
  0xe9   : > { %v546_v36 = vpop.f32.mrf.mxu0  ;;  %v682_v56 = vadd.f32 %v1229_v35, %v1211_v34 }
  0xea   : > { %v673_v37 = vpop.f32.mrf.mxu1 }
  0xeb   : > { %v1214_v38 = vpop.f32.mrf.mxu0  ;;  %v674_v0 = vadd.f32 %v673_v37, %v546_v36 }
  0xec   : > { %v1232_v39 = vpop.f32.mrf.mxu1 }
  0xed   : > { %v559_v40 = vpop.f32.mrf.mxu0  ;;  %v695_v47 = vadd.f32 %v1232_v39, %v1214_v38 }
  0xee   : > { %v686_v41 = vpop.f32.mrf.mxu1 }
  0xef   : > { %v1215_v42 = vpop.f32.mrf.mxu0  ;;  %v687_v53 = vadd.f32 %v686_v41, %v559_v40 }
  0xf0   : > { %v1233_v43 = vpop.f32.mrf.mxu1 }
  0xf1   : > { %v562_v44 = vpop.f32.mrf.mxu0  ;;  %v698_v60 = vadd.f32 %v1233_v43, %v1215_v42 }
  0xf2   : > { %v689_v46 = vpop.f32.mrf.mxu1 }
  0xf3   : > { %v690_v5 = vadd.f32 %v689_v46, %v562_v44 }
  0xf7   : > { %v1246_v48 = vpop.f32.mrf.mxu0 }
  0xf8   : > { %v848_v51 = vadd.f32 %v1246_v48, %v679_v45  ;;  %v1250_v52 = vpop.f32.mrf.mxu1 }
  0xf9   : > { %v852_v54 = vadd.f32 %v1250_v52, %v695_v47  ;;  %v815_v55 = vpop.f32.mrf.mxu0 }
  0xfa   : > { %v863_v57 = vadd.f32 %v1152_v49, %v848_v51  ;;  %v846_v58 = vadd.f32 %v815_v55, %v671_v50  ;;  %v831_v59 = vpop.f32.mrf.mxu1 }
  0xfb   : > { %v867_v61 = vadd.f32 %v1152_v49, %v852_v54  ;;  %v850_v62 = vadd.f32 %v831_v59, %v687_v53  ;;  %v1247_v63 = vpop.f32.mrf.mxu0 }
  0xfc   : > { %v871_v1 = vmax.f32 %v863_v57, 0.0  ;;  %v861_v2 = vadd.f32 %v1152_v49, %v846_v58  ;;  %v849_v3 = vadd.f32 %v1247_v63, %v682_v56  ;;  %v1251_v4 = vpop.f32.mrf.mxu1 }
  0xfd   : > { %v875_v6 = vmax.f32 %v867_v61, 0.0  ;;  %v865_v7 = vadd.f32 %v1152_v49, %v850_v62  ;;  %v853_v8 = vadd.f32 %v1251_v4, %v698_v60  ;;  %v818_v9 = vpop.f32.mrf.mxu0 }
  0xfe   : > { %v1165_v10 = vpack.c.bf16 %v871_v1, %v871_v1  ;;  %v869_v11 = vmax.f32 %v861_v2, 0.0  ;;  %v864_v12 = vadd.f32 %v1152_v49, %v849_v3  ;;  %v847_v13 = vadd.f32 %v818_v9, %v674_v0  ;;  %v834_v14 = vpop.f32.mrf.mxu1 }
  0xff   : > { %v1169_v15 = vpack.c.bf16 %v875_v6, %v875_v6  ;;  %v873_v16 = vmax.f32 %v865_v7, 0.0  ;;  %v868_v17 = vadd.f32 %v1152_v49, %v853_v8  ;;  %v851_v18 = vadd.f32 %v834_v14, %v690_v5 }
 0x100   : > { %912 = vst.msk [vmem:[%s1546_s30 + $0x8] sm:$0xf] %vm909_vm2, %v1165_v10  ;;  %v1163_v19 = vpack.c.bf16 %v869_v11, %v869_v11  ;;  %v872_v20 = vmax.f32 %v864_v12, 0.0  ;;  %v862_v21 = vadd.f32 %v1152_v49, %v847_v13 }
 0x101   : > { %916 = vst.msk [vmem:[%s1546_s30 + $0x18] sm:$0xf] %vm909_vm2, %v1169_v15  ;;  %v1167_v22 = vpack.c.bf16 %v873_v16, %v873_v16  ;;  %v876_v23 = vmax.f32 %v868_v17, 0.0  ;;  %v866_v24 = vadd.f32 %v1152_v49, %v851_v18 }
 0x102   : > { %910 = vst.msk [vmem:[%s1546_s30] sm:$0xf] %vm909_vm2, %v1163_v19  ;;  %v1166_v25 = vpack.c.bf16 %v872_v20, %v872_v20  ;;  %v870_v26 = vmax.f32 %v862_v21, 0.0 }
 0x103   : > { %914 = vst.msk [vmem:[%s1546_s30 + $0x10] sm:$0xf] %vm909_vm2, %v1167_v22  ;;  %v1170_v27 = vpack.c.bf16 %v876_v23, %v876_v23  ;;  %v874_v28 = vmax.f32 %v866_v24, 0.0 }
 0x104   : > { %913 = vst.msk [vmem:[%s1546_s30 + $0xc] sm:$0xf] %vm909_vm2, %v1166_v25  ;;  %v1164_v29 = vpack.c.bf16 %v870_v26, %v870_v26 }
 0x105   : > { %917 = vst.msk [vmem:[%s1546_s30 + $0x1c] sm:$0xf] %vm909_vm2, %v1170_v27  ;;  %v1168_v30 = vpack.c.bf16 %v874_v28, %v874_v28 }
 0x106   : > { %911 = vst.msk [vmem:[%s1546_s30 + $0x4] sm:$0xf] %vm909_vm2, %v1164_v29 }
 0x107   : > { %915 = vst.msk [vmem:[%s1546_s30 + $0x14] sm:$0xf] %vm909_vm2, %v1168_v30 }
 0x108 PF: > { %s15_s22 = sadd.s32 1, %s1372_s22   ;;  %s1585_s18 = smov %s1364_s20 }
 0x109   : > { %p12_p10 = scmp.ge.s32.totalorder %s15_s22, 18   ;;  %s1586_s19 = smov %s1368_s21 }
 0x10a   : > { %s1587_s20 = smov %s1590_s23  ;;  %s1588_s21 = smov %s1594_s24 }
 0x10b   :  { %14 = sbr.rel (!%p12_p10) target bundleno = 3 (0x3), region = 78 }

// kernel: _lambda_.11
= control target key start
LH: loop header
LB: loop body
LE: loop exit
PB: predicated region body
PF: predicated region fallthrough
CT: control target
= control target key end

     0   :  { %s1556_s21 = smov 0   ;;  %s1558_s22 = smov 0   ;;  %s1749_s0 = inlined_call_operand.vmem [shape: bf16[2,10,64,72], index: 0, kind: input, shape index: {}, may-alias: {0,1,2}]   ;;  %s1750_s1 = inlined_call_operand.vmem [shape: bf16[2,10,64,72], index: 1, kind: input, shape index: {}, may-alias: {0,1,2}]   ;;  %s1751_s2 = inlined_call_operand.vmem [shape: bf16[2,10,64,72], index: 2, kind: input, shape index: {}, may-alias: {0,1,2}]   ;;  %s1752_s3 = inlined_call_operand.vmem [shape: bf16[3,72,8], index: 3, kind: input, shape index: {}]   ;;  %s1753_s4 = inlined_call_operand.vmem [shape: f32[1,8], index: 4, kind: input, shape index: {}]   ;;  %s1754_s5 = inlined_call_operand.vmem [shape: bf16[2,8,64,8], index: 5, kind: input, shape index: {}]   ;;  %s1755_s6 = inlined_call_operand.vmem [shape: bf16[2,8,64,8], index: 6, kind: output, shape index: {}]  }
   0x1   :  { %s1560_s23 = smov 0   ;;  %s1562_s24 = smov 0  }
   0x2   :  { %s1564_s25 = smov 0  }
   0x3 LB: > { %s31_s26 = sadd.s32 1, %s1511_s23  ;;  %s35_s27 = sadd.s32 1, %s1515_s24  ;;  %s1519_s25 = sphi %s1564_s25, %s16_s25   ;;  %s1515_s24 = sphi %s1562_s24, %s1759_s24   ;;  %s1511_s23 = sphi %s1560_s23, %s1758_s23   ;;  %s1507_s22 = sphi %s1558_s22, %s1757_s22   ;;  %s1503_s21 = sphi %s1556_s21, %s1756_s21  }
   0x4   : > { %p33_p0 = scmp.ge.s32.totalorder %s31_s26, 8  ;;  %p1210_p1 = scmp.ge.s32.totalorder %s1519_s25, 1 }
   0x5   : > { %p325_p2 = scmp.lt.s32.totalorder %s1519_s25, 17 }
   0x6   : > { %s1761_s26 = smov (%p33_p0, %s31_s26), 0  ;;  %s1763_s27 = smov (!%p33_p0, %s35_s27), %s1515_s24 }
   0x7   : > { %p326_p3 = pnand %p1210_p1, %p325_p2  ;;  %p37_p4 = scmp.ge.s32.totalorder %s1763_s27, 2 }
   0x8   : > { %p413_p5 = scmp.lt.s32.totalorder (!%p326_p3), %s1507_s22, 1  ;;  %s426_s16 = sadd.s32 (!%p326_p3), 1, %s1503_s21 }
   0x9   : > { %s1765_s27 = smov (%p37_p4, %s1763_s27), 0  ;;  %329 = sbr.rel (%p326_p3) target bundleno = 266 (0x10a), region = 44 }
   0xa   : > { %p430_p6 = scmp.lt.s32.totalorder (!%p326_p3), %s426_s16, 9  ;;  %p415_p7 = scmp.lt.s32.totalorder (!%p326_p3), %s1503_s21, 9 }
   0xb   : > { %p461_p9 = scmp.lt.s32.totalorder (!%p326_p3), %s1503_s21, 7 }
   0xe   : > { %v1454_v0 = vld [vmem:[%s1752_s3 + $0x44] ss:$0 sps:$4 sm:$0xff]   ;;  %vm582_vm0 = vcmask 1043456   ;;  %v1456_v1 = vld [vmem:[%s1752_s3 + $0x3c] sm:$0xff]   ;;  %v1458_v6 = vld [vmem:[%s1752_s3 + $0x34] sm:$0xff]   ;;  %s1767_s22 = smov (!%p413_p5, %s1507_s22), 1 }
   0xf   : > { %v1455_v2 = vld [vmem:[%s1752_s3 + $0x20] ss:$0 sps:$4 sm:$0xff]   ;;  %1409 = vmatprep.subr.msk.bf16.mxu0 %vm582_vm0, %v1454_v0  ;;  %v584_v3 = vsel %vm582_vm0, %v1454_v0, 0  ;;  %v1457_v4 = vld [vmem:[%s1752_s3 + $0x18] sm:$0xff]   ;;  %v1459_v7 = vld [vmem:[%s1752_s3 + $0x10] sm:$0xff]   ;;  %s1624_s28 = smul.u32 80, %s1767_s22 }
  0x10   : > { %1410 = vmatprep.subr.msk.bf16.mxu1 %vm582_vm0, %v1455_v2  ;;  %1346 = vmatpush3.bf16.msra.mxu0 %v584_v3  ;;  %v711_v5 = vsel %vm582_vm0, %v1455_v2, 0  ;;  %v1460_v8 = vld [vmem:[%s1752_s3 + $0x2c] sm:$0xff]   ;;  %s1769_s16 = smov (!%p430_p6, %s426_s16), 9  ;;  %v1462_v10 = vld [vmem:[%s1752_s3 + $0x24] sm:$0xff]   ;;  %vm569_vm1 = vcmask 588800   ;;  %v1474_v21 = vld [vmem:[%s1752_s3 + $0x58] sm:$0xff]  }
  0x11   : > { %1364 = vmatpush3.bf16.msra.mxu1 %v711_v5  ;;  %1347 = vmatprep.subr.bf16.mxu0 %v1456_v1  ;;  %v1461_v9 = vld [vmem:[%s1752_s3 + $0x8] sm:$0xff]   ;;  %s416_s29 = scalar_select %p415_p7, %s1503_s21, 9  ;;  %v1463_v11 = vld [vmem:[%s1752_s3] sm:$0xff]   ;;  %v1475_v24 = vld [vmem:[%s1752_s3 + $0x50] sm:$0xff]   ;;  %vm1010_vm2 = vcmask 60416  }
  0x12   : > { %1365 = vmatprep.subr.bf16.mxu1 %v1457_v4  ;;  %s1213_s8 = sshll.u32 %s1769_s16, 3  ;;  %v1468_v12 = vld [vmem:[%s1752_s3 + $0x68] ss:$0 sps:$4 sm:$0xff]   ;;  %v1469_v18 = vld [vmem:[%s1752_s3 + $0x60] sm:$0xff]  }
  0x13   : > { %s437_s11 = sadd.s32 %s1624_s28, %s1213_s8  ;;  %s1211_s12 = sshll.u32 %s416_s29, 3  ;;  %v856_v17 = vsel %vm582_vm0, %v1468_v12, 0  ;;  %v1476_v27 = vld [vmem:[%s1752_s3 + $0x48] sm:$0xff]   ;;  %v1280_v53 = vld [vmem:[%s1753_s4] ss:$0 sm:$0xff] }
  0x14   : > { %1348 = vmatpush3.bf16.msra.mxu0 %v1456_v1  ;;  %s1214_s13 = sshll.u32 %s437_s11, 2  ;;  %s422_s14 = sadd.s32 %s1624_s28, %s1211_s12 }
  0x15   : > { %1366 = vmatpush3.bf16.msra.mxu1 %v1457_v4  ;;  %1349 = vmatprep.subr.bf16.mxu0 %v1458_v6  ;;  %s1639_s18 = scalar_lea.vmem %s1750_s1, %s1214_s13  ;;  %s1212_s16 = sshll.u32 %s422_s14, 2 }
  0x16   : > { %1367 = vmatprep.subr.bf16.mxu1 %v1459_v7  ;;  %v1464_v13 = vld [vmem:[%s1639_s18] sm:$0xff]   ;;  %s1648_s7 = scalar_lea.vmem %s1749_s0, %s1212_s16  ;;  %s442_s8 = sadd.s32 2, %s1503_s21  ;;  %v1466_v15 = vld [vmem:[%s1639_s18 + $0x8] sm:$0xff]   ;;  %v1470_v19 = vld [vmem:[%s1639_s18 + $0x10] sm:$0xff]  }
  0x17   : > { %v1465_v14 = vld [vmem:[%s1648_s7] sm:$0xff]   ;;  %p446_p8 = scmp.lt.s32.totalorder %s442_s8, 9  ;;  %1355 = vmatprep.mubr.msk.bf16.mxu0 %vm569_vm1, %v1464_v13  ;;  %v1467_v16 = vld [vmem:[%s1648_s7 + $0x8] sm:$0xff]   ;;  %v1471_v20 = vld [vmem:[%s1648_s7 + $0x10] sm:$0xff]   ;;  %s1773_s21 = smov (!%p461_p9, %s1503_s21), 7 }
  0x18   : > { %1350 = vmatpush3.bf16.msra.mxu0 %v1458_v6  ;;  %1373 = vmatprep.mubr.msk.bf16.mxu1 %vm569_vm1, %v1465_v14  ;;  %v1472_v22 = vld [vmem:[%s1639_s18 + $0x18] sm:$0xff]   ;;  %s1217_s30 = sshll.u32 %s1773_s21, 3 }
  0x19   : > { %1368 = vmatpush3.bf16.msra.mxu1 %v1459_v7  ;;  %1351 = vmatprep.subr.bf16.mxu0 %v1460_v8  ;;  %s1771_s8 = smov (!%p446_p8, %s442_s8), 9  ;;  %v1473_v23 = vld [vmem:[%s1648_s7 + $0x18] sm:$0xff]   ;;  %s1218_s7 = sshll.u32 %s1767_s22, 6 }
  0x1a   : > { %1369 = vmatprep.subr.bf16.mxu1 %v1461_v9  ;;  %s1215_s11 = sshll.u32 %s1771_s8, 3  ;;  %s1692_s8 = sadd.s32 %s1218_s7, %s1217_s30 }
  0x1b   : > { %s453_s12 = sadd.s32 %s1624_s28, %s1215_s11  ;;  %s1219_s9 = sshll.u32 %s1692_s8, 2 }
  0x1c   : > { %1352 = vmatpush3.bf16.msra.mxu0 %v1460_v8  ;;  %s1216_s13 = sshll.u32 %s453_s12, 2  ;;  %s470_s12 = scalar_lea.vmem %s1754_s5, %s1219_s9 }
  0x1d   : > { %1370 = vmatpush3.bf16.msra.mxu1 %v1461_v9  ;;  %1353 = vmatprep.subr.bf16.mxu0 %v1462_v10  ;;  %s455_s19 = scalar_lea.vmem %s1751_s2, %s1216_s13  ;;  %v1315_v44 = vld [vmem:[%s470_s12 + $0x8] sm:$0xff]   ;;  %v1317_v45 = vld [vmem:[%s470_s12 + $0x18] sm:$0xff]   ;;  %v1700_v46 = vld [vmem:[%s470_s12] sm:$0xff]   ;;  %s1716_s15 = scalar_lea.vmem %s1755_s6, %s1219_s9 }
  0x1e   : > { %1371 = vmatprep.subr.bf16.mxu1 %v1463_v11  ;;  %v1477_v25 = vld [vmem:[%s455_s19] sm:$0xff]   ;;  %v1478_v26 = vld [vmem:[%s455_s19 + $0x10] sm:$0xff]   ;;  %v1479_v28 = vld [vmem:[%s455_s19 + $0x8] sm:$0xff]   ;;  %v1305_v54 = vunpack.c.l.bf16 %v1315_v44  ;;  %v1313_v55 = vunpack.c.l.bf16 %v1317_v45  ;;  %v1301_v56 = vunpack.c.l.bf16 %v1700_v46  ;;  %v1306_v61 = vunpack.c.h.bf16 %v1315_v44 }
  0x1f   : > { %v1480_v29 = vld [vmem:[%s455_s19 + $0x18] sm:$0xff]   ;;  %v1702_v48 = vld [vmem:[%s470_s12 + $0x10] sm:$0xff]   ;;  %v1314_v1 = vunpack.c.h.bf16 %v1317_v45  ;;  %v1302_v6 = vunpack.c.h.bf16 %v1700_v46 }
  0x20   : > { %1354 = vmatpush3.bf16.msra.mxu0 %v1462_v10  ;;  %v1309_v60 = vunpack.c.l.bf16 %v1702_v48 }
  0x21   : > { %1372 = vmatpush3.bf16.msra.mxu1 %v1463_v11  ;;  %1411 = vmatprep.subr.msk.bf16.mxu0 %vm582_vm0, %v1468_v12  ;;  %v1310_v11 = vunpack.c.h.bf16 %v1702_v48 }
  0x22   : > { %1412 = vmatprep.subr.msk.bf16.mxu1 %vm582_vm0, %v1468_v12 }
  0x23   : > { %1356 = vmatmul.mubr.msk.bf16.vlgmr.msra.gmra.mxu0 %vm569_vm1, %v1466_v15 }
  0x24   : > { %1374 = vmatmul.mubr.msk.bf16.vlgmr.msra.gmra.mxu1 %vm569_vm1, %v1467_v16  ;;  %1382 = vmatpush3.bf16.msra.mxu0 %v856_v17 }
  0x25   : > { %1404 = vmatpush3.bf16.msra.mxu1 %v856_v17  ;;  %1383 = vmatprep.subr.bf16.mxu0 %v1469_v18 }
  0x26   : > { %1400 = vmatprep.subr.bf16.mxu1 %v1469_v18  ;;  %1359 = vmatprep.mubr.msk.bf16.mxu0 %vm569_vm1, %v1470_v19 }
  0x27   : > { %1377 = vmatprep.mubr.msk.bf16.mxu1 %vm569_vm1, %v1471_v20 }
  0x28   : > { %1384 = vmatpush3.bf16.msra.mxu0 %v1469_v18 }
  0x29   : > { %1405 = vmatpush3.bf16.msra.mxu1 %v1469_v18  ;;  %1385 = vmatprep.subr.bf16.mxu0 %v1474_v21 }
  0x2a   : > { %1401 = vmatprep.subr.bf16.mxu1 %v1474_v21 }
  0x2b   : > { %1360 = vmatmul.mubr.msk.bf16.gmra.mxu0 %vm569_vm1, %v1472_v22 }
  0x2c   : > { %1378 = vmatmul.mubr.msk.bf16.gmra.mxu1 %vm569_vm1, %v1473_v23  ;;  %1386 = vmatpush3.bf16.msra.mxu0 %v1474_v21 }
  0x2d   : > { %1406 = vmatpush3.bf16.msra.mxu1 %v1474_v21  ;;  %1387 = vmatprep.subr.bf16.mxu0 %v1475_v24 }
  0x2e   : > { %1402 = vmatprep.subr.bf16.mxu1 %v1475_v24  ;;  %1391 = vmatprep.mubr.msk.bf16.mxu0 %vm569_vm1, %v1477_v25 }
  0x2f   : > { %1395 = vmatprep.mubr.msk.bf16.mxu1 %vm569_vm1, %v1478_v26 }
  0x30   : > { %1388 = vmatpush3.bf16.msra.mxu0 %v1475_v24 }
  0x31   : > { %1407 = vmatpush3.bf16.msra.mxu1 %v1475_v24  ;;  %1389 = vmatprep.subr.bf16.mxu0 %v1476_v27 }
  0x32   : > { %1403 = vmatprep.subr.bf16.mxu1 %v1476_v27 }
  0x34   : > { %1390 = vmatpush3.bf16.msra.mxu0 %v1476_v27 }
  0x35   : > { %1408 = vmatpush3.bf16.msra.mxu1 %v1476_v27 }
  0x37   : > { %1392 = vmatmul.mubr.msk.bf16.vlgmr.msra.gmra.mxu0 %vm569_vm1, %v1479_v28 }
  0x38   : > { %1396 = vmatmul.mubr.msk.bf16.vlgmr.msra.gmra.mxu1 %vm569_vm1, %v1480_v29 }
  0xe3   : > { %v1357_v30 = vpop.f32.mrf.mxu0 }
  0xe4   : > { %v1375_v31 = vpop.f32.mrf.mxu1 }
  0xe5   : > { %v620_v32 = vpop.f32.mrf.mxu0  ;;  %v756_v49 = vadd.f32 %v1375_v31, %v1357_v30 }
  0xe6   : > { %v747_v33 = vpop.f32.mrf.mxu1 }
  0xe7   : > { %v1358_v34 = vpop.f32.mrf.mxu0  ;;  %v748_v57 = vadd.f32 %v747_v33, %v620_v32 }
  0xe8   : > { %v1376_v35 = vpop.f32.mrf.mxu1 }
  0xe9   : > { %v623_v36 = vpop.f32.mrf.mxu0  ;;  %v759_v2 = vadd.f32 %v1376_v35, %v1358_v34 }
  0xea   : > { %v750_v37 = vpop.f32.mrf.mxu1 }
  0xeb   : > { %v1361_v38 = vpop.f32.mrf.mxu0  ;;  %v751_v12 = vadd.f32 %v750_v37, %v623_v36 }
  0xec   : > { %v1379_v39 = vpop.f32.mrf.mxu1 }
  0xed   : > { %v636_v40 = vpop.f32.mrf.mxu0  ;;  %v772_v51 = vadd.f32 %v1379_v39, %v1361_v38 }
  0xee   : > { %v763_v41 = vpop.f32.mrf.mxu1 }
  0xef   : > { %v1362_v42 = vpop.f32.mrf.mxu0  ;;  %v764_v62 = vadd.f32 %v763_v41, %v636_v40 }
  0xf0   : > { %v1380_v43 = vpop.f32.mrf.mxu1 }
  0xf1   : > { %v639_v47 = vpop.f32.mrf.mxu0  ;;  %v775_v7 = vadd.f32 %v1380_v43, %v1362_v42 }
  0xf2   : > { %v766_v50 = vpop.f32.mrf.mxu1 }
  0xf3   : > { %v767_v17 = vadd.f32 %v766_v50, %v639_v47 }
  0xf7   : > { %v1393_v52 = vpop.f32.mrf.mxu0 }
  0xf8   : > { %v925_v58 = vadd.f32 %v1393_v52, %v756_v49  ;;  %v1397_v59 = vpop.f32.mrf.mxu1 }
  0xf9   : > { %v929_v63 = vadd.f32 %v1397_v59, %v772_v51  ;;  %v892_v0 = vpop.f32.mrf.mxu0 }
  0xfa   : > { %v940_v3 = vadd.f32 %v1280_v53, %v925_v58  ;;  %v923_v4 = vadd.f32 %v892_v0, %v748_v57  ;;  %v908_v5 = vpop.f32.mrf.mxu1 }
  0xfb   : > { %v944_v8 = vadd.f32 %v1280_v53, %v929_v63  ;;  %v927_v9 = vadd.f32 %v908_v5, %v764_v62  ;;  %v1394_v10 = vpop.f32.mrf.mxu0 }
  0xfc   : > { %v964_v13 = vadd.f32 %v1305_v54, %v940_v3  ;;  %v938_v14 = vadd.f32 %v1280_v53, %v923_v4  ;;  %v926_v15 = vadd.f32 %v1394_v10, %v759_v2  ;;  %v1398_v16 = vpop.f32.mrf.mxu1 }
  0xfd   : > { %v968_v18 = vadd.f32 %v1313_v55, %v944_v8  ;;  %v942_v19 = vadd.f32 %v1280_v53, %v927_v9  ;;  %v930_v20 = vadd.f32 %v1398_v16, %v775_v7  ;;  %v895_v21 = vpop.f32.mrf.mxu0 }
  0xfe   : > { %v972_v22 = vmax.f32 %v964_v13, 0.0  ;;  %v962_v23 = vadd.f32 %v1301_v56, %v938_v14  ;;  %v941_v24 = vadd.f32 %v1280_v53, %v926_v15  ;;  %v924_v25 = vadd.f32 %v895_v21, %v751_v12  ;;  %v911_v26 = vpop.f32.mrf.mxu1 }
  0xff   : > { %v976_v27 = vmax.f32 %v968_v18, 0.0  ;;  %v966_v28 = vadd.f32 %v1309_v60, %v942_v19  ;;  %v945_v29 = vadd.f32 %v1280_v53, %v930_v20  ;;  %v928_v30 = vadd.f32 %v911_v26, %v767_v17 }
 0x100   : > { %v1293_v31 = vpack.c.bf16 %v972_v22, %v972_v22  ;;  %v970_v32 = vmax.f32 %v962_v23, 0.0  ;;  %v965_v33 = vadd.f32 %v1306_v61, %v941_v24  ;;  %v939_v34 = vadd.f32 %v1280_v53, %v924_v25 }
 0x101   : > { %v1297_v35 = vpack.c.bf16 %v976_v27, %v976_v27  ;;  %v974_v36 = vmax.f32 %v966_v28, 0.0  ;;  %v969_v37 = vadd.f32 %v1314_v1, %v945_v29  ;;  %v943_v38 = vadd.f32 %v1280_v53, %v928_v30 }
 0x102   : > { %1013 = vst.msk [vmem:[%s1716_s15 + $0x8] sm:$0xf] %vm1010_vm2, %v1293_v31  ;;  %v1291_v39 = vpack.c.bf16 %v970_v32, %v970_v32  ;;  %v973_v40 = vmax.f32 %v965_v33, 0.0  ;;  %v963_v41 = vadd.f32 %v1302_v6, %v939_v34 }
 0x103   : > { %1017 = vst.msk [vmem:[%s1716_s15 + $0x18] sm:$0xf] %vm1010_vm2, %v1297_v35  ;;  %v1295_v42 = vpack.c.bf16 %v974_v36, %v974_v36  ;;  %v977_v43 = vmax.f32 %v969_v37, 0.0  ;;  %v967_v44 = vadd.f32 %v1310_v11, %v943_v38 }
 0x104   : > { %1011 = vst.msk [vmem:[%s1716_s15] sm:$0xf] %vm1010_vm2, %v1291_v39  ;;  %v1294_v45 = vpack.c.bf16 %v973_v40, %v973_v40  ;;  %v971_v46 = vmax.f32 %v963_v41, 0.0 }
 0x105   : > { %1015 = vst.msk [vmem:[%s1716_s15 + $0x10] sm:$0xf] %vm1010_vm2, %v1295_v42  ;;  %v1298_v47 = vpack.c.bf16 %v977_v43, %v977_v43  ;;  %v975_v48 = vmax.f32 %v967_v44, 0.0 }
 0x106   : > { %1014 = vst.msk [vmem:[%s1716_s15 + $0xc] sm:$0xf] %vm1010_vm2, %v1294_v45  ;;  %v1292_v49 = vpack.c.bf16 %v971_v46, %v971_v46 }
 0x107   : > { %1018 = vst.msk [vmem:[%s1716_s15 + $0x1c] sm:$0xf] %vm1010_vm2, %v1298_v47  ;;  %v1296_v50 = vpack.c.bf16 %v975_v48, %v975_v48 }
 0x108   : > { %1012 = vst.msk [vmem:[%s1716_s15 + $0x4] sm:$0xf] %vm1010_vm2, %v1292_v49 }
 0x109   : > { %1016 = vst.msk [vmem:[%s1716_s15 + $0x14] sm:$0xf] %vm1010_vm2, %v1296_v50 }
 0x10a PF: > { %s16_s25 = sadd.s32 1, %s1519_s25   ;;  %s1756_s21 = smov %s1511_s23 }
 0x10b   : > { %p13_p10 = scmp.ge.s32.totalorder %s16_s25, 18   ;;  %s1757_s22 = smov %s1515_s24 }
 0x10c   : > { %s1758_s23 = smov %s1761_s26  ;;  %s1759_s24 = smov %s1765_s27 }
 0x10d   :  { %15 = sbr.rel (!%p13_p10) target bundleno = 3 (0x3), region = 85 }

// kernel: _lambda_.12
= control target key start
LH: loop header
LB: loop body
LE: loop exit
PB: predicated region body
PF: predicated region fallthrough
CT: control target
= control target key end

     0   :  { %s1154_s18 = smov 0   ;;  %s1156_s19 = smov 0   ;;  %s1310_s0 = inlined_call_operand.vmem [shape: bf16[2,10,16,72], index: 0, kind: input, shape index: {}, may-alias: {0,1,2}]   ;;  %s1311_s1 = inlined_call_operand.vmem [shape: bf16[2,10,16,72], index: 1, kind: input, shape index: {}, may-alias: {0,1,2}]   ;;  %s1312_s2 = inlined_call_operand.vmem [shape: bf16[2,10,16,72], index: 2, kind: input, shape index: {}, may-alias: {0,1,2}]   ;;  %s1313_s3 = inlined_call_operand.vmem [shape: bf16[3,72,16], index: 3, kind: input, shape index: {}]   ;;  %s1314_s4 = inlined_call_operand.vmem [shape: f32[1,16], index: 4, kind: input, shape index: {}]   ;;  %s1315_s5 = inlined_call_operand.vmem [shape: bf16[2,4,16,16], index: 5, kind: output, shape index: {}]  }
   0x1   :  { %s1158_s20 = smov 0   ;;  %s1160_s21 = smov 0  }
   0x2   :  { %s1162_s22 = smov 0  }
   0x3 LB: > { %s30_s23 = sadd.s32 1, %s1112_s20  ;;  %s34_s24 = sadd.s32 1, %s1116_s21  ;;  %s1120_s22 = sphi %s1162_s22, %s15_s22   ;;  %s1116_s21 = sphi %s1160_s21, %s1319_s21   ;;  %s1112_s20 = sphi %s1158_s20, %s1318_s20   ;;  %s1108_s19 = sphi %s1156_s19, %s1317_s19   ;;  %s1104_s18 = sphi %s1154_s18, %s1316_s18  }
   0x4   : > { %p32_p0 = scmp.ge.s32.totalorder %s30_s23, 4  ;;  %p902_p1 = scmp.ge.s32.totalorder %s1120_s22, 1 }
   0x5   : > { %p289_p2 = scmp.lt.s32.totalorder %s1120_s22, 9 }
   0x6   : > { %s1321_s23 = smov (%p32_p0, %s30_s23), 0  ;;  %s1323_s24 = smov (!%p32_p0, %s34_s24), %s1116_s21 }
   0x7   : > { %p290_p3 = pnand %p902_p1, %p289_p2  ;;  %p36_p4 = scmp.ge.s32.totalorder %s1323_s24, 2 }
   0x8   : > { %s1209_s8 = sshll.u32 (!%p290_p3), %s1104_s18, 1  ;;  %p366_p5 = scmp.lt.s32.totalorder (!%p290_p3), %s1108_s19, 1 }
   0x9   : > { %s1325_s24 = smov (%p36_p4, %s1323_s24), 0  ;;  %293 = sbr.rel (%p290_p3) target bundleno = 261 (0x105), region = 40 }
   0xa   : > { %s381_s11 = sadd.s32 (!%p290_p3), 1, %s1209_s8  ;;  %p368_p7 = scmp.lt.s32.totalorder (!%p290_p3), %s1209_s8, 9 }
   0xb   : > { %p385_p6 = scmp.lt.s32.totalorder (!%p290_p3), %s381_s11, 9  ;;  %p419_p9 = scmp.lt.s32.totalorder (!%p290_p3), %s1104_s18, 3 }
   0xe   : > { %v1064_v0 = vld [vmem:[%s1313_s3 + $0x44] ss:$0 sps:$4 sm:$0xff]   ;;  %vm490_vm0 = vcmask 1043456   ;;  %v1122_v1 = vmov 0.0   ;;  %v1065_v2 = vld [vmem:[%s1313_s3 + $0x20] ss:$0 sps:$4 sm:$0xff]  }
   0xf   : > { %979 = vmatprep.subr.bf16.mxu0 %v1122_v1  ;;  %993 = vmatprep.subr.bf16.mxu1 %v1122_v1  ;;  %v492_v3 = vsel %vm490_vm0, %v1064_v0, 0  ;;  %v571_v4 = vsel %vm490_vm0, %v1065_v2, 0  ;;  %v1066_v5 = vld [vmem:[%s1313_s3 + $0x3c] sm:$0xff]   ;;  %vm1123_vm1 = vmmov 0   ;;  %v1068_v7 = vld [vmem:[%s1313_s3 + $0x34] sm:$0xff]   ;;  %s1327_s19 = smov (!%p366_p5, %s1108_s19), 1 }
  0x10   : > { %980 = vmatpush3.bf16.msra.mxu0 %v492_v3  ;;  %994 = vmatpush3.bf16.msra.mxu1 %v571_v4  ;;  %v1067_v6 = vld [vmem:[%s1313_s3 + $0x18] sm:$0xff]   ;;  %v1069_v8 = vld [vmem:[%s1313_s3 + $0x10] sm:$0xff]   ;;  %s1228_s14 = smul.u32 20, %s1327_s19  ;;  %s1329_s11 = smov (!%p385_p6, %s381_s11), 9  ;;  %v1071_v10 = vld [vmem:[%s1313_s3 + $0x8] sm:$0xff]   ;;  %vm486_vm2 = vcmask 588800  }
  0x11   : > { %981 = vmatprep.subr.bf16.mxu0 %v1122_v1  ;;  %995 = vmatprep.subr.bf16.mxu1 %v1122_v1  ;;  %v1070_v9 = vld [vmem:[%s1313_s3 + $0x2c] sm:$0xff]   ;;  %s369_s26 = scalar_select %p368_p7, %s1209_s8, 9  ;;  %v1072_v11 = vld [vmem:[%s1313_s3 + $0x24] sm:$0xff]   ;;  %v1078_v18 = vld [vmem:[%s1313_s3 + $0x58] sm:$0xff]   ;;  %vm726_vm3 = vcmask 125952  }
  0x12   : > { %989 = vmatprep.mubr.msk.bf16.mxu0 %vm1123_vm1, %v1122_v1  ;;  %1003 = vmatprep.mubr.msk.bf16.mxu1 %vm1123_vm1, %v1122_v1  ;;  %s907_s27 = sshll.u32 %s1329_s11, 1  ;;  %v1073_v12 = vld [vmem:[%s1313_s3] sm:$0xff]   ;;  %v1076_v13 = vld [vmem:[%s1313_s3 + $0x68] ss:$0 sps:$4 sm:$0xff]   ;;  %v1079_v19 = vld [vmem:[%s1313_s3 + $0x50] sm:$0xff]   ;;  %s1333_s18 = smov (!%p419_p9, %s1104_s18), 3 }
  0x13   : > { %s392_s28 = sadd.s32 %s1228_s14, %s907_s27  ;;  %s904_s29 = sshll.u32 %s369_s26, 1  ;;  %v662_v16 = vsel %vm490_vm0, %v1076_v13, 0  ;;  %v1077_v17 = vld [vmem:[%s1313_s3 + $0x60] sm:$0xff]   ;;  %v1080_v20 = vld [vmem:[%s1313_s3 + $0x48] sm:$0xff]  }
  0x14   : > { %982 = vmatpush3.bf16.msra.mxu0 %v1066_v5  ;;  %996 = vmatpush3.bf16.msra.mxu1 %v1067_v6  ;;  %s908_s7 = sshll.u32 %s392_s28, 2  ;;  %s375_s9 = sadd.s32 %s1228_s14, %s904_s29  ;;  %v954_v32 = vld [vmem:[%s1314_s4] ss:$0 sm:$0xff] }
  0x15   : > { %983 = vmatprep.subr.bf16.mxu0 %v1122_v1  ;;  %997 = vmatprep.subr.bf16.mxu1 %v1122_v1  ;;  %s394_s11 = scalar_lea.vmem %s1311_s1, %s908_s7  ;;  %s905_s16 = sshll.u32 %s375_s9, 2 }
  0x16   : > { %s377_s28 = scalar_lea.vmem %s1310_s0, %s905_s16  ;;  %s399_s29 = sadd.s32 2, %s1209_s8  ;;  %v1074_v14 = vld [vmem:[%s394_s11] sm:$0xff]  }
  0x17   : > { %p403_p8 = scmp.lt.s32.totalorder %s399_s29, 9  ;;  %v1075_v15 = vld [vmem:[%s377_s28] sm:$0xff]   ;;  %s912_s26 = sshll.u32 %s1333_s18, 1 }
  0x18   : > { %984 = vmatpush3.bf16.msra.mxu0 %v1068_v7  ;;  %998 = vmatpush3.bf16.msra.mxu1 %v1069_v8  ;;  %s913_s27 = sshll.u32 %s1327_s19, 3 }
  0x19   : > { %985 = vmatprep.subr.bf16.mxu0 %v1122_v1  ;;  %999 = vmatprep.subr.bf16.mxu1 %v1122_v1  ;;  %s1331_s29 = smov (!%p403_p8, %s399_s29), 9  ;;  %s426_s28 = sadd.s32 %s913_s27, %s912_s26 }
  0x1a   : > { %s910_s30 = sshll.u32 %s1331_s29, 1  ;;  %s914_s6 = sshll.u32 %s426_s28, 2 }
  0x1b   : > { %s410_s8 = sadd.s32 %s1228_s14, %s910_s30  ;;  %s428_s18 = scalar_lea.vmem %s1315_s5, %s914_s6 }
  0x1c   : > { %986 = vmatpush3.bf16.msra.mxu0 %v1070_v9  ;;  %1000 = vmatpush3.bf16.msra.mxu1 %v1071_v10  ;;  %s911_s9 = sshll.u32 %s410_s8, 2 }
  0x1d   : > { %987 = vmatprep.subr.bf16.mxu0 %v1122_v1  ;;  %1001 = vmatprep.subr.bf16.mxu1 %v1122_v1  ;;  %s412_s13 = scalar_lea.vmem %s1312_s2, %s911_s9 }
  0x1e   : > { %v1081_v21 = vld [vmem:[%s412_s13] sm:$0xff]  }
  0x20   : > { %988 = vmatpush3.bf16.msra.mxu0 %v1072_v11  ;;  %1002 = vmatpush3.bf16.msra.mxu1 %v1073_v12 }
  0x21   : > { %1007 = vmatprep.subr.bf16.mxu0 %v1122_v1 }
  0x23   : > { %990 = vmatmul.mubr.msk.bf16.vlgmr.msra.gmra.mxu0 %vm486_vm2, %v1074_v14  ;;  %1004 = vmatmul.mubr.msk.bf16.vlgmr.msra.gmra.mxu1 %vm486_vm2, %v1075_v15 }
  0x24   : > { %1008 = vmatpush3.bf16.msra.mxu0 %v662_v16  ;;  %1017 = vmatprep.mubr.msk.bf16.mxu0 %vm1123_vm1, %v1122_v1 }
  0x25   : > { %1009 = vmatprep.subr.bf16.mxu0 %v1122_v1 }
  0x28   : > { %1010 = vmatpush3.bf16.msra.mxu0 %v1077_v17 }
  0x29   : > { %1011 = vmatprep.subr.bf16.mxu0 %v1122_v1 }
  0x2c   : > { %1012 = vmatpush3.bf16.msra.mxu0 %v1078_v18 }
  0x2d   : > { %1013 = vmatprep.subr.bf16.mxu0 %v1122_v1 }
  0x30   : > { %1014 = vmatpush3.bf16.msra.mxu0 %v1079_v19 }
  0x31   : > { %1015 = vmatprep.subr.bf16.mxu0 %v1122_v1 }
  0x34   : > { %1016 = vmatpush3.bf16.msra.mxu0 %v1080_v20 }
  0x37   : > { %1018 = vmatmul.mubr.msk.bf16.vlgmr.msra.gmra.mxu0 %vm486_vm2, %v1081_v21 }
  0xe3   : > { %v528_v22 = vpop.f32.mrf.mxu0  ;;  %v607_v23 = vpop.f32.mrf.mxu1 }
  0xe4   : > { %v608_v30 = vadd.f32 %v607_v23, %v528_v22 }
  0xe5   : > { %v991_v24 = vpop.f32.mrf.mxu0  ;;  %v1005_v25 = vpop.f32.mrf.mxu1 }
  0xe7   : > { %v531_v26 = vpop.f32.mrf.mxu0  ;;  %v610_v27 = vpop.f32.mrf.mxu1 }
  0xe8   : > { %v611_v35 = vadd.f32 %v610_v27, %v531_v26 }
  0xe9   : > { %v992_v28 = vpop.f32.mrf.mxu0  ;;  %v1006_v29 = vpop.f32.mrf.mxu1 }
  0xf7   : > { %v698_v31 = vpop.f32.mrf.mxu0 }
  0xf8   : > { %v705_v33 = vadd.f32 %v698_v31, %v608_v30 }
  0xf9   : > { %v1019_v34 = vpop.f32.mrf.mxu0 }
  0xfa   : > { %v714_v36 = vadd.f32 %v954_v32, %v705_v33 }
  0xfb   : > { %v701_v37 = vpop.f32.mrf.mxu0 }
  0xfc   : > { %v716_v38 = vmax.f32 %v714_v36, 0.0  ;;  %v706_v39 = vadd.f32 %v701_v37, %v611_v35 }
  0xfd   : > { %v1020_v40 = vpop.f32.mrf.mxu0 }
  0xfe   : > { %v959_v41 = vpack.c.bf16 %v716_v38, %v716_v38  ;;  %v715_v42 = vadd.f32 %v954_v32, %v706_v39 }
 0x100   : > { %727 = vst.msk [vmem:[%s428_s18] sm:$0xf] %vm726_vm3, %v959_v41  ;;  %v717_v43 = vmax.f32 %v715_v42, 0.0 }
 0x102   : > { %v960_v44 = vpack.c.bf16 %v717_v43, %v717_v43 }
 0x104   : > { %728 = vst.msk [vmem:[%s428_s18 + $0x4] sm:$0xf] %vm726_vm3, %v960_v44 }
 0x105 PF: > { %s15_s22 = sadd.s32 1, %s1120_s22   ;;  %s1316_s18 = smov %s1112_s20 }
 0x106   : > { %p12_p10 = scmp.ge.s32.totalorder %s15_s22, 10   ;;  %s1317_s19 = smov %s1116_s21 }
 0x107   : > { %s1318_s20 = smov %s1321_s23  ;;  %s1319_s21 = smov %s1325_s24 }
 0x108   :  { %14 = sbr.rel (!%p12_p10) target bundleno = 3 (0x3), region = 78 }

// kernel: _lambda_.13
= control target key start
LH: loop header
LB: loop body
LE: loop exit
PB: predicated region body
PF: predicated region fallthrough
CT: control target
= control target key end

     0   :  { %s1496_s27 = smov 0   ;;  %s1498_s28 = smov 0   ;;  %s1715_s0 = inlined_call_operand.vmem [shape: bf16[2,6,16,144], index: 0, kind: input, shape index: {}, may-alias: {0,1,2}]   ;;  %s1716_s1 = inlined_call_operand.vmem [shape: bf16[2,6,16,144], index: 1, kind: input, shape index: {}, may-alias: {0,1,2}]   ;;  %s1717_s2 = inlined_call_operand.vmem [shape: bf16[2,6,16,144], index: 2, kind: input, shape index: {}, may-alias: {0,1,2}]   ;;  %s1718_s3 = inlined_call_operand.vmem [shape: bf16[3,144,16], index: 3, kind: input, shape index: {}]   ;;  %s1719_s4 = inlined_call_operand.vmem [shape: f32[1,16], index: 4, kind: input, shape index: {}]   ;;  %s1720_s5 = inlined_call_operand.vmem [shape: bf16[2,4,16,8], index: 5, kind: input, shape index: {}]   ;;  %s1721_s6 = inlined_call_operand.vmem [shape: bf16[1,8,16], index: 6, kind: input, shape index: {}]   ;;  %s1722_s7 = inlined_call_operand.vmem [shape: f32[1,16], index: 7, kind: input, shape index: {}]   ;;  %s1723_s8 = inlined_call_operand.vmem [shape: bf16[2,4,16,16], index: 8, kind: output, shape index: {}]  }
   0x1   :  { %s1500_s29 = smov 0   ;;  %s1502_s30 = smov 0  }
   0x2   :  { %s1504_s9 = smov 0  }
   0x3 LB: > { %s33_s10 = sadd.s32 1, %s1438_s29  ;;  %s37_s11 = sadd.s32 1, %s1442_s30  ;;  %s1446_s9 = sphi %s1504_s9, %s18_s9   ;;  %s1442_s30 = sphi %s1502_s30, %s1727_s30   ;;  %s1438_s29 = sphi %s1500_s29, %s1726_s29   ;;  %s1434_s28 = sphi %s1498_s28, %s1725_s28   ;;  %s1430_s27 = sphi %s1496_s27, %s1724_s27  }
   0x4   : > { %p35_p0 = scmp.ge.s32.totalorder %s33_s10, 4  ;;  %p1224_p1 = scmp.ge.s32.totalorder %s1446_s9, 1 }
   0x5   : > { %p378_p2 = scmp.lt.s32.totalorder %s1446_s9, 9 }
   0x6   : > { %s1729_s10 = smov (%p35_p0, %s33_s10), 0  ;;  %s1731_s11 = smov (!%p35_p0, %s37_s11), %s1442_s30 }
   0x7   : > { %p379_p3 = pnand %p1224_p1, %p378_p2  ;;  %p39_p4 = scmp.ge.s32.totalorder %s1731_s11, 2 }
   0x8   : > { %p473_p5 = scmp.lt.s32.totalorder (!%p379_p3), %s1434_s28, 1  ;;  %s487_s18 = sadd.s32 (!%p379_p3), 1, %s1430_s27 }
   0x9   : > { %s1733_s11 = smov (%p39_p4, %s1731_s11), 0  ;;  %382 = sbr.rel (%p379_p3) target bundleno = 295 (0x127), region = 52 }
   0xa   : > { %p491_p6 = scmp.lt.s32.totalorder (!%p379_p3), %s487_s18, 5  ;;  %p524_p7 = scmp.lt.s32.totalorder (!%p379_p3), %s1430_s27, 3 }
   0xb   : > { %p475_p8 = scmp.lt.s32.totalorder (!%p379_p3), %s1430_s27, 5  ;;  %s504_s16 = sadd.s32 (!%p379_p3), 2, %s1430_s27 }
   0xc   : > { %p508_p9 = scmp.lt.s32.totalorder (!%p379_p3), %s504_s16, 5 }
   0xe   : > { %v1371_v0 = vld [vmem:[%s1718_s3 + $0x80] sm:$0xff]   ;;  %v1448_v1 = vmov 0   ;;  %v1372_v2 = vld [vmem:[%s1718_s3 + $0x38] sm:$0xff]   ;;  %v1374_v4 = vld [vmem:[%s1718_s3 + $0x30] sm:$0xff]   ;;  %s1735_s28 = smov (!%p473_p5, %s1434_s28), 1  ;;  %s1737_s18 = smov (!%p491_p6, %s487_s18), 5 }
   0xf   : > { %658 = vmatprep.subr.bf16.mxu0 %v1448_v1  ;;  %765 = vmatprep.subr.bf16.mxu1 %v1448_v1  ;;  %v1373_v3 = vld [vmem:[%s1718_s3 + $0x78] sm:$0xff]   ;;  %s1548_s21 = smul.u32 24, %s1735_s28  ;;  %v1375_v5 = vld [vmem:[%s1718_s3 + $0x70] sm:$0xff]   ;;  %v1376_v6 = vld [vmem:[%s1718_s3 + $0x28] sm:$0xff]   ;;  %s1227_s26 = sshll.u32 %s1737_s18, 2  ;;  %vm654_vm0 = vcmask 130048  }
  0x10   : > { %659 = vmatpush1.bf16.msra.mxu0 %v1371_v0  ;;  %766 = vmatpush1.bf16.msra.mxu1 %v1372_v2  ;;  %v1377_v7 = vld [vmem:[%s1718_s3 + $0x68] sm:$0xff]   ;;  %v1378_v8 = vld [vmem:[%s1718_s3 + $0x20] sm:$0xff]   ;;  %v1380_v10 = vld [vmem:[%s1718_s3 + $0x18] sm:$0xff]   ;;  %s525_s23 = scalar_select %p524_p7, %s1430_s27, 3  ;;  %vm964_vm1 = vcmask 1043456   ;;  %v1449_v25 = vmov 0.0  }
  0x11   : > { %660 = vmatprep.subr.bf16.mxu0 %v1448_v1  ;;  %767 = vmatprep.subr.bf16.mxu1 %v1448_v1  ;;  %s499_s14 = sadd.s32 %s1548_s21, %s1227_s26  ;;  %v1379_v9 = vld [vmem:[%s1718_s3 + $0x60] sm:$0xff]   ;;  %v1381_v11 = vld [vmem:[%s1718_s3 + $0x58] sm:$0xff]   ;;  %v1382_v12 = vld [vmem:[%s1718_s3 + $0x10] sm:$0xff]   ;;  %s1232_s18 = sshll.u32 %s1735_s28, 3  ;;  %vm1450_vm2 = vmmov 0   ;;  %vm960_vm3 = vcmask 64512  }
  0x12   : > { %s1228_s17 = sshll.u32 %s499_s14, 2  ;;  %s1231_s19 = sshll.u32 %s525_s23, 1  ;;  %v1383_v14 = vld [vmem:[%s1718_s3 + $0x50] sm:$0xff]   ;;  %v1384_v15 = vld [vmem:[%s1718_s3 + $0x8] sm:$0xff]   ;;  %v1386_v18 = vld [vmem:[%s1718_s3] sm:$0xff]   ;;  %vm1021_vm4 = vcmask 125952  }
  0x13   : > { %s1581_s26 = scalar_lea.vmem %s1716_s1, %s1228_s17  ;;  %s1599_s28 = sadd.s32 %s1232_s18, %s1231_s19  ;;  %v1385_v17 = vld [vmem:[%s1718_s3 + $0x48] sm:$0xff]   ;;  %v1388_v20 = vld [vmem:[%s1718_s3 + $0x40] sm:$0xff]   ;;  %v1397_v29 = vld [vmem:[%s1718_s3 + $0xb8] sm:$0xff]  }
  0x14   : > { %661 = vmatpush1.bf16.msra.mxu0 %v1373_v3  ;;  %768 = vmatpush1.bf16.msra.mxu1 %v1374_v4  ;;  %s476_s14 = scalar_select %p475_p8, %s1430_s27, 5  ;;  %v1391_v13 = vld [vmem:[%s1581_s26 + $0x4] ss:$8 sps:$4 sm:$0xff]   ;;  %v1389_v21 = vld [vmem:[%s1581_s26] ss:$8 sps:$4 sm:$0xff]   ;;  %v1398_v31 = vld [vmem:[%s1718_s3 + $0xb0] sm:$0xff]  }
  0x15   : > { %662 = vmatprep.subr.bf16.mxu0 %v1448_v1  ;;  %769 = vmatprep.subr.bf16.mxu1 %v1448_v1  ;;  %s1233_s18 = sshll.u32 %s1599_s28, 2  ;;  %s1739_s16 = smov (!%p508_p9, %s504_s16), 5  ;;  %v1387_v19 = vld [vmem:[%s1718_s3 + $0x88] sm:$0xff]   ;;  %v947_v22 = vld [vmem:[%s1721_s6] sm:$0xf]  ;;  %v1401_v34 = vld [vmem:[%s1718_s3 + $0x98] sm:$0xff]  }
  0x16   : > { %s1225_s17 = sshll.u32 %s476_s14, 2  ;;  %1266 = vmatprep.mubr.msk.bf16.mxu0 %vm654_vm0, %v1391_v13  ;;  %s1628_s25 = scalar_lea.vmem %s1720_s5, %s1233_s18  ;;  %v1395_v24 = vld [vmem:[%s1718_s3 + $0xc8] sm:$0xff]   ;;  %v966_v26 = vsel %vm964_vm1, %v947_v22, 0  ;;  %v1396_v28 = vld [vmem:[%s1718_s3 + $0xc0] sm:$0xff]   ;;  %v1402_v35 = vld [vmem:[%s1718_s3 + $0x90] sm:$0xff]  }
  0x17   : > { %s483_s20 = sadd.s32 %s1548_s21, %s1225_s17  ;;  %s1229_s12 = sshll.u32 %s1739_s16, 2  ;;  %v1403_v30 = vld [vmem:[%s1628_s25] sm:$0xff]   ;;  %v1399_v32 = vld [vmem:[%s1718_s3 + $0xa8] sm:$0xff]   ;;  %v1404_v36 = vld [vmem:[%s1718_s3 + $0xd0] sm:$0xff]  }
  0x18   : > { %663 = vmatpush1.bf16.msra.mxu0 %v1375_v5  ;;  %770 = vmatpush1.bf16.msra.mxu1 %v1376_v6  ;;  %s1226_s22 = sshll.u32 %s483_s20, 2  ;;  %s516_s13 = sadd.s32 %s1548_s21, %s1229_s12  ;;  %v1400_v33 = vld [vmem:[%s1718_s3 + $0xa0] sm:$0xff]  }
  0x19   : > { %664 = vmatprep.subr.bf16.mxu0 %v1448_v1  ;;  %771 = vmatprep.subr.bf16.mxu1 %v1448_v1  ;;  %s1604_s23 = scalar_lea.vmem %s1715_s0, %s1226_s22  ;;  %s1230_s19 = sshll.u32 %s516_s13, 2  ;;  %v1310_v50 = vld [vmem:[%s1722_s7] ss:$0 sm:$0xff] }
  0x1a   : > { %v1394_v16 = vld [vmem:[%s1604_s23 + $0x4] ss:$8 sps:$4 sm:$0xff]   ;;  %s1641_s24 = scalar_lea.vmem %s1717_s2, %s1230_s19  ;;  %v1392_v23 = vld [vmem:[%s1604_s23] ss:$8 sps:$4 sm:$0xff]   ;;  %s547_s22 = scalar_lea.vmem %s1723_s8, %s1233_s18 }
  0x1b   : > { %1278 = vmatprep.mubr.msk.bf16.mxu1 %vm654_vm0, %v1394_v16  ;;  %v1405_v27 = vld [vmem:[%s1641_s24 + $0x4] ss:$8 sps:$4 sm:$0xff]   ;;  %v1407_v37 = vld [vmem:[%s1641_s24] ss:$8 sps:$4 sm:$0xff]  }
  0x1c   : > { %665 = vmatpush1.bf16.msra.mxu0 %v1377_v7  ;;  %772 = vmatpush1.bf16.msra.mxu1 %v1378_v8  ;;  %v1309_v53 = vld [vmem:[%s1719_s4] ss:$0 sm:$0xff] }
  0x1d   : > { %666 = vmatprep.subr.bf16.mxu0 %v1448_v1  ;;  %773 = vmatprep.subr.bf16.mxu1 %v1448_v1 }
  0x20   : > { %667 = vmatpush1.bf16.msra.mxu0 %v1379_v9  ;;  %774 = vmatpush1.bf16.msra.mxu1 %v1380_v10 }
  0x21   : > { %668 = vmatprep.subr.bf16.mxu0 %v1448_v1  ;;  %775 = vmatprep.subr.bf16.mxu1 %v1448_v1 }
  0x24   : > { %669 = vmatpush1.bf16.msra.mxu0 %v1381_v11  ;;  %776 = vmatpush1.bf16.msra.mxu1 %v1382_v12 }
  0x25   : > { %670 = vmatprep.subr.bf16.mxu0 %v1448_v1  ;;  %777 = vmatprep.subr.bf16.mxu1 %v1448_v1 }
  0x28   : > { %671 = vmatpush1.bf16.msra.mxu0 %v1383_v14  ;;  %778 = vmatpush1.bf16.msra.mxu1 %v1384_v15 }
  0x29   : > { %672 = vmatprep.subr.bf16.mxu0 %v1448_v1  ;;  %779 = vmatprep.subr.bf16.mxu1 %v1448_v1 }
  0x2c   : > { %673 = vmatpush1.bf16.msra.mxu0 %v1385_v17  ;;  %780 = vmatpush1.bf16.msra.mxu1 %v1386_v18 }
  0x2d   : > { %688 = vmatprep.subr.bf16.mxu0 %v1448_v1  ;;  %795 = vmatprep.subr.bf16.mxu1 %v1448_v1 }
  0x30   : > { %689 = vmatpush2.bf16.msra.mxu0 %v1387_v19  ;;  %796 = vmatpush2.bf16.msra.mxu1 %v1388_v20 }
  0x31   : > { %893 = vmatprep.subr.bf16.mxu0 %v1448_v1  ;;  %1321 = vmatprep.subr.bf16.mxu1 %v1449_v25 }
  0x33   : > { %691 = vmatmul.mubr.bf16.vlgmr.msra.gmra.mxu0 %v1389_v21  ;;  %798 = vmatmul.mubr.bf16.vlgmr.msra.gmra.mxu1 %v1392_v23 }
  0x34   : > { %894 = vmatpush1.bf16.msra.mxu0 %v1395_v24  ;;  %1322 = vmatpush3.bf16.msra.mxu1 %v966_v26 }
  0x35   : > { %895 = vmatprep.subr.bf16.mxu0 %v1448_v1  ;;  %1323 = vmatprep.mubr.msk.bf16.mxu1 %vm1450_vm2, %v1449_v25 }
  0x36   : > { %1308 = vmatprep.mubr.msk.bf16.mxu0 %vm654_vm0, %v1405_v27 }
  0x38   : > { %896 = vmatpush1.bf16.msra.mxu0 %v1396_v28 }
  0x39   : > { %897 = vmatprep.subr.bf16.mxu0 %v1448_v1 }
  0x3b   : > { %1324 = vmatmul.mubr.msk.bf16.vlgmr.msra.gmra.mxu1 %vm960_vm3, %v1403_v30 }
  0x3c   : > { %898 = vmatpush1.bf16.msra.mxu0 %v1397_v29 }
  0x3d   : > { %899 = vmatprep.subr.bf16.mxu0 %v1448_v1 }
  0x40   : > { %900 = vmatpush1.bf16.msra.mxu0 %v1398_v31 }
  0x41   : > { %901 = vmatprep.subr.bf16.mxu0 %v1448_v1 }
  0x44   : > { %902 = vmatpush1.bf16.msra.mxu0 %v1399_v32 }
  0x45   : > { %903 = vmatprep.subr.bf16.mxu0 %v1448_v1 }
  0x48   : > { %904 = vmatpush1.bf16.msra.mxu0 %v1400_v33 }
  0x49   : > { %905 = vmatprep.subr.bf16.mxu0 %v1448_v1 }
  0x4c   : > { %906 = vmatpush1.bf16.msra.mxu0 %v1401_v34 }
  0x4d   : > { %907 = vmatprep.subr.bf16.mxu0 %v1448_v1 }
  0x50   : > { %908 = vmatpush1.bf16.msra.mxu0 %v1402_v35 }
  0x51   : > { %923 = vmatprep.subr.bf16.mxu0 %v1448_v1 }
  0x54   : > { %924 = vmatpush2.bf16.msra.mxu0 %v1404_v36 }
  0x57   : > { %926 = vmatmul.mubr.bf16.vlgmr.msra.gmra.mxu0 %v1407_v37 }
  0xf3   : > { %v692_v38 = vpop.f32.mrf.mxu0  ;;  %v799_v39 = vpop.f32.mrf.mxu1 }
  0xf4   : > { %v800_v51 = vadd.f32 %v799_v39, %v692_v38 }
  0xf5   : > { %v694_v40 = vpop.f32.mrf.mxu0  ;;  %v801_v41 = vpop.f32.mrf.mxu1 }
  0xf7   : > { %v695_v42 = vpop.f32.mrf.mxu0  ;;  %v802_v43 = vpop.f32.mrf.mxu1 }
  0xf8   : > { %v803_v57 = vadd.f32 %v802_v43, %v695_v42 }
  0xf9   : > { %v697_v44 = vpop.f32.mrf.mxu0  ;;  %v804_v45 = vpop.f32.mrf.mxu1 }
  0xfb   : > { %v1002_v46 = vpop.f32.mrf.mxu1 }
  0xfc   : > { %v1003_v54 = vadd.f32 %v1310_v50, %v1002_v46 }
  0xfd   : > { %v1325_v47 = vpop.f32.mrf.mxu1 }
  0xff   : > { %v1005_v48 = vpop.f32.mrf.mxu1 }
 0x100   : > { %v1006_v0 = vadd.f32 %v1310_v50, %v1005_v48 }
 0x101   : > { %v1326_v49 = vpop.f32.mrf.mxu1 }
 0x117   : > { %v927_v52 = vpop.f32.mrf.mxu0 }
 0x118   : > { %v934_v55 = vadd.f32 %v927_v52, %v800_v51 }
 0x119   : > { %v929_v56 = vpop.f32.mrf.mxu0 }
 0x11a   : > { %v943_v58 = vadd.f32 %v1309_v53, %v934_v55 }
 0x11b   : > { %v930_v59 = vpop.f32.mrf.mxu0 }
 0x11c   : > { %v1009_v60 = vadd.f32 %v1003_v54, %v943_v58  ;;  %v935_v61 = vadd.f32 %v930_v59, %v803_v57 }
 0x11d   : > { %v932_v62 = vpop.f32.mrf.mxu0 }
 0x11e   : > { %v1011_v63 = vmax.f32 %v1009_v60, 0.0  ;;  %v944_v1 = vadd.f32 %v1309_v53, %v935_v61 }
 0x120   : > { %v1317_v2 = vpack.c.bf16 %v1011_v63, %v1011_v63  ;;  %v1010_v3 = vadd.f32 %v1006_v0, %v944_v1 }
 0x122   : > { %1022 = vst.msk [vmem:[%s547_s22] sm:$0xf] %vm1021_vm4, %v1317_v2  ;;  %v1012_v4 = vmax.f32 %v1010_v3, 0.0 }
 0x124   : > { %v1318_v5 = vpack.c.bf16 %v1012_v4, %v1012_v4 }
 0x126   : > { %1023 = vst.msk [vmem:[%s547_s22 + $0x4] sm:$0xf] %vm1021_vm4, %v1318_v5 }
 0x127 PF: > { %s18_s9 = sadd.s32 1, %s1446_s9   ;;  %s1724_s27 = smov %s1438_s29 }
 0x128   : > { %p15_p10 = scmp.ge.s32.totalorder %s18_s9, 10   ;;  %s1725_s28 = smov %s1442_s30 }
 0x129   : > { %s1726_s29 = smov %s1729_s10  ;;  %s1727_s30 = smov %s1733_s11 }
 0x12a   :  { %17 = sbr.rel (!%p15_p10) target bundleno = 3 (0x3), region = 93 }

// kernel: _lambda_.14
= control target key start
LH: loop header
LB: loop body
LE: loop exit
PB: predicated region body
PF: predicated region fallthrough
CT: control target
= control target key end

     0   :  { %s1207_s18 = smov 0   ;;  %s1209_s19 = smov 0   ;;  %s1404_s0 = inlined_call_operand.vmem [shape: bf16[2,6,8,144], index: 0, kind: input, shape index: {}, may-alias: {0,1,2}]   ;;  %s1405_s1 = inlined_call_operand.vmem [shape: bf16[2,6,8,144], index: 1, kind: input, shape index: {}, may-alias: {0,1,2}]   ;;  %s1406_s2 = inlined_call_operand.vmem [shape: bf16[2,6,8,144], index: 2, kind: input, shape index: {}, may-alias: {0,1,2}]   ;;  %s1407_s3 = inlined_call_operand.vmem [shape: bf16[3,144,32], index: 3, kind: input, shape index: {}]   ;;  %s1408_s4 = inlined_call_operand.vmem [shape: f32[1,32], index: 4, kind: input, shape index: {}]   ;;  %s1409_s5 = inlined_call_operand.vmem [shape: bf16[2,2,8,32], index: 5, kind: output, shape index: {}]  }
   0x1   :  { %s1211_s20 = smov 0   ;;  %s1213_s21 = smov 0  }
   0x2   :  { %s1215_s22 = smov 0  }
   0x3 LB: > { %s30_s23 = sadd.s32 1, %s1166_s20  ;;  %s34_s24 = sadd.s32 1, %s1170_s21  ;;  %s1174_s22 = sphi %s1215_s22, %s15_s22   ;;  %s1170_s21 = sphi %s1213_s21, %s1414_s21   ;;  %s1166_s20 = sphi %s1211_s20, %s1413_s20   ;;  %s1162_s19 = sphi %s1209_s19, %s1412_s19   ;;  %s1158_s18 = sphi %s1207_s18, %s1411_s18  }
   0x4   : > { %p32_p0 = scmp.ge.s32.totalorder %s30_s23, 2  ;;  %p974_p1 = scmp.ge.s32.totalorder %s1174_s22, 1 }
   0x5   : > { %p286_p2 = scmp.lt.s32.totalorder %s1174_s22, 5 }
   0x6   : > { %s1416_s23 = smov (%p32_p0, %s30_s23), 0  ;;  %s1418_s24 = smov (!%p32_p0, %s34_s24), %s1170_s21 }
   0x7   : > { %p287_p3 = pnand %p974_p1, %p286_p2  ;;  %p36_p4 = scmp.ge.s32.totalorder %s1418_s24, 2 }
   0x8   : > { %s1248_s29 = sshll.u32 (!%p287_p3), %s1158_s18, 1  ;;  %p360_p5 = scmp.lt.s32.totalorder (!%p287_p3), %s1162_s19, 1 }
   0x9   : > { %s1420_s24 = smov (%p36_p4, %s1418_s24), 0  ;;  %290 = sbr.rel (%p287_p3) target bundleno = 289 (0x121), region = 40 }
   0xa   : > { %s375_s9 = sadd.s32 (!%p287_p3), 1, %s1248_s29  ;;  %p362_p7 = scmp.lt.s32.totalorder (!%p287_p3), %s1248_s29, 5 }
   0xb   : > { %p378_p6 = scmp.lt.s32.totalorder (!%p287_p3), %s375_s9, 5  ;;  %s392_s30 = sadd.s32 (!%p287_p3), 2, %s1248_s29 }
   0xc   : > { %p1294_p8 = scmp.lt.s32.totalorder (!%p287_p3), %s392_s30, 5  ;;  %p410_p9 = scmp.lt.s32.totalorder (!%p287_p3), %s1158_s18, 1 }
   0xe   : > { %v1103_v0 = vld [vmem:[%s1407_s3 + $0x80] sm:$0xff]   ;;  %v1176_v1 = vmov 0   ;;  %v1104_v2 = vld [vmem:[%s1407_s3 + $0x38] sm:$0xff]   ;;  %v1106_v4 = vld [vmem:[%s1407_s3 + $0x30] sm:$0xff]   ;;  %s1422_s19 = smov (!%p360_p5, %s1162_s19), 1  ;;  %s1424_s9 = smov (!%p378_p6, %s375_s9), 5 }
   0xf   : > { %523 = vmatprep.subr.bf16.mxu0 %v1176_v1  ;;  %626 = vmatprep.subr.bf16.mxu1 %v1176_v1  ;;  %v1105_v3 = vld [vmem:[%s1407_s3 + $0x78] sm:$0xff]   ;;  %v1107_v5 = vld [vmem:[%s1407_s3 + $0x70] sm:$0xff]   ;;  %s1265_s12 = smul.u32 12, %s1422_s19  ;;  %v1108_v6 = vld [vmem:[%s1407_s3 + $0x28] sm:$0xff]   ;;  %s979_s15 = sshll.u32 %s1424_s9, 1  ;;  %vm519_vm0 = vcmask 130048  }
  0x10   : > { %524 = vmatpush1.bf16.msra.mxu0 %v1103_v0  ;;  %627 = vmatpush1.bf16.msra.mxu1 %v1104_v2  ;;  %v1109_v7 = vld [vmem:[%s1407_s3 + $0x68] sm:$0xff]   ;;  %v1110_v8 = vld [vmem:[%s1407_s3 + $0x20] sm:$0xff]   ;;  %s1426_s29 = smov (!%p362_p7, %s1248_s29), 5  ;;  %v1112_v10 = vld [vmem:[%s1407_s3 + $0x18] sm:$0xff]   ;;  %s1428_s30 = smov (!%p1294_p8, %s392_s30), 5  ;;  %vm800_vm1 = vcmask 257024  }
  0x11   : > { %525 = vmatprep.subr.bf16.mxu0 %v1176_v1  ;;  %628 = vmatprep.subr.bf16.mxu1 %v1176_v1  ;;  %s386_s25 = sadd.s32 %s1265_s12, %s979_s15  ;;  %v1111_v9 = vld [vmem:[%s1407_s3 + $0x60] sm:$0xff]   ;;  %s976_s14 = sshll.u32 %s1426_s29, 1  ;;  %v1113_v11 = vld [vmem:[%s1407_s3 + $0x58] sm:$0xff]   ;;  %v1114_v13 = vld [vmem:[%s1407_s3 + $0x10] sm:$0xff]  }
  0x12   : > { %s980_s28 = sshll.u32 %s386_s25, 2  ;;  %s370_s16 = sadd.s32 %s1265_s12, %s976_s14  ;;  %v1115_v17 = vld [vmem:[%s1407_s3 + $0x50] sm:$0xff]   ;;  %v1116_v18 = vld [vmem:[%s1407_s3 + $0x8] sm:$0xff]   ;;  %v1118_v20 = vld [vmem:[%s1407_s3] sm:$0xff]  }
  0x13   : > { %s388_s13 = scalar_lea.vmem %s1405_s1, %s980_s28  ;;  %s977_s26 = sshll.u32 %s370_s16, 2  ;;  %v1117_v19 = vld [vmem:[%s1407_s3 + $0x48] sm:$0xff]   ;;  %v1120_v22 = vld [vmem:[%s1407_s3 + $0x40] sm:$0xff]   ;;  %v1127_v29 = vld [vmem:[%s1407_s3 + $0xb8] sm:$0xff]  }
  0x14   : > { %526 = vmatpush1.bf16.msra.mxu0 %v1105_v3  ;;  %629 = vmatpush1.bf16.msra.mxu1 %v1106_v4  ;;  %v439_v12 = vld [vmem:[%s388_s13] sm:$0xff]  ;;  %s372_s29 = scalar_lea.vmem %s1404_s0, %s977_s26  ;;  %s982_s8 = sshll.u32 %s1428_s30, 1  ;;  %v1119_v21 = vld [vmem:[%s1407_s3 + $0x88] sm:$0xff]   ;;  %v1128_v30 = vld [vmem:[%s1407_s3 + $0xb0] sm:$0xff]  }
  0x15   : > { %527 = vmatprep.subr.bf16.mxu0 %v1176_v1  ;;  %630 = vmatprep.subr.bf16.mxu1 %v1176_v1  ;;  %v1005_v14 = vcombine.high %v439_v12, %v439_v12  ;;  %v420_v15 = vld [vmem:[%s372_s29] sm:$0xff]  ;;  %s403_s14 = sadd.s32 %s1265_s12, %s982_s8  ;;  %v1004_v24 = vcombine.low %v439_v12, %v439_v12  ;;  %v1125_v26 = vld [vmem:[%s1407_s3 + $0xc8] sm:$0xff]   ;;  %v1131_v33 = vld [vmem:[%s1407_s3 + $0x98] sm:$0xff]   ;;  %s1430_s18 = smov (!%p410_p9, %s1158_s18), 1 }
  0x16   : > { %v1017_v16 = vcombine.high %v420_v15, %v420_v15  ;;  %s983_s16 = sshll.u32 %s403_s14, 2  ;;  %v1016_v25 = vcombine.low %v420_v15, %v420_v15  ;;  %v1126_v28 = vld [vmem:[%s1407_s3 + $0xc0] sm:$0xff]   ;;  %v1129_v31 = vld [vmem:[%s1407_s3 + $0xa8] sm:$0xff]   ;;  %v1132_v34 = vld [vmem:[%s1407_s3 + $0x90] sm:$0xff]   ;;  %s984_s8 = sshll.u32 %s1422_s19, 1 }
  0x17   : > { %1015 = vmatprep.mubr.msk.bf16.mxu0 %vm519_vm0, %v1005_v14  ;;  %s405_s12 = scalar_lea.vmem %s1406_s2, %s983_s16  ;;  %v1130_v32 = vld [vmem:[%s1407_s3 + $0xa0] sm:$0xff]   ;;  %v1133_v35 = vld [vmem:[%s1407_s3 + $0xd0] sm:$0xff]   ;;  %s416_s9 = sadd.s32 %s984_s8, %s1430_s18 }
  0x18   : > { %528 = vmatpush1.bf16.msra.mxu0 %v1107_v5  ;;  %631 = vmatpush1.bf16.msra.mxu1 %v1108_v6  ;;  %v666_v23 = vld [vmem:[%s405_s12] sm:$0xff]  ;;  %s985_s13 = sshll.u32 %s416_s9, 2 }
  0x19   : > { %529 = vmatprep.subr.bf16.mxu0 %v1176_v1  ;;  %632 = vmatprep.subr.bf16.mxu1 %v1176_v1  ;;  %v1047_v27 = vcombine.high %v666_v23, %v666_v23  ;;  %v1046_v36 = vcombine.low %v666_v23, %v666_v23  ;;  %v1058_v47 = vld [vmem:[%s1408_s4] ss:$0 sm:$0xff]  ;;  %s418_s30 = scalar_lea.vmem %s1409_s5, %s985_s13 }
  0x1a   : > { %1027 = vmatprep.mubr.msk.bf16.mxu1 %vm519_vm0, %v1017_v16 }
  0x1c   : > { %530 = vmatpush1.bf16.msra.mxu0 %v1109_v7  ;;  %633 = vmatpush1.bf16.msra.mxu1 %v1110_v8 }
  0x1d   : > { %531 = vmatprep.subr.bf16.mxu0 %v1176_v1  ;;  %634 = vmatprep.subr.bf16.mxu1 %v1176_v1 }
  0x20   : > { %532 = vmatpush1.bf16.msra.mxu0 %v1111_v9  ;;  %635 = vmatpush1.bf16.msra.mxu1 %v1112_v10 }
  0x21   : > { %533 = vmatprep.subr.bf16.mxu0 %v1176_v1  ;;  %636 = vmatprep.subr.bf16.mxu1 %v1176_v1 }
  0x24   : > { %534 = vmatpush1.bf16.msra.mxu0 %v1113_v11  ;;  %637 = vmatpush1.bf16.msra.mxu1 %v1114_v13 }
  0x25   : > { %535 = vmatprep.subr.bf16.mxu0 %v1176_v1  ;;  %638 = vmatprep.subr.bf16.mxu1 %v1176_v1 }
  0x28   : > { %536 = vmatpush1.bf16.msra.mxu0 %v1115_v17  ;;  %639 = vmatpush1.bf16.msra.mxu1 %v1116_v18 }
  0x29   : > { %537 = vmatprep.subr.bf16.mxu0 %v1176_v1  ;;  %640 = vmatprep.subr.bf16.mxu1 %v1176_v1 }
  0x2c   : > { %538 = vmatpush1.bf16.msra.mxu0 %v1117_v19  ;;  %641 = vmatpush1.bf16.msra.mxu1 %v1118_v20 }
  0x2d   : > { %553 = vmatprep.subr.bf16.mxu0 %v1176_v1  ;;  %656 = vmatprep.subr.bf16.mxu1 %v1176_v1 }
  0x30   : > { %554 = vmatpush2.bf16.msra.mxu0 %v1119_v21  ;;  %657 = vmatpush2.bf16.msra.mxu1 %v1120_v22 }
  0x31   : > { %749 = vmatprep.subr.bf16.mxu0 %v1176_v1 }
  0x33   : > { %556 = vmatmul.mubr.bf16.vlgmr.msra.gmra.mxu0 %v1004_v24  ;;  %659 = vmatmul.mubr.bf16.vlgmr.msra.gmra.mxu1 %v1016_v25 }
  0x34   : > { %750 = vmatpush1.bf16.msra.mxu0 %v1125_v26  ;;  %1057 = vmatprep.mubr.msk.bf16.mxu0 %vm519_vm0, %v1047_v27 }
  0x35   : > { %751 = vmatprep.subr.bf16.mxu0 %v1176_v1 }
  0x38   : > { %752 = vmatpush1.bf16.msra.mxu0 %v1126_v28 }
  0x39   : > { %753 = vmatprep.subr.bf16.mxu0 %v1176_v1 }
  0x3c   : > { %754 = vmatpush1.bf16.msra.mxu0 %v1127_v29 }
  0x3d   : > { %755 = vmatprep.subr.bf16.mxu0 %v1176_v1 }
  0x40   : > { %756 = vmatpush1.bf16.msra.mxu0 %v1128_v30 }
  0x41   : > { %757 = vmatprep.subr.bf16.mxu0 %v1176_v1 }
  0x44   : > { %758 = vmatpush1.bf16.msra.mxu0 %v1129_v31 }
  0x45   : > { %759 = vmatprep.subr.bf16.mxu0 %v1176_v1 }
  0x48   : > { %760 = vmatpush1.bf16.msra.mxu0 %v1130_v32 }
  0x49   : > { %761 = vmatprep.subr.bf16.mxu0 %v1176_v1 }
  0x4c   : > { %762 = vmatpush1.bf16.msra.mxu0 %v1131_v33 }
  0x4d   : > { %763 = vmatprep.subr.bf16.mxu0 %v1176_v1 }
  0x50   : > { %764 = vmatpush1.bf16.msra.mxu0 %v1132_v34 }
  0x51   : > { %779 = vmatprep.subr.bf16.mxu0 %v1176_v1 }
  0x54   : > { %780 = vmatpush2.bf16.msra.mxu0 %v1133_v35 }
  0x57   : > { %782 = vmatmul.mubr.bf16.vlgmr.msra.gmra.mxu0 %v1046_v36 }
  0xf3   : > { %v557_v37 = vpop.f32.mrf.mxu0  ;;  %v660_v38 = vpop.f32.mrf.mxu1 }
  0xf4   : > { %v661_v45 = vadd.f32 %v660_v38, %v557_v37 }
  0xf5   : > { %v559_v39 = vpop.f32.mrf.mxu0  ;;  %v662_v40 = vpop.f32.mrf.mxu1 }
  0xf7   : > { %v560_v41 = vpop.f32.mrf.mxu0  ;;  %v663_v42 = vpop.f32.mrf.mxu1 }
  0xf9   : > { %v561_v43 = vpop.f32.mrf.mxu0  ;;  %v664_v44 = vpop.f32.mrf.mxu1 }
 0x117   : > { %v783_v46 = vpop.f32.mrf.mxu0 }
 0x118   : > { %v789_v48 = vadd.f32 %v783_v46, %v661_v45 }
 0x119   : > { %v785_v49 = vpop.f32.mrf.mxu0 }
 0x11a   : > { %v797_v50 = vadd.f32 %v1058_v47, %v789_v48 }
 0x11b   : > { %v786_v51 = vpop.f32.mrf.mxu0 }
 0x11c   : > { %v798_v52 = vmax.f32 %v797_v50, 0.0 }
 0x11d   : > { %v787_v53 = vpop.f32.mrf.mxu0 }
 0x11e   : > { %v799_v54 = vpack.c.bf16 %v798_v52, %v798_v52 }
 0x120   : > { %801 = vst.msk [vmem:[%s418_s30] sm:$0xf] %vm800_vm1, %v799_v54 }
 0x121 PF: > { %s15_s22 = sadd.s32 1, %s1174_s22   ;;  %s1411_s18 = smov %s1166_s20 }
 0x122   : > { %p12_p10 = scmp.ge.s32.totalorder %s15_s22, 6   ;;  %s1412_s19 = smov %s1170_s21 }
 0x123   : > { %s1413_s20 = smov %s1416_s23  ;;  %s1414_s21 = smov %s1420_s24 }
 0x124   :  { %14 = sbr.rel (!%p12_p10) target bundleno = 3 (0x3), region = 78 }

// kernel: _lambda_.15
= control target key start
LH: loop header
LB: loop body
LE: loop exit
PB: predicated region body
PF: predicated region fallthrough
CT: control target
= control target key end

     0   :  { %s1959_s27 = smov 0   ;;  %s1961_s28 = smov 0   ;;  %s2240_s0 = inlined_call_operand.vmem [shape: bf16[2,4,8,288], index: 0, kind: input, shape index: {}, may-alias: {0,1,2}]   ;;  %s2241_s1 = inlined_call_operand.vmem [shape: bf16[2,4,8,288], index: 1, kind: input, shape index: {}, may-alias: {0,1,2}]   ;;  %s2242_s2 = inlined_call_operand.vmem [shape: bf16[2,4,8,288], index: 2, kind: input, shape index: {}, may-alias: {0,1,2}]   ;;  %s2243_s3 = inlined_call_operand.vmem [shape: bf16[3,288,32], index: 3, kind: input, shape index: {}]   ;;  %s2244_s4 = inlined_call_operand.vmem [shape: f32[1,32], index: 4, kind: input, shape index: {}]   ;;  %s2245_s5 = inlined_call_operand.vmem [shape: bf16[2,2,8,16], index: 5, kind: input, shape index: {}]   ;;  %s2246_s6 = inlined_call_operand.vmem [shape: bf16[1,16,32], index: 6, kind: input, shape index: {}]   ;;  %s2247_s7 = inlined_call_operand.vmem [shape: f32[1,32], index: 7, kind: input, shape index: {}]   ;;  %s2248_s8 = inlined_call_operand.vmem [shape: bf16[2,2,8,32], index: 8, kind: output, shape index: {}]  }
   0x1   :  { %s1963_s29 = smov 0   ;;  %s1965_s30 = smov 0  }
   0x2   :  { %s1967_s9 = smov 0  }
   0x3 LB: > { %s33_s10 = sadd.s32 1, %s1902_s29  ;;  %s37_s11 = sadd.s32 1, %s1906_s30  ;;  %s1910_s9 = sphi %s1967_s9, %s18_s9   ;;  %s1906_s30 = sphi %s1965_s30, %s2252_s30   ;;  %s1902_s29 = sphi %s1963_s29, %s2251_s29   ;;  %s1898_s28 = sphi %s1961_s28, %s2250_s28   ;;  %s1894_s27 = sphi %s1959_s27, %s2249_s27  }
   0x4   : > { %p35_p0 = scmp.ge.s32.totalorder %s33_s10, 2  ;;  %p1503_p1 = scmp.ge.s32.totalorder %s1910_s9, 1 }
   0x5   : > { %p369_p2 = scmp.lt.s32.totalorder %s1910_s9, 5 }
   0x6   : > { %s2254_s10 = smov (%p35_p0, %s33_s10), 0  ;;  %s2256_s11 = smov (!%p35_p0, %s37_s11), %s1906_s30 }
   0x7   : > { %p370_p3 = pnand %p1503_p1, %p369_p2  ;;  %p39_p4 = scmp.ge.s32.totalorder %s2256_s11, 2 }
   0x8   : > { %p456_p5 = scmp.lt.s32.totalorder (!%p370_p3), %s1898_s28, 1  ;;  %s469_s20 = sadd.s32 (!%p370_p3), 1, %s1894_s27 }
   0x9   : > { %s2258_s11 = smov (%p39_p4, %s2256_s11), 0  ;;  %373 = sbr.rel (%p370_p3) target bundleno = 289 (0x121), region = 52 }
   0xa   : > { %p472_p6 = scmp.lt.s32.totalorder (!%p370_p3), %s469_s20, 3  ;;  %p458_p7 = scmp.lt.s32.totalorder (!%p370_p3), %s1894_s27, 3 }
   0xb   : > { %s484_s15 = sadd.s32 (!%p370_p3), 2, %s1894_s27  ;;  %p501_p9 = scmp.lt.s32.totalorder (!%p370_p3), %s1894_s27, 1 }
   0xc   : > { %p487_p8 = scmp.lt.s32.totalorder (!%p370_p3), %s484_s15, 3 }
   0xe   : > { %v1808_v0 = vld [vmem:[%s2243_s3 + $0x108] sm:$0xff]   ;;  %v1912_v2 = vmov 0.0   ;;  %v1810_v3 = vld [vmem:[%s2243_s3 + $0x118] sm:$0xff]   ;;  %vm1913_vm0 = vmmov 0   ;;  %v1811_v4 = vld [vmem:[%s2243_s3 + $0x100] sm:$0xff]   ;;  %s2260_s28 = smov (!%p456_p5, %s1898_s28), 1 }
   0xf   : > { %v1809_v1 = vld [vmem:[%s2243_s3 + $0xc8] sm:$0xff]   ;;  %1732 = vmatprep.subr.bf16.mxu1 %v1912_v2  ;;  %1655 = vmatprep.subr.bf16.mxu0 %v1808_v0  ;;  %v1812_v5 = vld [vmem:[%s2243_s3 + $0xc0] sm:$0xff]   ;;  %v1813_v6 = vld [vmem:[%s2243_s3 + $0x110] sm:$0xff]   ;;  %s2020_s12 = smul.u32 12, %s2260_s28  ;;  %s2262_s20 = smov (!%p472_p6, %s469_s20), 3  ;;  %vm717_vm1 = vcmask 261120  }
  0x10   : > { %1736 = vmatprep.mubr.msk.bf16.mxu1 %vm1913_vm0, %v1912_v2  ;;  %1656 = vmatpush3.bf16.msra.mxu0 %v1809_v1  ;;  %v1814_v7 = vld [vmem:[%s2243_s3 + $0xf8] sm:$0xff]   ;;  %s1764_s17 = smul.u32 3, %s2262_s20  ;;  %v1819_v10 = vld [vmem:[%s2243_s3 + $0xf0] sm:$0xff]   ;;  %v1823_v15 = vld [vmem:[%s2243_s3 + $0xe8] sm:$0xff]   ;;  %s2264_s15 = smov (!%p487_p8, %s484_s15), 3  ;;  %vm1267_vm2 = vcmask 130048  }
  0x11   : > { %1733 = vmatpush3.bf16.msra.mxu1 %v1810_v3  ;;  %1657 = vmatprep.subr.bf16.mxu0 %v1811_v4  ;;  %v1815_v8 = vld [vmem:[%s2243_s3 + $0xb8] sm:$0xff]   ;;  %v1820_v11 = vld [vmem:[%s2243_s3 + $0xb0] sm:$0xff]   ;;  %v1824_v16 = vld [vmem:[%s2243_s3 + $0xa8] sm:$0xff]   ;;  %s1765_s20 = smul.u32 3, %s2264_s15  ;;  %vm1314_vm3 = vcmask 257024  }
  0x12   : > { %1734 = vmatprep.subr.bf16.mxu1 %v1912_v2  ;;  %v1816_v9 = vld [vmem:[%s2243_s3 + $0x78] sm:$0xff]   ;;  %s480_s21 = sadd.s32 %s1764_s17, %s2020_s12  ;;  %v1821_v13 = vld [vmem:[%s2243_s3 + $0x70] sm:$0xff]   ;;  %v1825_v18 = vld [vmem:[%s2243_s3 + $0x68] sm:$0xff]  }
  0x13   : > { %s1505_s24 = sshll.u32 %s480_s21, 2  ;;  %v1818_v12 = vld [vmem:[%s2243_s3 + $0x38] sm:$0xff]   ;;  %v1822_v17 = vld [vmem:[%s2243_s3 + $0x30] sm:$0xff]   ;;  %v1827_v19 = vld [vmem:[%s2243_s3 + $0xe0] sm:$0xff]  }
  0x14   : > { %1658 = vmatpush3.bf16.msra.mxu0 %v1812_v5  ;;  %s2041_s14 = scalar_lea.vmem %s2241_s1, %s1505_s24  ;;  %v1828_v20 = vld [vmem:[%s2243_s3 + $0xa0] sm:$0xff]   ;;  %v1826_v21 = vld [vmem:[%s2243_s3 + $0x28] sm:$0xff]   ;;  %v1831_v23 = vld [vmem:[%s2243_s3 + $0xd8] sm:$0xff]  }
  0x15   : > { %1735 = vmatpush3.bf16.msra.mxu1 %v1813_v6  ;;  %1659 = vmatprep.subr.bf16.mxu0 %v1814_v7  ;;  %v1817_v14 = vld [vmem:[%s2041_s14 + $0x8] ss:$0 sps:$4 sm:$0xff]   ;;  %v1829_v22 = vld [vmem:[%s2243_s3 + $0x60] sm:$0xff]   ;;  %s459_s21 = scalar_select %p458_p7, %s1894_s27, 3  ;;  %v1832_v24 = vld [vmem:[%s2243_s3 + $0x98] sm:$0xff]  }
  0x16   : > { %1680 = vmatprep.subr.bf16.mxu1 %v1816_v9  ;;  %v1830_v25 = vld [vmem:[%s2243_s3 + $0x20] sm:$0xff]   ;;  %v1833_v26 = vld [vmem:[%s2243_s3 + $0x58] sm:$0xff]   ;;  %v1835_v27 = vld [vmem:[%s2243_s3 + $0xd0] sm:$0xff]   ;;  %s2266_s27 = smov (!%p501_p9, %s1894_s27), 1 }
  0x17   : > { %s1762_s16 = smul.u32 3, %s459_s21  ;;  %v1836_v28 = vld [vmem:[%s2243_s3 + $0x90] sm:$0xff]   ;;  %v1834_v29 = vld [vmem:[%s2243_s3 + $0x18] sm:$0xff]   ;;  %v560_v31 = vld [vmem:[%s2041_s14] sm:$0xff] }
  0x18   : > { %1660 = vmatpush3.bf16.msra.mxu0 %v1815_v8  ;;  %1737 = vmatmul.mubr.msk.bf16.vlgmr.msra.gmra.mxu1 %vm717_vm1, %v1817_v14  ;;  %v1837_v30 = vld [vmem:[%s2243_s3 + $0x50] sm:$0xff]   ;;  %v1547_v32 = vcombine.low %v560_v31, %v560_v31  ;;  %v1548_v33 = vcombine.high %v560_v31, %v560_v31  ;;  %v1841_v34 = vld [vmem:[%s2243_s3 + $0x198] sm:$0xff]   ;;  %v1842_v37 = vld [vmem:[%s2243_s3 + $0x48] sm:$0xff]  }
  0x19   : > { %1661 = vmatprep.subr.bf16.mxu0 %v1819_v10  ;;  %1681 = vmatpush3.bf16.msra.mxu1 %v1818_v12  ;;  %s466_s21 = sadd.s32 %s2020_s12, %s1762_s16  ;;  %v1838_v35 = vld [vmem:[%s2243_s3 + $0x10] sm:$0xff]   ;;  %v1843_v36 = vld [vmem:[%s2243_s3 + $0x158] sm:$0xff]   ;;  %v1844_v39 = vld [vmem:[%s2243_s3 + $0x8] sm:$0xff]  }
  0x1a   : > { %1682 = vmatprep.subr.bf16.mxu1 %v1821_v13  ;;  %753 = vmatprep.mubr.bf16.mxu0 %v1548_v33  ;;  %s1504_s14 = sshll.u32 %s466_s21, 2  ;;  %v1845_v38 = vld [vmem:[%s2243_s3 + $0x190] sm:$0xff]   ;;  %v1846_v41 = vld [vmem:[%s2243_s3 + $0x40] sm:$0xff]   ;;  %v1852_v45 = vld [vmem:[%s2243_s3 + $0x188] sm:$0xff]  }
  0x1b   : > { %s2122_s21 = scalar_lea.vmem %s2240_s0, %s1504_s14  ;;  %v1847_v40 = vld [vmem:[%s2243_s3 + $0x150] sm:$0xff]   ;;  %v1848_v42 = vld [vmem:[%s2243_s3] sm:$0xff]   ;;  %v1853_v46 = vld [vmem:[%s2243_s3 + $0x148] sm:$0xff]   ;;  %s495_s14 = sadd.s32 %s1765_s20, %s2020_s12 }
  0x1c   : > { %1662 = vmatpush3.bf16.msra.mxu0 %v1820_v11  ;;  %v522_v43 = vld [vmem:[%s2122_s21] sm:$0xff]  ;;  %v1854_v50 = vld [vmem:[%s2243_s3 + $0x88] sm:$0xff]   ;;  %v1858_v51 = vld [vmem:[%s2243_s3 + $0x178] sm:$0xff]   ;;  %s1506_s22 = sshll.u32 %s495_s14, 2 }
  0x1d   : > { %1663 = vmatprep.subr.bf16.mxu0 %v1823_v15  ;;  %1683 = vmatpush3.bf16.msra.mxu1 %v1822_v17  ;;  %v1570_v44 = vcombine.high %v522_v43, %v522_v43  ;;  %v1855_v47 = vld [vmem:[%s2243_s3 + $0x180] sm:$0xff]   ;;  %v1569_v48 = vcombine.low %v522_v43, %v522_v43  ;;  %v1859_v53 = vld [vmem:[%s2243_s3 + $0x138] sm:$0xff]   ;;  %v1861_v54 = vld [vmem:[%s2243_s3 + $0x170] sm:$0xff]   ;;  %s497_s25 = scalar_lea.vmem %s2242_s2, %s1506_s22  ;;  %s1507_s22 = sshll.u32 %s2260_s28, 1 }
  0x1e   : > { %1684 = vmatprep.subr.bf16.mxu1 %v1825_v18  ;;  %v1856_v49 = vld [vmem:[%s2243_s3 + $0x140] sm:$0xff]   ;;  %v1851_v55 = vld [vmem:[%s2122_s21 + $0x8] ss:$0 sps:$4 sm:$0xff]   ;;  %v1862_v57 = vld [vmem:[%s2243_s3 + $0x130] sm:$0xff]   ;;  %s2199_s23 = sadd.s32 %s1507_s22, %s2266_s27 }
  0x1f   : > { %954 = vmatprep.mubr.bf16.mxu1 %v1570_v44  ;;  %v1857_v52 = vld [vmem:[%s2243_s3 + $0x80] sm:$0xff]   ;;  %v1860_v56 = vld [vmem:[%s2243_s3 + $0x1a8] sm:$0xff]   ;;  %s1508_s24 = sshll.u32 %s2199_s23, 2 }
  0x20   : > { %1664 = vmatpush3.bf16.msra.mxu0 %v1824_v16  ;;  %v1864_v58 = vld [vmem:[%s2243_s3 + $0x168] sm:$0xff]   ;;  %v1863_v59 = vld [vmem:[%s2243_s3 + $0x1a0] sm:$0xff]   ;;  %s509_s14 = scalar_lea.vmem %s2245_s5, %s1508_s24  ;;  %s520_s12 = scalar_lea.vmem %s2248_s8, %s1508_s24 }
  0x21   : > { %1665 = vmatprep.subr.bf16.mxu0 %v1827_v19  ;;  %1685 = vmatpush3.bf16.msra.mxu1 %v1826_v21  ;;  %v1865_v60 = vld [vmem:[%s2243_s3 + $0x128] sm:$0xff]   ;;  %v1002_v61 = vld [vmem:[%s497_s25] sm:$0xff] }
  0x22   : > { %1686 = vmatprep.subr.bf16.mxu1 %v1829_v22  ;;  %v1867_v62 = vld [vmem:[%s2243_s3 + $0x160] sm:$0xff]   ;;  %v1628_v63 = vcombine.high %v1002_v61, %v1002_v61  ;;  %v1866_v0 = vld [vmem:[%s497_s25 + $0x8] ss:$0 sps:$4 sm:$0xff]   ;;  %v1627_v4 = vcombine.low %v1002_v61, %v1002_v61 }
  0x23   : > { %v1868_v1 = vld [vmem:[%s2243_s3 + $0x120] sm:$0xff]  }
  0x24   : > { %1666 = vmatpush3.bf16.msra.mxu0 %v1828_v20  ;;  %v1871_v3 = vld [vmem:[%s2246_s6] sm:$0xff]  }
  0x25   : > { %1667 = vmatprep.subr.bf16.mxu0 %v1831_v23  ;;  %1687 = vmatpush3.bf16.msra.mxu1 %v1830_v25  ;;  %v1251_v5 = vld [vmem:[%s509_s14] sm:$0xf] }
  0x26   : > { %1688 = vmatprep.subr.bf16.mxu1 %v1833_v26 }
  0x28   : > { %1668 = vmatpush3.bf16.msra.mxu0 %v1832_v24 }
  0x29   : > { %1669 = vmatprep.subr.bf16.mxu0 %v1835_v27  ;;  %1689 = vmatpush3.bf16.msra.mxu1 %v1834_v29 }
  0x2a   : > { %1690 = vmatprep.subr.bf16.mxu1 %v1837_v30 }
  0x2c   : > { %1670 = vmatpush3.bf16.msra.mxu0 %v1836_v28 }
  0x2d   : > { %1705 = vmatprep.subr.bf16.mxu0 %v1841_v34  ;;  %1691 = vmatpush3.bf16.msra.mxu1 %v1838_v35 }
  0x2e   : > { %1692 = vmatprep.subr.bf16.mxu1 %v1842_v37  ;;  %v1649_v37 = vld [vmem:[%s2244_s4] ss:$0 sm:$0xff] }
  0x2f   : > { %754 = vmatmul.mubr.bf16.vlgmr.msra.gmra.mxu0 %v1547_v32  ;;  %v1650_v32 = vld [vmem:[%s2247_s7] ss:$0 sm:$0xff] }
  0x30   : > { %1706 = vmatpush3.bf16.msra.mxu0 %v1843_v36  ;;  %1194 = vmatprep.mubr.bf16.mxu0 %v1628_v63 }
  0x31   : > { %1707 = vmatprep.subr.bf16.mxu0 %v1845_v38  ;;  %1693 = vmatpush3.bf16.msra.mxu1 %v1844_v39 }
  0x32   : > { %1694 = vmatprep.subr.bf16.mxu1 %v1846_v41 }
  0x34   : > { %1708 = vmatpush3.bf16.msra.mxu0 %v1847_v40 }
  0x35   : > { %1709 = vmatprep.subr.bf16.mxu0 %v1852_v45  ;;  %1695 = vmatpush3.bf16.msra.mxu1 %v1848_v42 }
  0x36   : > { %1740 = vmatprep.subr.bf16.mxu1 %v1912_v2 }
  0x38   : > { %1710 = vmatpush3.bf16.msra.mxu0 %v1853_v46  ;;  %955 = vmatmul.mubr.bf16.vlgmr.msra.gmra.mxu1 %v1569_v48 }
  0x39   : > { %1711 = vmatprep.subr.bf16.mxu0 %v1855_v47  ;;  %1741 = vmatpush3.bf16.msra.mxu1 %v1854_v50 }
  0x3a   : > { %1744 = vmatprep.mubr.msk.bf16.mxu1 %vm1913_vm0, %v1912_v2  ;;  %1742 = vmatprep.subr.bf16.mxu1 %v1912_v2 }
  0x3c   : > { %1712 = vmatpush3.bf16.msra.mxu0 %v1856_v49 }
  0x3d   : > { %1713 = vmatprep.subr.bf16.mxu0 %v1858_v51  ;;  %1743 = vmatpush3.bf16.msra.mxu1 %v1857_v52 }
  0x3e   : > { %1748 = vmatprep.subr.bf16.mxu1 %v1912_v2 }
  0x40   : > { %1714 = vmatpush3.bf16.msra.mxu0 %v1859_v53  ;;  %1745 = vmatmul.mubr.msk.bf16.vlgmr.msra.gmra.mxu1 %vm717_vm1, %v1851_v55 }
  0x41   : > { %1715 = vmatprep.subr.bf16.mxu0 %v1861_v54  ;;  %1749 = vmatpush3.bf16.msra.mxu1 %v1860_v56 }
  0x42   : > { %1750 = vmatprep.subr.bf16.mxu1 %v1912_v2  ;;  %1752 = vmatprep.mubr.msk.bf16.mxu1 %vm1913_vm0, %v1912_v2 }
  0x44   : > { %1716 = vmatpush3.bf16.msra.mxu0 %v1862_v57 }
  0x45   : > { %1717 = vmatprep.subr.bf16.mxu0 %v1864_v58  ;;  %1751 = vmatpush3.bf16.msra.mxu1 %v1863_v59 }
  0x46   : > { %1756 = vmatprep.subr.bf16.mxu1 %v1912_v2 }
  0x48   : > { %1718 = vmatpush3.bf16.msra.mxu0 %v1865_v60  ;;  %1753 = vmatmul.mubr.msk.bf16.vlgmr.msra.gmra.mxu1 %vm717_vm1, %v1866_v0 }
  0x49   : > { %1719 = vmatprep.subr.bf16.mxu0 %v1867_v62  ;;  %1757 = vmatpush3.bf16.msra.mxu1 %v1871_v3 }
  0x4a   : > { %1758 = vmatprep.mubr.msk.bf16.mxu1 %vm1913_vm0, %v1912_v2 }
  0x4c   : > { %1720 = vmatpush3.bf16.msra.mxu0 %v1868_v1 }
  0x4f   : > { %1195 = vmatmul.mubr.bf16.vlgmr.msra.gmra.mxu0 %v1627_v4 }
  0x50   : > { %1759 = vmatmul.mubr.msk.bf16.vlgmr.msra.gmra.mxu1 %vm1267_vm2, %v1251_v5 }
  0xd8   : > { %v795_v6 = vpop.f32.mrf.mxu1 }
  0xda   : > { %v1738_v7 = vpop.f32.mrf.mxu1 }
  0xdc   : > { %v798_v8 = vpop.f32.mrf.mxu1 }
  0xde   : > { %v1739_v9 = vpop.f32.mrf.mxu1 }
  0xef   : > { %v1671_v10 = vpop.f32.mrf.mxu0 }
  0xf1   : > { %v1672_v11 = vpop.f32.mrf.mxu0 }
  0xf2   : > { %v1673_v21 = vadd.f32 %v1672_v11, %v1671_v10 }
  0xf3   : > { %v1674_v12 = vpop.f32.mrf.mxu0 }
  0xf4   : > { %v796_v26 = vadd.f32 %v1673_v21, %v795_v6 }
  0xf5   : > { %v1675_v13 = vpop.f32.mrf.mxu0 }
  0xf8   : > { %v1696_v14 = vpop.f32.mrf.mxu1 }
  0xfa   : > { %v1697_v15 = vpop.f32.mrf.mxu1 }
  0xfb   : > { %v1698_v23 = vadd.f32 %v1697_v15, %v1696_v14 }
  0xfc   : > { %v1699_v2 = vpop.f32.mrf.mxu1 }
  0xfd   : > { %v957_v29 = vadd.f32 %v1698_v23, %v796_v26 }
  0xfe   : > { %v1700_v16 = vpop.f32.mrf.mxu1 }
 0x100   : > { %v996_v17 = vpop.f32.mrf.mxu1 }
 0x101   : > { %v997_v34 = vadd.f32 %v996_v17, %v957_v29 }
 0x102   : > { %v1746_v18 = vpop.f32.mrf.mxu1 }
 0x104   : > { %v999_v19 = vpop.f32.mrf.mxu1 }
 0x106   : > { %v1747_v20 = vpop.f32.mrf.mxu1 }
 0x108   : > { %v1236_v22 = vpop.f32.mrf.mxu1 }
 0x10a   : > { %v1754_v24 = vpop.f32.mrf.mxu1 }
 0x10c   : > { %v1239_v27 = vpop.f32.mrf.mxu1 }
 0x10e   : > { %v1755_v30 = vpop.f32.mrf.mxu1 }
 0x10f   : > { %v1721_v25 = vpop.f32.mrf.mxu0 }
 0x110   : > { %v1305_v36 = vpop.f32.mrf.mxu1 }
 0x111   : > { %v1722_v28 = vpop.f32.mrf.mxu0  ;;  %v1306_v40 = vadd.f32 %v1650_v32, %v1305_v36 }
 0x112   : > { %v1723_v31 = vadd.f32 %v1722_v28, %v1721_v25  ;;  %v1760_v41 = vpop.f32.mrf.mxu1 }
 0x113   : > { %v1724_v33 = vpop.f32.mrf.mxu0 }
 0x114   : > { %v1237_v35 = vadd.f32 %v1723_v31, %v1236_v22  ;;  %v1308_v43 = vpop.f32.mrf.mxu1 }
 0x115   : > { %v1725_v38 = vpop.f32.mrf.mxu0 }
 0x116   : > { %v1242_v39 = vadd.f32 %v1237_v35, %v997_v34  ;;  %v1761_v45 = vpop.f32.mrf.mxu1 }
 0x118   : > { %v1250_v42 = vadd.f32 %v1649_v37, %v1242_v39 }
 0x11a   : > { %v1311_v44 = vadd.f32 %v1306_v40, %v1250_v42 }
 0x11c   : > { %v1312_v46 = vmax.f32 %v1311_v44, 0.0 }
 0x11e   : > { %v1313_v47 = vpack.c.bf16 %v1312_v46, %v1312_v46 }
 0x120   : > { %1315 = vst.msk [vmem:[%s520_s12] sm:$0xf] %vm1314_vm3, %v1313_v47 }
 0x121 PF: > { %s18_s9 = sadd.s32 1, %s1910_s9   ;;  %s2249_s27 = smov %s1902_s29 }
 0x122   : > { %p15_p10 = scmp.ge.s32.totalorder %s18_s9, 6   ;;  %s2250_s28 = smov %s1906_s30 }
 0x123   : > { %s2251_s29 = smov %s2254_s10  ;;  %s2252_s30 = smov %s2258_s11 }
 0x124   :  { %17 = sbr.rel (!%p15_p10) target bundleno = 3 (0x3), region = 93 }

// kernel: _lambda_.16
= control target key start
LH: loop header
LB: loop body
LE: loop exit
PB: predicated region body
PF: predicated region fallthrough
CT: control target
= control target key end

     0   :  { %s1705_s18 = smov 0   ;;  %s1707_s19 = smov 0   ;;  %s1937_s0 = inlined_call_operand.vmem [shape: bf16[2,4,8,288], index: 0, kind: input, shape index: {}, may-alias: {0,1,2}]   ;;  %s1938_s1 = inlined_call_operand.vmem [shape: bf16[2,4,8,288], index: 1, kind: input, shape index: {}, may-alias: {0,1,2}]   ;;  %s1939_s2 = inlined_call_operand.vmem [shape: bf16[2,4,8,288], index: 2, kind: input, shape index: {}, may-alias: {0,1,2}]   ;;  %s1940_s3 = inlined_call_operand.vmem [shape: bf16[3,288,64], index: 3, kind: input, shape index: {}]   ;;  %s1941_s4 = inlined_call_operand.vmem [shape: f32[1,64], index: 4, kind: input, shape index: {}]   ;;  %s1942_s5 = inlined_call_operand.vmem [shape: bf16[2,1,8,64], index: 5, kind: output, shape index: {}]  }
   0x1   :  { %s1709_s20 = smov 0  }
   0x2 LB: > { %s34_s21 = sadd.s32 1, %s1667_s19  ;;  %p1308_p0 = scmp.ge.s32.totalorder %s1671_s20, 1  ;;  %s1671_s20 = sphi %s1709_s20, %s15_s20   ;;  %s1667_s19 = sphi %s1707_s19, %s1944_s19   ;;  %s1663_s18 = sphi %s1705_s18, %s1943_s18  }
   0x3   : > { %p36_p1 = scmp.ge.s32.totalorder %s34_s21, 2  ;;  %p286_p2 = scmp.lt.s32.totalorder %s1671_s20, 3 }
   0x5   : > { %s1946_s21 = smov (%p36_p1, %s34_s21), 0  ;;  %p287_p3 = pnand %p1308_p0, %p286_p2 }
   0x6   : > { %p359_p4 = scmp.lt.s32.totalorder (!%p287_p3), %s1663_s18, 1 }
   0x7   : > { %290 = sbr.rel (%p287_p3) target bundleno = 286 (0x11e), region = 40 }
   0xc   : > { %v1586_v0 = vld [vmem:[%s1940_s3 + $0x108] sm:$0xff]   ;;  %v1673_v1 = vmov 0.0   ;;  %v1587_v2 = vld [vmem:[%s1940_s3 + $0x118] sm:$0xff]   ;;  %vm1674_vm0 = vmmov 0   ;;  %v1589_v4 = vld [vmem:[%s1940_s3 + $0x100] sm:$0xff]   ;;  %s1948_s18 = smov (!%p359_p4, %s1663_s18), 1 }
   0xd   : > { %1533 = vmatprep.subr.bf16.mxu1 %v1673_v1  ;;  %1458 = vmatprep.subr.bf16.mxu0 %v1586_v0  ;;  %v1588_v3 = vld [vmem:[%s1940_s3 + $0xc8] sm:$0xff]   ;;  %v1590_v5 = vld [vmem:[%s1940_s3 + $0x110] sm:$0xff]   ;;  %v1591_v6 = vld [vmem:[%s1940_s3 + $0xc0] sm:$0xff]   ;;  %s1751_s11 = smul.u32 48, %s1948_s18  ;;  %vm613_vm1 = vcmask 261120   ;;  %s1312_s25 = sshll.u32 %s1948_s18, 2 }
   0xe   : > { %1537 = vmatprep.mubr.msk.bf16.mxu1 %vm1674_vm0, %v1673_v1  ;;  %1534 = vmatpush3.bf16.msra.mxu1 %v1587_v2  ;;  %v1592_v7 = vld [vmem:[%s1940_s3 + $0x78] sm:$0xff]   ;;  %v1597_v12 = vld [vmem:[%s1940_s3 + $0x70] sm:$0xff]   ;;  %v1601_v16 = vld [vmem:[%s1940_s3 + $0x68] sm:$0xff]   ;;  %vm1149_vm2 = vcmask 519168  }
   0xf   : > { %1459 = vmatpush3.bf16.msra.mxu0 %v1588_v3  ;;  %1535 = vmatprep.subr.bf16.mxu1 %v1673_v1  ;;  %v1593_v8 = vld [vmem:[%s1940_s3 + $0xf8] sm:$0xff]   ;;  %s1455_s14 = sadd.s32 12, %s1751_s11  ;;  %v1598_v13 = vld [vmem:[%s1940_s3 + $0xf0] sm:$0xff]   ;;  %v1602_v17 = vld [vmem:[%s1940_s3 + $0xe8] sm:$0xff]   ;;  %s371_s17 = scalar_lea.vmem %s1937_s0, %s1751_s11 }
  0x10   : > { %1460 = vmatprep.subr.bf16.mxu0 %v1589_v4  ;;  %v1595_v9 = vld [vmem:[%s1940_s3 + $0x38] sm:$0xff]   ;;  %s1763_s23 = scalar_lea.vmem %s1938_s1, %s1455_s14  ;;  %v1599_v14 = vld [vmem:[%s1940_s3 + $0x30] sm:$0xff]   ;;  %v1603_v18 = vld [vmem:[%s1940_s3 + $0x28] sm:$0xff]   ;;  %s1457_s28 = sadd.s32 24, %s1751_s11 }
  0x11   : > { %v1596_v10 = vld [vmem:[%s1940_s3 + $0xb8] sm:$0xff]   ;;  %v1594_v11 = vld [vmem:[%s1763_s23 + $0x8] ss:$0 sps:$4 sm:$0xff]   ;;  %v1600_v15 = vld [vmem:[%s1940_s3 + $0xb0] sm:$0xff]   ;;  %s404_s11 = scalar_lea.vmem %s1939_s2, %s1457_s28  ;;  %s416_s28 = scalar_lea.vmem %s1942_s5, %s1312_s25 }
  0x12   : > { %1536 = vmatpush3.bf16.msra.mxu1 %v1590_v5  ;;  %v1604_v19 = vld [vmem:[%s1940_s3 + $0xa8] sm:$0xff]   ;;  %v1605_v20 = vld [vmem:[%s1940_s3 + $0x60] sm:$0xff]   ;;  %v1609_v24 = vld [vmem:[%s1940_s3 + $0x58] sm:$0xff]  }
  0x13   : > { %1461 = vmatpush3.bf16.msra.mxu0 %v1591_v6  ;;  %1483 = vmatprep.subr.bf16.mxu1 %v1592_v7  ;;  %v1606_v21 = vld [vmem:[%s1940_s3 + $0xe0] sm:$0xff]   ;;  %v1610_v25 = vld [vmem:[%s1940_s3 + $0xd8] sm:$0xff]   ;;  %v1613_v28 = vld [vmem:[%s1940_s3 + $0x50] sm:$0xff]  }
  0x14   : > { %1462 = vmatprep.subr.bf16.mxu0 %v1593_v8  ;;  %v1607_v22 = vld [vmem:[%s1940_s3 + $0x20] sm:$0xff]   ;;  %v1611_v26 = vld [vmem:[%s1940_s3 + $0x18] sm:$0xff]   ;;  %v1614_v29 = vld [vmem:[%s1940_s3 + $0xd0] sm:$0xff]  }
  0x15   : > { %1538 = vmatmul.mubr.msk.bf16.vlgmr.msra.gmra.mxu1 %vm613_vm1, %v1594_v11  ;;  %v1608_v23 = vld [vmem:[%s1940_s3 + $0xa0] sm:$0xff]   ;;  %v1612_v27 = vld [vmem:[%s1940_s3 + $0x98] sm:$0xff]   ;;  %v1615_v30 = vld [vmem:[%s1940_s3 + $0x10] sm:$0xff]  }
  0x16   : > { %1484 = vmatpush3.bf16.msra.mxu1 %v1595_v9  ;;  %v1616_v31 = vld [vmem:[%s1940_s3 + $0x90] sm:$0xff]   ;;  %v456_v32 = vld [vmem:[%s1763_s23] sm:$0xff]  ;;  %v1619_v35 = vld [vmem:[%s1940_s3 + $0x48] sm:$0xff]  }
  0x17   : > { %1463 = vmatpush3.bf16.msra.mxu0 %v1596_v10  ;;  %1485 = vmatprep.subr.bf16.mxu1 %v1597_v12  ;;  %v1349_v33 = vcombine.low %v456_v32, %v456_v32  ;;  %v1350_v34 = vcombine.high %v456_v32, %v456_v32  ;;  %v1620_v36 = vld [vmem:[%s1940_s3 + $0x8] sm:$0xff]   ;;  %v1621_v37 = vld [vmem:[%s1940_s3 + $0x198] sm:$0xff]   ;;  %v1623_v39 = vld [vmem:[%s1940_s3 + $0x40] sm:$0xff]  }
  0x18   : > { %1464 = vmatprep.subr.bf16.mxu0 %v1598_v13  ;;  %v1622_v38 = vld [vmem:[%s1940_s3 + $0x158] sm:$0xff]   ;;  %v1624_v40 = vld [vmem:[%s1940_s3] sm:$0xff]   ;;  %v1625_v41 = vld [vmem:[%s1940_s3 + $0x190] sm:$0xff]  }
  0x19   : > { %649 = vmatprep.mubr.bf16.mxu0 %v1350_v34  ;;  %v1626_v42 = vld [vmem:[%s1940_s3 + $0x150] sm:$0xff]   ;;  %v418_v43 = vld [vmem:[%s371_s17] sm:$0xff]  ;;  %v1630_v46 = vld [vmem:[%s1940_s3 + $0x88] sm:$0xff]  }
  0x1a   : > { %1486 = vmatpush3.bf16.msra.mxu1 %v1599_v14  ;;  %v1371_v44 = vcombine.low %v418_v43, %v418_v43  ;;  %v1372_v45 = vcombine.high %v418_v43, %v418_v43  ;;  %v1631_v47 = vld [vmem:[%s1940_s3 + $0x188] sm:$0xff]   ;;  %v1633_v49 = vld [vmem:[%s1940_s3 + $0x80] sm:$0xff]   ;;  %v1636_v52 = vld [vmem:[%s1940_s3 + $0x178] sm:$0xff]  }
  0x1b   : > { %1465 = vmatpush3.bf16.msra.mxu0 %v1600_v15  ;;  %1487 = vmatprep.subr.bf16.mxu1 %v1601_v16  ;;  %v1632_v48 = vld [vmem:[%s1940_s3 + $0x148] sm:$0xff]   ;;  %v1634_v50 = vld [vmem:[%s1940_s3 + $0x180] sm:$0xff]   ;;  %v1637_v54 = vld [vmem:[%s1940_s3 + $0x138] sm:$0xff]  }
  0x1c   : > { %1466 = vmatprep.subr.bf16.mxu0 %v1602_v17  ;;  %850 = vmatprep.mubr.bf16.mxu1 %v1372_v45  ;;  %v1635_v51 = vld [vmem:[%s1940_s3 + $0x140] sm:$0xff]   ;;  %v1629_v53 = vld [vmem:[%s371_s17 + $0x8] ss:$0 sps:$4 sm:$0xff]   ;;  %v1638_v55 = vld [vmem:[%s1940_s3 + $0x170] sm:$0xff]  }
  0x1d   : > { %v1640_v56 = vld [vmem:[%s1940_s3 + $0x1a8] sm:$0xff]   ;;  %v1639_v57 = vld [vmem:[%s1940_s3 + $0x130] sm:$0xff]   ;;  %v1643_v59 = vld [vmem:[%s1940_s3 + $0x1a0] sm:$0xff]  }
  0x1e   : > { %1488 = vmatpush3.bf16.msra.mxu1 %v1603_v18  ;;  %v1641_v58 = vld [vmem:[%s1940_s3 + $0x168] sm:$0xff]   ;;  %v898_v62 = vld [vmem:[%s404_s11] sm:$0xff] }
  0x1f   : > { %1467 = vmatpush3.bf16.msra.mxu0 %v1604_v19  ;;  %1489 = vmatprep.subr.bf16.mxu1 %v1605_v20  ;;  %v1642_v60 = vld [vmem:[%s1940_s3 + $0x128] sm:$0xff]   ;;  %v1644_v63 = vld [vmem:[%s1940_s3 + $0x160] sm:$0xff]   ;;  %v1430_v0 = vcombine.high %v898_v62, %v898_v62  ;;  %v1429_v2 = vcombine.low %v898_v62, %v898_v62 }
  0x20   : > { %1468 = vmatprep.subr.bf16.mxu0 %v1606_v21  ;;  %v1646_v61 = vld [vmem:[%s404_s11 + $0x8] ss:$0 sps:$4 sm:$0xff]  }
  0x22   : > { %1490 = vmatpush3.bf16.msra.mxu1 %v1607_v22 }
  0x23   : > { %1469 = vmatpush3.bf16.msra.mxu0 %v1608_v23  ;;  %1491 = vmatprep.subr.bf16.mxu1 %v1609_v24 }
  0x24   : > { %1470 = vmatprep.subr.bf16.mxu0 %v1610_v25 }
  0x26   : > { %1492 = vmatpush3.bf16.msra.mxu1 %v1611_v26 }
  0x27   : > { %1471 = vmatpush3.bf16.msra.mxu0 %v1612_v27  ;;  %1493 = vmatprep.subr.bf16.mxu1 %v1613_v28 }
  0x28   : > { %1472 = vmatprep.subr.bf16.mxu0 %v1614_v29 }
  0x2a   : > { %1494 = vmatpush3.bf16.msra.mxu1 %v1615_v30 }
  0x2b   : > { %1473 = vmatpush3.bf16.msra.mxu0 %v1616_v31  ;;  %1495 = vmatprep.subr.bf16.mxu1 %v1619_v35 }
  0x2c   : > { %1508 = vmatprep.subr.bf16.mxu0 %v1621_v37 }
  0x2e   : > { %650 = vmatmul.mubr.bf16.vlgmr.msra.gmra.mxu0 %v1349_v33  ;;  %1496 = vmatpush3.bf16.msra.mxu1 %v1620_v36  ;;  %v1451_v33 = vld [vmem:[%s1941_s4] ss:$0 sm:$0xff] }
  0x2f   : > { %1509 = vmatpush3.bf16.msra.mxu0 %v1622_v38  ;;  %1497 = vmatprep.subr.bf16.mxu1 %v1623_v39 }
  0x30   : > { %1510 = vmatprep.subr.bf16.mxu0 %v1625_v41  ;;  %1090 = vmatprep.mubr.bf16.mxu0 %v1430_v0 }
  0x32   : > { %1498 = vmatpush3.bf16.msra.mxu1 %v1624_v40 }
  0x33   : > { %1511 = vmatpush3.bf16.msra.mxu0 %v1626_v42  ;;  %1541 = vmatprep.subr.bf16.mxu1 %v1673_v1 }
  0x34   : > { %1512 = vmatprep.subr.bf16.mxu0 %v1631_v47 }
  0x35   : > { %851 = vmatmul.mubr.bf16.vlgmr.msra.gmra.mxu1 %v1371_v44 }
  0x36   : > { %1542 = vmatpush3.bf16.msra.mxu1 %v1630_v46  ;;  %1545 = vmatprep.mubr.msk.bf16.mxu1 %vm1674_vm0, %v1673_v1 }
  0x37   : > { %1513 = vmatpush3.bf16.msra.mxu0 %v1632_v48  ;;  %1543 = vmatprep.subr.bf16.mxu1 %v1673_v1 }
  0x38   : > { %1514 = vmatprep.subr.bf16.mxu0 %v1634_v50 }
  0x3a   : > { %1544 = vmatpush3.bf16.msra.mxu1 %v1633_v49 }
  0x3b   : > { %1515 = vmatpush3.bf16.msra.mxu0 %v1635_v51  ;;  %1549 = vmatprep.subr.bf16.mxu1 %v1673_v1 }
  0x3c   : > { %1516 = vmatprep.subr.bf16.mxu0 %v1636_v52 }
  0x3d   : > { %1546 = vmatmul.mubr.msk.bf16.vlgmr.msra.gmra.mxu1 %vm613_vm1, %v1629_v53 }
  0x3e   : > { %1550 = vmatpush3.bf16.msra.mxu1 %v1640_v56  ;;  %1553 = vmatprep.mubr.msk.bf16.mxu1 %vm1674_vm0, %v1673_v1 }
  0x3f   : > { %1517 = vmatpush3.bf16.msra.mxu0 %v1637_v54  ;;  %1551 = vmatprep.subr.bf16.mxu1 %v1673_v1  ;;  %v1645_v1 = vld [vmem:[%s1940_s3 + $0x120] sm:$0xff]  }
  0x40   : > { %1518 = vmatprep.subr.bf16.mxu0 %v1638_v55 }
  0x42   : > { %1552 = vmatpush3.bf16.msra.mxu1 %v1643_v59 }
  0x43   : > { %1519 = vmatpush3.bf16.msra.mxu0 %v1639_v57 }
  0x44   : > { %1520 = vmatprep.subr.bf16.mxu0 %v1641_v58 }
  0x45   : > { %1554 = vmatmul.mubr.msk.bf16.vlgmr.msra.gmra.mxu1 %vm613_vm1, %v1646_v61 }
  0x47   : > { %1521 = vmatpush3.bf16.msra.mxu0 %v1642_v60 }
  0x48   : > { %1522 = vmatprep.subr.bf16.mxu0 %v1644_v63 }
  0x4b   : > { %1523 = vmatpush3.bf16.msra.mxu0 %v1645_v1 }
  0x4e   : > { %1091 = vmatmul.mubr.bf16.vlgmr.msra.gmra.mxu0 %v1429_v2 }
  0xd5   : > { %v691_v3 = vpop.f32.mrf.mxu1 }
  0xd7   : > { %v1539_v4 = vpop.f32.mrf.mxu1 }
  0xd9   : > { %v694_v5 = vpop.f32.mrf.mxu1 }
  0xdb   : > { %v1540_v6 = vpop.f32.mrf.mxu1 }
  0xee   : > { %v1474_v7 = vpop.f32.mrf.mxu0 }
  0xf0   : > { %v1475_v8 = vpop.f32.mrf.mxu0 }
  0xf1   : > { %v1476_v21 = vadd.f32 %v1475_v8, %v1474_v7 }
  0xf2   : > { %v1477_v9 = vpop.f32.mrf.mxu0 }
  0xf3   : > { %v692_v26 = vadd.f32 %v1476_v21, %v691_v3 }
  0xf4   : > { %v1478_v10 = vpop.f32.mrf.mxu0 }
  0xf5   : > { %v1499_v11 = vpop.f32.mrf.mxu1 }
  0xf7   : > { %v1500_v12 = vpop.f32.mrf.mxu1 }
  0xf8   : > { %v1501_v23 = vadd.f32 %v1500_v12, %v1499_v11 }
  0xf9   : > { %v1502_v13 = vpop.f32.mrf.mxu1 }
  0xfa   : > { %v853_v28 = vadd.f32 %v1501_v23, %v692_v26 }
  0xfb   : > { %v1503_v14 = vpop.f32.mrf.mxu1 }
  0xfd   : > { %v892_v15 = vpop.f32.mrf.mxu1 }
  0xfe   : > { %v893_v31 = vadd.f32 %v892_v15, %v853_v28 }
  0xff   : > { %v1547_v16 = vpop.f32.mrf.mxu1 }
 0x101   : > { %v895_v17 = vpop.f32.mrf.mxu1 }
 0x103   : > { %v1548_v18 = vpop.f32.mrf.mxu1 }
 0x105   : > { %v1132_v19 = vpop.f32.mrf.mxu1 }
 0x107   : > { %v1555_v20 = vpop.f32.mrf.mxu1 }
 0x109   : > { %v1135_v22 = vpop.f32.mrf.mxu1 }
 0x10b   : > { %v1556_v24 = vpop.f32.mrf.mxu1 }
 0x10e   : > { %v1524_v25 = vpop.f32.mrf.mxu0 }
 0x110   : > { %v1525_v27 = vpop.f32.mrf.mxu0 }
 0x111   : > { %v1526_v29 = vadd.f32 %v1525_v27, %v1524_v25 }
 0x112   : > { %v1527_v30 = vpop.f32.mrf.mxu0 }
 0x113   : > { %v1133_v32 = vadd.f32 %v1526_v29, %v1132_v19 }
 0x114   : > { %v1528_v34 = vpop.f32.mrf.mxu0 }
 0x115   : > { %v1138_v35 = vadd.f32 %v1133_v32, %v893_v31 }
 0x117   : > { %v1146_v36 = vadd.f32 %v1451_v33, %v1138_v35 }
 0x119   : > { %v1147_v37 = vmax.f32 %v1146_v36, 0.0 }
 0x11b   : > { %v1148_v38 = vpack.c.bf16 %v1147_v37, %v1147_v37 }
 0x11d   : > { %1150 = vst.msk [vmem:[%s416_s28] sm:$0xf] %vm1149_vm2, %v1148_v38 }
 0x11e PF: > { %s15_s20 = sadd.s32 1, %s1671_s20   ;;  %s1943_s18 = smov %s1667_s19 }
 0x11f   : > { %p12_p5 = scmp.ge.s32.totalorder %s15_s20, 4   ;;  %s1944_s19 = smov %s1946_s21 }
 0x121   :  { %14 = sbr.rel (!%p12_p5) target bundleno = 2 (0x2), region = 78 }

// kernel: _lambda_.17
= control target key start
LH: loop header
LB: loop body
LE: loop exit
PB: predicated region body
PF: predicated region fallthrough
CT: control target
= control target key end

     0   :  { %s2776_s27 = smov 0   ;;  %s2778_s28 = smov 0   ;;  %s3207_s0 = inlined_call_operand.vmem [shape: bf16[2,3,8,576], index: 0, kind: input, shape index: {}, may-alias: {0,1,2}]   ;;  %s3208_s1 = inlined_call_operand.vmem [shape: bf16[2,3,8,576], index: 1, kind: input, shape index: {}, may-alias: {0,1,2}]   ;;  %s3209_s2 = inlined_call_operand.vmem [shape: bf16[2,3,8,576], index: 2, kind: input, shape index: {}, may-alias: {0,1,2}]   ;;  %s3210_s3 = inlined_call_operand.vmem [shape: bf16[3,576,64], index: 3, kind: input, shape index: {}]   ;;  %s3211_s4 = inlined_call_operand.vmem [shape: f32[1,64], index: 4, kind: input, shape index: {}]   ;;  %s3212_s5 = inlined_call_operand.vmem [shape: bf16[2,1,8,32], index: 5, kind: input, shape index: {}]   ;;  %s3213_s6 = inlined_call_operand.vmem [shape: bf16[1,32,64], index: 6, kind: input, shape index: {}]   ;;  %s3214_s7 = inlined_call_operand.vmem [shape: f32[1,64], index: 7, kind: input, shape index: {}]   ;;  %s3215_s8 = inlined_call_operand.vmem [shape: bf16[2,1,8,64], index: 8, kind: output, shape index: {}]  }
   0x1   :  { %s2780_s29 = smov 0  }
   0x2 LB: > { %s37_s30 = sadd.s32 1, %s2723_s28  ;;  %p2070_p0 = scmp.ge.s32.totalorder %s2727_s29, 1  ;;  %s2727_s29 = sphi %s2780_s29, %s18_s29   ;;  %s2723_s28 = sphi %s2778_s28, %s3217_s28   ;;  %s2719_s27 = sphi %s2776_s27, %s3216_s27  }
   0x3   : > { %p39_p1 = scmp.ge.s32.totalorder %s37_s30, 2  ;;  %p368_p2 = scmp.lt.s32.totalorder %s2727_s29, 3 }
   0x5   : > { %s3219_s30 = smov (%p39_p1, %s37_s30), 0  ;;  %p369_p3 = pnand %p2070_p0, %p368_p2 }
   0x6   : > { %p453_p4 = scmp.lt.s32.totalorder (!%p369_p3), %s2719_s27, 1 }
   0x7   : > { %372 = sbr.rel (%p369_p3) target bundleno = 348 (0x15c), region = 52 }
   0xc   : > { %v2580_v0 = vld [vmem:[%s3210_s3 + $0x198] sm:$0xff]   ;;  %s3221_s27 = smov (!%p453_p4, %s2719_s27), 1  ;;  %v2584_v4 = vld [vmem:[%s3210_s3 + $0x190] sm:$0xff]   ;;  %v2588_v8 = vld [vmem:[%s3210_s3 + $0x188] sm:$0xff]   ;;  %v2729_v36 = vmov 0.0   ;;  %vm2730_vm0 = vmmov 0  }
   0xd   : > { %v2581_v1 = vld [vmem:[%s3210_s3 + $0x218] sm:$0xff]   ;;  %2357 = vmatprep.subr.bf16.mxu0 %v2580_v0  ;;  %v2585_v5 = vld [vmem:[%s3210_s3 + $0x210] sm:$0xff]   ;;  %v2589_v9 = vld [vmem:[%s3210_s3 + $0x208] sm:$0xff]   ;;  %s2866_s19 = smul.u32 60, %s3221_s27  ;;  %vm901_vm1 = vcmask 523264   ;;  %s2074_s11 = sshll.u32 %s3221_s27, 2 }
   0xe   : > { %v2582_v2 = vld [vmem:[%s3210_s3 + $0x158] sm:$0xff]   ;;  %2379 = vmatprep.subr.bf16.mxu1 %v2581_v1  ;;  %v2586_v6 = vld [vmem:[%s3210_s3 + $0x150] sm:$0xff]   ;;  %v2590_v10 = vld [vmem:[%s3210_s3 + $0x148] sm:$0xff]   ;;  %s505_s17 = scalar_lea.vmem %s3212_s5, %s2074_s11  ;;  %vm1846_vm2 = vcmask 261120   ;;  %s515_s12 = scalar_lea.vmem %s3215_s8, %s2074_s11  ;;  %vm1893_vm3 = vcmask 519168  }
   0xf   : > { %v2583_v3 = vld [vmem:[%s3210_s3 + $0x1d8] sm:$0xff]   ;;  %2358 = vmatpush3.bf16.msra.mxu0 %v2582_v2  ;;  %v2587_v7 = vld [vmem:[%s3210_s3 + $0x1d0] sm:$0xff]   ;;  %v2591_v11 = vld [vmem:[%s3210_s3 + $0x1c8] sm:$0xff]   ;;  %s2354_s10 = sadd.s32 20, %s2866_s19  ;;  %s2990_s9 = scalar_lea.vmem %s3207_s0, %s2866_s19 }
  0x10   : > { %2380 = vmatpush3.bf16.msra.mxu1 %v2583_v3  ;;  %2359 = vmatprep.subr.bf16.mxu0 %v2584_v4  ;;  %v2592_v12 = vld [vmem:[%s3210_s3 + $0x180] sm:$0xff]   ;;  %v2596_v16 = vld [vmem:[%s3210_s3 + $0x178] sm:$0xff]   ;;  %v2600_v20 = vld [vmem:[%s3210_s3 + $0x170] sm:$0xff]   ;;  %s2893_s20 = scalar_lea.vmem %s3208_s1, %s2354_s10  ;;  %s2356_s21 = sadd.s32 40, %s2866_s19 }
  0x11   : > { %2381 = vmatprep.subr.bf16.mxu1 %v2585_v5  ;;  %v2593_v13 = vld [vmem:[%s3210_s3 + $0x200] sm:$0xff]   ;;  %v2597_v17 = vld [vmem:[%s3210_s3 + $0x1f8] sm:$0xff]   ;;  %v2601_v21 = vld [vmem:[%s3210_s3 + $0x1f0] sm:$0xff]   ;;  %s3129_s19 = scalar_lea.vmem %s3209_s2, %s2356_s21 }
  0x12   : > { %v2594_v14 = vld [vmem:[%s3210_s3 + $0x140] sm:$0xff]   ;;  %v2598_v18 = vld [vmem:[%s3210_s3 + $0x138] sm:$0xff]   ;;  %v2602_v22 = vld [vmem:[%s3210_s3 + $0x130] sm:$0xff]  }
  0x13   : > { %2360 = vmatpush3.bf16.msra.mxu0 %v2586_v6  ;;  %v2595_v15 = vld [vmem:[%s3210_s3 + $0x1c0] sm:$0xff]   ;;  %v2599_v19 = vld [vmem:[%s3210_s3 + $0x1b8] sm:$0xff]   ;;  %v2603_v23 = vld [vmem:[%s3210_s3 + $0x1b0] sm:$0xff]  }
  0x14   : > { %2382 = vmatpush3.bf16.msra.mxu1 %v2587_v7  ;;  %2361 = vmatprep.subr.bf16.mxu0 %v2588_v8  ;;  %v2604_v24 = vld [vmem:[%s3210_s3 + $0x168] sm:$0xff]   ;;  %v2608_v28 = vld [vmem:[%s3210_s3 + $0x160] sm:$0xff]   ;;  %v2617_v39 = vld [vmem:[%s3210_s3 + $0x78] sm:$0xff]  }
  0x15   : > { %2383 = vmatprep.subr.bf16.mxu1 %v2589_v9  ;;  %v2605_v25 = vld [vmem:[%s3210_s3 + $0x1e8] sm:$0xff]   ;;  %v2609_v29 = vld [vmem:[%s3210_s3 + $0x1e0] sm:$0xff]   ;;  %v2618_v40 = vld [vmem:[%s3210_s3 + $0x238] sm:$0xff]  }
  0x16   : > { %v2606_v26 = vld [vmem:[%s3210_s3 + $0x128] sm:$0xff]   ;;  %v2610_v30 = vld [vmem:[%s3210_s3 + $0x120] sm:$0xff]   ;;  %v2619_v41 = vld [vmem:[%s3210_s3 + $0x38] sm:$0xff]  }
  0x17   : > { %2362 = vmatpush3.bf16.msra.mxu0 %v2590_v10  ;;  %v2607_v27 = vld [vmem:[%s3210_s3 + $0x1a8] sm:$0xff]   ;;  %v2611_v31 = vld [vmem:[%s3210_s3 + $0x1a0] sm:$0xff]   ;;  %v2620_v42 = vld [vmem:[%s3210_s3 + $0x70] sm:$0xff]  }
  0x18   : > { %2384 = vmatpush3.bf16.msra.mxu1 %v2591_v11  ;;  %2363 = vmatprep.subr.bf16.mxu0 %v2592_v12  ;;  %v592_v32 = vld [vmem:[%s2893_s20] sm:$0xff]  ;;  %v593_v35 = vld [vmem:[%s2893_s20 + $0x8] sm:$0xff]  ;;  %v2621_v43 = vld [vmem:[%s3210_s3 + $0x230] sm:$0xff]  }
  0x19   : > { %2385 = vmatprep.subr.bf16.mxu1 %v2593_v13  ;;  %v2148_v33 = vcombine.low %v592_v32, %v592_v32  ;;  %v2149_v34 = vcombine.high %v592_v32, %v592_v32  ;;  %v2150_v37 = vcombine.low %v593_v35, %v593_v35  ;;  %v2151_v38 = vcombine.high %v593_v35, %v593_v35  ;;  %v2622_v44 = vld [vmem:[%s3210_s3 + $0x30] sm:$0xff]   ;;  %v2623_v45 = vld [vmem:[%s3210_s3 + $0x68] sm:$0xff]   ;;  %v2626_v48 = vld [vmem:[%s3210_s3 + $0x60] sm:$0xff]  }
  0x1a   : > { %v2624_v46 = vld [vmem:[%s3210_s3 + $0x228] sm:$0xff]   ;;  %v2627_v49 = vld [vmem:[%s3210_s3 + $0x220] sm:$0xff]   ;;  %v2629_v51 = vld [vmem:[%s3210_s3 + $0x58] sm:$0xff]  }
  0x1b   : > { %2364 = vmatpush3.bf16.msra.mxu0 %v2594_v14  ;;  %937 = vmatprep.mubr.bf16.mxu0 %v2149_v34  ;;  %v2625_v47 = vld [vmem:[%s3210_s3 + $0x28] sm:$0xff]   ;;  %v2628_v50 = vld [vmem:[%s3210_s3 + $0x20] sm:$0xff]   ;;  %v2614_v52 = vld [vmem:[%s2893_s20 + $0x10] ss:$0 sps:$4 sm:$0xff]  }
  0x1c   : > { %2386 = vmatpush3.bf16.msra.mxu1 %v2595_v15  ;;  %2365 = vmatprep.subr.bf16.mxu0 %v2596_v16  ;;  %v2630_v53 = vld [vmem:[%s3210_s3 + $0xf8] sm:$0xff]   ;;  %v2633_v56 = vld [vmem:[%s3210_s3 + $0x50] sm:$0xff]   ;;  %v2637_v60 = vld [vmem:[%s3210_s3 + $0x48] sm:$0xff]  }
  0x1d   : > { %2387 = vmatprep.subr.bf16.mxu1 %v2597_v17  ;;  %977 = vmatprep.mubr.bf16.mxu1 %v2151_v38  ;;  %v2631_v54 = vld [vmem:[%s3210_s3 + $0x18] sm:$0xff]   ;;  %v2634_v57 = vld [vmem:[%s3210_s3 + $0xf0] sm:$0xff]   ;;  %v2638_v61 = vld [vmem:[%s3210_s3 + $0xe8] sm:$0xff]  }
  0x1e   : > { %v2632_v55 = vld [vmem:[%s3210_s3 + $0xb8] sm:$0xff]   ;;  %v2635_v58 = vld [vmem:[%s3210_s3 + $0x10] sm:$0xff]   ;;  %v2639_v62 = vld [vmem:[%s3210_s3 + $0x8] sm:$0xff]  }
  0x1f   : > { %2366 = vmatpush3.bf16.msra.mxu0 %v2598_v18  ;;  %v2636_v59 = vld [vmem:[%s3210_s3 + $0xb0] sm:$0xff]   ;;  %v2640_v63 = vld [vmem:[%s3210_s3 + $0xa8] sm:$0xff]   ;;  %v2641_v0 = vld [vmem:[%s3210_s3 + $0x40] sm:$0xff]  }
  0x20   : > { %2388 = vmatpush3.bf16.msra.mxu1 %v2599_v19  ;;  %2367 = vmatprep.subr.bf16.mxu0 %v2600_v20  ;;  %v2642_v1 = vld [vmem:[%s3210_s3 + $0xe0] sm:$0xff]   ;;  %v2648_v6 = vld [vmem:[%s3210_s3 + $0xd8] sm:$0xff]   ;;  %v2651_v10 = vld [vmem:[%s3210_s3 + $0xd0] sm:$0xff]  }
  0x21   : > { %2389 = vmatprep.subr.bf16.mxu1 %v2601_v21  ;;  %v2643_v2 = vld [vmem:[%s3210_s3] sm:$0xff]   ;;  %v2649_v8 = vld [vmem:[%s3210_s3 + $0x98] sm:$0xff]   ;;  %v2652_v11 = vld [vmem:[%s3210_s3 + $0x90] sm:$0xff]  }
  0x22   : > { %v517_v3 = vld [vmem:[%s2990_s9] sm:$0xff]  ;;  %v2650_v9 = vld [vmem:[%s3210_s3 + $0x118] sm:$0xff]   ;;  %v2653_v12 = vld [vmem:[%s3210_s3 + $0x110] sm:$0xff]  }
  0x23   : > { %2368 = vmatpush3.bf16.msra.mxu0 %v2602_v22  ;;  %v2644_v4 = vld [vmem:[%s3210_s3 + $0xa0] sm:$0xff]   ;;  %v2191_v5 = vcombine.high %v517_v3, %v517_v3  ;;  %v2190_v7 = vcombine.low %v517_v3, %v517_v3  ;;  %v2654_v13 = vld [vmem:[%s3210_s3 + $0xc8] sm:$0xff]   ;;  %v2662_v21 = vld [vmem:[%s3210_s3 + $0x2b8] sm:$0xff]  }
  0x24   : > { %2390 = vmatpush3.bf16.msra.mxu1 %v2603_v23  ;;  %2369 = vmatprep.subr.bf16.mxu0 %v2604_v24  ;;  %v2655_v14 = vld [vmem:[%s3210_s3 + $0x88] sm:$0xff]   ;;  %v2657_v17 = vld [vmem:[%s3210_s3 + $0xc0] sm:$0xff]   ;;  %v2647_v22 = vld [vmem:[%s2990_s9 + $0x10] ss:$0 sps:$4 sm:$0xff]  }
  0x25   : > { %2391 = vmatprep.subr.bf16.mxu1 %v2605_v25  ;;  %v2656_v15 = vld [vmem:[%s3210_s3 + $0x108] sm:$0xff]   ;;  %v2658_v19 = vld [vmem:[%s3210_s3 + $0x80] sm:$0xff]   ;;  %v2663_v23 = vld [vmem:[%s3210_s3 + $0x338] sm:$0xff]  }
  0x26   : > { %v518_v16 = vld [vmem:[%s2990_s9 + $0x8] sm:$0xff]  ;;  %v2659_v20 = vld [vmem:[%s3210_s3 + $0x100] sm:$0xff]   ;;  %v2664_v24 = vld [vmem:[%s3210_s3 + $0x278] sm:$0xff]  }
  0x27   : > { %2370 = vmatpush3.bf16.msra.mxu0 %v2606_v26  ;;  %v2193_v18 = vcombine.high %v518_v16, %v518_v16  ;;  %v2192_v25 = vcombine.low %v518_v16, %v518_v16  ;;  %v2665_v26 = vld [vmem:[%s3210_s3 + $0x2f8] sm:$0xff]   ;;  %v2671_v32 = vld [vmem:[%s3210_s3 + $0x328] sm:$0xff]   ;;  %v2674_v35 = vld [vmem:[%s3210_s3 + $0x2a0] sm:$0xff]  }
  0x28   : > { %2392 = vmatpush3.bf16.msra.mxu1 %v2607_v27  ;;  %2371 = vmatprep.subr.bf16.mxu0 %v2608_v28  ;;  %v2666_v27 = vld [vmem:[%s3210_s3 + $0x2b0] sm:$0xff]   ;;  %v2673_v34 = vld [vmem:[%s3210_s3 + $0x2e8] sm:$0xff]   ;;  %v2676_v38 = vld [vmem:[%s3210_s3 + $0x260] sm:$0xff]  }
  0x29   : > { %2393 = vmatprep.subr.bf16.mxu1 %v2609_v29  ;;  %v2667_v28 = vld [vmem:[%s3210_s3 + $0x330] sm:$0xff]   ;;  %v1822_v3 = vld [vmem:[%s505_s17] sm:$0xf] }
  0x2a   : > { %v2668_v29 = vld [vmem:[%s3210_s3 + $0x270] sm:$0xff]  }
  0x2b   : > { %2372 = vmatpush3.bf16.msra.mxu0 %v2610_v30  ;;  %v2669_v30 = vld [vmem:[%s3210_s3 + $0x2f0] sm:$0xff]  }
  0x2c   : > { %2394 = vmatpush3.bf16.msra.mxu1 %v2611_v31  ;;  %2507 = vmatprep.subr.bf16.mxu0 %v2729_v36  ;;  %v2670_v31 = vld [vmem:[%s3210_s3 + $0x2a8] sm:$0xff]  }
  0x2d   : > { %2406 = vmatprep.subr.bf16.mxu1 %v2617_v39  ;;  %v2677_v39 = vld [vmem:[%s3210_s3 + $0x2e0] sm:$0xff]  }
  0x2e   : > { %938 = vmatmul.mubr.bf16.vlgmr.msra.gmra.mxu0 %v2148_v33  ;;  %v2672_v33 = vld [vmem:[%s3210_s3 + $0x268] sm:$0xff]  }
  0x2f   : > { %978 = vmatmul.mubr.bf16.vlgmr.msra.gmra.mxu1 %v2150_v37  ;;  %2508 = vmatpush3.bf16.msra.mxu0 %v2618_v40  ;;  %v2675_v37 = vld [vmem:[%s3210_s3 + $0x320] sm:$0xff]   ;;  %v2678_v40 = vld [vmem:[%s3210_s3 + $0x298] sm:$0xff]  }
  0x30   : > { %2407 = vmatpush3.bf16.msra.mxu1 %v2619_v41  ;;  %2509 = vmatprep.subr.bf16.mxu0 %v2729_v36  ;;  %v2679_v41 = vld [vmem:[%s3210_s3 + $0x318] sm:$0xff]  }
  0x31   : > { %2408 = vmatprep.subr.bf16.mxu1 %v2620_v42  ;;  %2515 = vmatprep.mubr.msk.bf16.mxu0 %vm2730_vm0, %v2729_v36  ;;  %v2680_v42 = vld [vmem:[%s3210_s3 + $0x258] sm:$0xff]  }
  0x32   : > { %1293 = vmatprep.mubr.bf16.mxu1 %v2191_v5  ;;  %v2696_v5 = vld [vmem:[%s3129_s19 + $0x10] ss:$0 sps:$4 sm:$0xff]  }
  0x33   : > { %2510 = vmatpush3.bf16.msra.mxu0 %v2621_v43  ;;  %v2681_v43 = vld [vmem:[%s3210_s3 + $0x2d8] sm:$0xff]  }
  0x34   : > { %2409 = vmatpush3.bf16.msra.mxu1 %v2622_v44  ;;  %2511 = vmatprep.subr.bf16.mxu0 %v2729_v36  ;;  %v2682_v44 = vld [vmem:[%s3210_s3 + $0x290] sm:$0xff]  }
  0x35   : > { %2410 = vmatprep.subr.bf16.mxu1 %v2623_v45  ;;  %v2683_v45 = vld [vmem:[%s3210_s3 + $0x310] sm:$0xff]  }
  0x37   : > { %2512 = vmatpush3.bf16.msra.mxu0 %v2624_v46  ;;  %v2684_v46 = vld [vmem:[%s3210_s3 + $0x250] sm:$0xff]  }
  0x38   : > { %2411 = vmatpush3.bf16.msra.mxu1 %v2625_v47  ;;  %2513 = vmatprep.subr.bf16.mxu0 %v2729_v36  ;;  %v2685_v47 = vld [vmem:[%s3210_s3 + $0x2d0] sm:$0xff]  }
  0x39   : > { %2412 = vmatprep.subr.bf16.mxu1 %v2626_v48  ;;  %v2686_v48 = vld [vmem:[%s3210_s3 + $0x288] sm:$0xff]  }
  0x3b   : > { %2514 = vmatpush3.bf16.msra.mxu0 %v2627_v49  ;;  %v2687_v49 = vld [vmem:[%s3210_s3 + $0x308] sm:$0xff]  }
  0x3c   : > { %2413 = vmatpush3.bf16.msra.mxu1 %v2628_v50  ;;  %2428 = vmatprep.subr.bf16.mxu0 %v2630_v53  ;;  %v2688_v50 = vld [vmem:[%s3210_s3 + $0x248] sm:$0xff]   ;;  %v1381_v53 = vld [vmem:[%s3129_s19] sm:$0xff] }
  0x3d   : > { %2414 = vmatprep.subr.bf16.mxu1 %v2629_v51  ;;  %v2689_v51 = vld [vmem:[%s3210_s3 + $0x2c8] sm:$0xff]  }
  0x3e   : > { %2516 = vmatmul.mubr.msk.bf16.vlgmr.msra.gmra.mxu0 %vm901_vm1, %v2614_v52  ;;  %v2690_v52 = vld [vmem:[%s3210_s3 + $0x280] sm:$0xff]  }
  0x3f   : > { %2429 = vmatpush3.bf16.msra.mxu0 %v2632_v55  ;;  %1333 = vmatprep.mubr.bf16.mxu0 %v2193_v18  ;;  %v2305_v55 = vcombine.high %v1381_v53, %v1381_v53 }
  0x40   : > { %2415 = vmatpush3.bf16.msra.mxu1 %v2631_v54  ;;  %2430 = vmatprep.subr.bf16.mxu0 %v2634_v57  ;;  %v2691_v54 = vld [vmem:[%s3210_s3 + $0x300] sm:$0xff]  }
  0x41   : > { %2416 = vmatprep.subr.bf16.mxu1 %v2633_v56  ;;  %v1382_v56 = vld [vmem:[%s3129_s19 + $0x8] sm:$0xff] }
  0x42   : > { %v2307_v57 = vcombine.high %v1382_v56, %v1382_v56 }
  0x43   : > { %2431 = vmatpush3.bf16.msra.mxu0 %v2636_v59  ;;  %v2693_v59 = vld [vmem:[%s3210_s3 + $0x2c0] sm:$0xff]  }
  0x44   : > { %2417 = vmatpush3.bf16.msra.mxu1 %v2635_v58  ;;  %2432 = vmatprep.subr.bf16.mxu0 %v2638_v61  ;;  %v2692_v58 = vld [vmem:[%s3210_s3 + $0x240] sm:$0xff]   ;;  %v2306_v61 = vcombine.low %v1382_v56, %v1382_v56 }
  0x45   : > { %2418 = vmatprep.subr.bf16.mxu1 %v2637_v60  ;;  %v2304_v60 = vcombine.low %v1381_v53, %v1381_v53  ;;  %v2347_v53 = vld [vmem:[%s3214_s7] ss:$0 sm:$0xff] }
  0x47   : > { %2433 = vmatpush3.bf16.msra.mxu0 %v2640_v63  ;;  %v2701_v63 = vld [vmem:[%s3213_s6 + $0x8] sm:$0xff]  }
  0x48   : > { %2419 = vmatpush3.bf16.msra.mxu1 %v2639_v62  ;;  %2434 = vmatprep.subr.bf16.mxu0 %v2642_v1  ;;  %v2699_v62 = vld [vmem:[%s3210_s3 + $0x358] sm:$0xff]   ;;  %v2703_v1 = vld [vmem:[%s3213_s6] sm:$0xff]  }
  0x49   : > { %2420 = vmatprep.subr.bf16.mxu1 %v2641_v0  ;;  %v2700_v0 = vld [vmem:[%s3210_s3 + $0x350] sm:$0xff]  }
  0x4b   : > { %2435 = vmatpush3.bf16.msra.mxu0 %v2644_v4  ;;  %v2704_v4 = vld [vmem:[%s3210_s3 + $0x340] sm:$0xff]  }
  0x4c   : > { %2421 = vmatpush3.bf16.msra.mxu1 %v2643_v2  ;;  %2436 = vmatprep.subr.bf16.mxu0 %v2648_v6  ;;  %v2702_v2 = vld [vmem:[%s3210_s3 + $0x348] sm:$0xff]  }
  0x4d   : > { %2519 = vmatprep.subr.bf16.mxu1 %v2729_v36 }
  0x4f   : > { %1294 = vmatmul.mubr.bf16.vlgmr.msra.gmra.mxu1 %v2190_v7  ;;  %2437 = vmatpush3.bf16.msra.mxu0 %v2649_v8 }
  0x50   : > { %2520 = vmatpush3.bf16.msra.mxu1 %v2650_v9  ;;  %2438 = vmatprep.subr.bf16.mxu0 %v2651_v10 }
  0x51   : > { %2521 = vmatprep.subr.bf16.mxu1 %v2729_v36  ;;  %2527 = vmatprep.mubr.msk.bf16.mxu1 %vm2730_vm0, %v2729_v36 }
  0x53   : > { %2439 = vmatpush3.bf16.msra.mxu0 %v2652_v11 }
  0x54   : > { %2522 = vmatpush3.bf16.msra.mxu1 %v2653_v12  ;;  %2440 = vmatprep.subr.bf16.mxu0 %v2654_v13 }
  0x55   : > { %2523 = vmatprep.subr.bf16.mxu1 %v2729_v36 }
  0x57   : > { %2441 = vmatpush3.bf16.msra.mxu0 %v2655_v14 }
  0x58   : > { %2524 = vmatpush3.bf16.msra.mxu1 %v2656_v15  ;;  %2442 = vmatprep.subr.bf16.mxu0 %v2657_v17 }
  0x59   : > { %2525 = vmatprep.subr.bf16.mxu1 %v2729_v36 }
  0x5b   : > { %2443 = vmatpush3.bf16.msra.mxu0 %v2658_v19 }
  0x5c   : > { %2526 = vmatpush3.bf16.msra.mxu1 %v2659_v20  ;;  %2455 = vmatprep.subr.bf16.mxu0 %v2662_v21 }
  0x5d   : > { %2477 = vmatprep.subr.bf16.mxu1 %v2663_v23 }
  0x5e   : > { %1334 = vmatmul.mubr.bf16.vlgmr.msra.gmra.mxu0 %v2192_v25 }
  0x5f   : > { %2528 = vmatmul.mubr.msk.bf16.vlgmr.msra.gmra.mxu1 %vm901_vm1, %v2647_v22  ;;  %2456 = vmatpush3.bf16.msra.mxu0 %v2664_v24 }
  0x60   : > { %2478 = vmatpush3.bf16.msra.mxu1 %v2665_v26  ;;  %2457 = vmatprep.subr.bf16.mxu0 %v2666_v27 }
  0x61   : > { %2479 = vmatprep.subr.bf16.mxu1 %v2667_v28  ;;  %1725 = vmatprep.mubr.bf16.mxu0 %v2305_v55 }
  0x62   : > { %1765 = vmatprep.mubr.bf16.mxu1 %v2307_v57  ;;  %v2346_v57 = vld [vmem:[%s3211_s4] ss:$0 sm:$0xff] }
  0x63   : > { %2458 = vmatpush3.bf16.msra.mxu0 %v2668_v29 }
  0x64   : > { %2480 = vmatpush3.bf16.msra.mxu1 %v2669_v30  ;;  %2459 = vmatprep.subr.bf16.mxu0 %v2670_v31 }
  0x65   : > { %2481 = vmatprep.subr.bf16.mxu1 %v2671_v32 }
  0x67   : > { %2460 = vmatpush3.bf16.msra.mxu0 %v2672_v33 }
  0x68   : > { %2482 = vmatpush3.bf16.msra.mxu1 %v2673_v34  ;;  %2461 = vmatprep.subr.bf16.mxu0 %v2674_v35 }
  0x69   : > { %2483 = vmatprep.subr.bf16.mxu1 %v2675_v37 }
  0x6b   : > { %2462 = vmatpush3.bf16.msra.mxu0 %v2676_v38 }
  0x6c   : > { %2484 = vmatpush3.bf16.msra.mxu1 %v2677_v39  ;;  %2463 = vmatprep.subr.bf16.mxu0 %v2678_v40 }
  0x6d   : > { %2485 = vmatprep.subr.bf16.mxu1 %v2679_v41 }
  0x6f   : > { %2464 = vmatpush3.bf16.msra.mxu0 %v2680_v42 }
  0x70   : > { %2486 = vmatpush3.bf16.msra.mxu1 %v2681_v43  ;;  %2465 = vmatprep.subr.bf16.mxu0 %v2682_v44 }
  0x71   : > { %2487 = vmatprep.subr.bf16.mxu1 %v2683_v45 }
  0x73   : > { %2466 = vmatpush3.bf16.msra.mxu0 %v2684_v46 }
  0x74   : > { %2488 = vmatpush3.bf16.msra.mxu1 %v2685_v47  ;;  %2467 = vmatprep.subr.bf16.mxu0 %v2686_v48 }
  0x75   : > { %2489 = vmatprep.subr.bf16.mxu1 %v2687_v49 }
  0x77   : > { %2468 = vmatpush3.bf16.msra.mxu0 %v2688_v50 }
  0x78   : > { %2490 = vmatpush3.bf16.msra.mxu1 %v2689_v51  ;;  %2469 = vmatprep.subr.bf16.mxu0 %v2690_v52 }
  0x79   : > { %2491 = vmatprep.subr.bf16.mxu1 %v2691_v54 }
  0x7b   : > { %2470 = vmatpush3.bf16.msra.mxu0 %v2692_v58 }
  0x7c   : > { %2492 = vmatpush3.bf16.msra.mxu1 %v2693_v59  ;;  %2531 = vmatprep.subr.bf16.mxu0 %v2729_v36 }
  0x7d   : > { %2543 = vmatprep.subr.bf16.mxu1 %v2729_v36 }
  0x7e   : > { %1726 = vmatmul.mubr.bf16.vlgmr.msra.gmra.mxu0 %v2304_v60 }
  0x7f   : > { %1766 = vmatmul.mubr.bf16.vlgmr.msra.gmra.mxu1 %v2306_v61  ;;  %2532 = vmatpush3.bf16.msra.mxu0 %v2699_v62 }
  0x80   : > { %2544 = vmatpush3.bf16.msra.mxu1 %v2701_v63  ;;  %2533 = vmatprep.subr.bf16.mxu0 %v2729_v36 }
  0x81   : > { %2545 = vmatprep.subr.bf16.mxu1 %v2729_v36  ;;  %2547 = vmatprep.mubr.msk.bf16.mxu1 %vm2730_vm0, %v2729_v36 }
  0x82   : > { %2539 = vmatprep.mubr.msk.bf16.mxu0 %vm2730_vm0, %v2729_v36 }
  0x83   : > { %2534 = vmatpush3.bf16.msra.mxu0 %v2700_v0 }
  0x84   : > { %2546 = vmatpush3.bf16.msra.mxu1 %v2703_v1  ;;  %2535 = vmatprep.subr.bf16.mxu0 %v2729_v36 }
  0x87   : > { %2548 = vmatmul.mubr.msk.bf16.vlgmr.msra.gmra.mxu1 %vm1846_vm2, %v1822_v3  ;;  %2536 = vmatpush3.bf16.msra.mxu0 %v2702_v2 }
  0x88   : > { %2537 = vmatprep.subr.bf16.mxu0 %v2729_v36 }
  0x8b   : > { %2538 = vmatpush3.bf16.msra.mxu0 %v2704_v4 }
  0x8e   : > { %2540 = vmatmul.mubr.msk.bf16.vlgmr.msra.gmra.mxu0 %vm901_vm1, %v2696_v5 }
  0xee   : > { %v2373_v6 = vpop.f32.mrf.mxu0 }
  0xef   : > { %v2395_v7 = vpop.f32.mrf.mxu1 }
  0xf0   : > { %v2374_v8 = vpop.f32.mrf.mxu0 }
  0xf1   : > { %v2375_v9 = vadd.f32 %v2374_v8, %v2373_v6  ;;  %v2396_v10 = vpop.f32.mrf.mxu1 }
  0xf2   : > { %v2397_v11 = vadd.f32 %v2396_v10, %v2395_v7  ;;  %v2376_v12 = vpop.f32.mrf.mxu0 }
  0xf3   : > { %v2398_v13 = vpop.f32.mrf.mxu1 }
  0xf4   : > { %v2377_v14 = vpop.f32.mrf.mxu0  ;;  %v980_v15 = vadd.f32 %v2397_v11, %v2375_v9 }
  0xf5   : > { %v2399_v16 = vpop.f32.mrf.mxu1 }
  0xfe   : > { %v1019_v17 = vpop.f32.mrf.mxu0 }
  0xff   : > { %v1020_v18 = vadd.f32 %v1019_v17, %v980_v15 }
 0x100   : > { %v2517_v19 = vpop.f32.mrf.mxu0 }
 0x102   : > { %v1022_v20 = vpop.f32.mrf.mxu0 }
 0x104   : > { %v2518_v36 = vpop.f32.mrf.mxu0 }
 0x10f   : > { %v2422_v21 = vpop.f32.mrf.mxu1 }
 0x111   : > { %v2423_v22 = vpop.f32.mrf.mxu1 }
 0x112   : > { %v2424_v42 = vadd.f32 %v2423_v22, %v2422_v21 }
 0x113   : > { %v2425_v23 = vpop.f32.mrf.mxu1 }
 0x114   : > { %v1296_v46 = vadd.f32 %v2424_v42, %v1020_v18 }
 0x115   : > { %v2426_v24 = vpop.f32.mrf.mxu1 }
 0x11e   : > { %v2444_v25 = vpop.f32.mrf.mxu0 }
 0x11f   : > { %v1375_v26 = vpop.f32.mrf.mxu1 }
 0x120   : > { %v2445_v27 = vpop.f32.mrf.mxu0 }
 0x121   : > { %v2529_v28 = vpop.f32.mrf.mxu1  ;;  %v2446_v44 = vadd.f32 %v2445_v27, %v2444_v25 }
 0x122   : > { %v2447_v29 = vpop.f32.mrf.mxu0 }
 0x123   : > { %v1378_v30 = vpop.f32.mrf.mxu1  ;;  %v1336_v50 = vadd.f32 %v2446_v44, %v1296_v46 }
 0x124   : > { %v2448_v31 = vpop.f32.mrf.mxu0 }
 0x125   : > { %v2530_v32 = vpop.f32.mrf.mxu1  ;;  %v1376_v55 = vadd.f32 %v1375_v26, %v1336_v50 }
 0x13e   : > { %v2471_v33 = vpop.f32.mrf.mxu0 }
 0x13f   : > { %v2493_v34 = vpop.f32.mrf.mxu1 }
 0x140   : > { %v2472_v35 = vpop.f32.mrf.mxu0 }
 0x141   : > { %v2494_v37 = vpop.f32.mrf.mxu1  ;;  %v2473_v47 = vadd.f32 %v2472_v35, %v2471_v33 }
 0x142   : > { %v2474_v38 = vpop.f32.mrf.mxu0  ;;  %v2495_v48 = vadd.f32 %v2494_v37, %v2493_v34 }
 0x143   : > { %v2496_v39 = vpop.f32.mrf.mxu1 }
 0x144   : > { %v2475_v40 = vpop.f32.mrf.mxu0  ;;  %v1768_v52 = vadd.f32 %v2495_v48, %v2473_v47 }
 0x145   : > { %v2497_v41 = vpop.f32.mrf.mxu1 }
 0x147   : > { %v1884_v43 = vpop.f32.mrf.mxu1 }
 0x148   : > { %v1885_v59 = vadd.f32 %v2347_v53, %v1884_v43 }
 0x149   : > { %v2549_v45 = vpop.f32.mrf.mxu1 }
 0x14b   : > { %v1887_v49 = vpop.f32.mrf.mxu1 }
 0x14d   : > { %v2550_v51 = vpop.f32.mrf.mxu1 }
 0x14e   : > { %v1807_v54 = vpop.f32.mrf.mxu0 }
 0x14f   : > { %v1808_v56 = vadd.f32 %v1807_v54, %v1768_v52 }
 0x150   : > { %v2541_v58 = vpop.f32.mrf.mxu0 }
 0x151   : > { %v1813_v60 = vadd.f32 %v1808_v56, %v1376_v55 }
 0x152   : > { %v1810_v61 = vpop.f32.mrf.mxu0 }
 0x153   : > { %v1821_v62 = vadd.f32 %v2346_v57, %v1813_v60 }
 0x154   : > { %v2542_v63 = vpop.f32.mrf.mxu0 }
 0x155   : > { %v1890_v0 = vadd.f32 %v1885_v59, %v1821_v62 }
 0x157   : > { %v1891_v1 = vmax.f32 %v1890_v0, 0.0 }
 0x159   : > { %v1892_v2 = vpack.c.bf16 %v1891_v1, %v1891_v1 }
 0x15b   : > { %1894 = vst.msk [vmem:[%s515_s12] sm:$0xf] %vm1893_vm3, %v1892_v2 }
 0x15c PF: > { %s18_s29 = sadd.s32 1, %s2727_s29   ;;  %s3216_s27 = smov %s2723_s28 }
 0x15d   : > { %p15_p5 = scmp.ge.s32.totalorder %s18_s29, 4   ;;  %s3217_s28 = smov %s3219_s30 }
 0x15f   :  { %17 = sbr.rel (!%p15_p5) target bundleno = 2 (0x2), region = 93 }

</bundles_post_ra>
